<compile_context>
chip_gen: v7x
topology: tpu7x:2x2x1
jax: 0.10.0
libtpu: 0.0.40
codegen_flags: <defaults>
</compile_context>

<pallas_src>
import functools
import math

import jax
import jax.numpy as jnp
from jax.experimental import pallas as pl
from jax.experimental.pallas import tpu as pltpu

NEG_SLOPE = 0.01   # nn.LeakyReLU default
LN_EPS = 1e-5      # nn.LayerNorm default inside TransformerEncoderLayer
MASK_NEG = -1e9    # additive mask value for disallowed keys
# TODO(synk): if an entire sequence were padding, the -1e9 additive mask (rather than
# -inf + NaN handling) yields a uniform distribution over padded keys instead of
# PyTorch's NaN behavior.  Not hit by realistic inputs.


def _layer_norm(y, g, b):
    mu = jnp.mean(y, axis=-1, keepdims=True)
    var = jnp.mean((y - mu) ** 2, axis=-1, keepdims=True)
    return (y - mu) * jax.lax.rsqrt(var + LN_EPS) * g + b


# --------------------------------------------------------------------------
# Single fused kernel: whole Generator forward for the whole batch.
# --------------------------------------------------------------------------
def _generator_kernel(z_ref, oh_ref, mask_ref,
                      fcz_w_ref, fcz_b_ref, emb_ref,
                      fcin_w_ref, fcin_b_ref,
                      *rest, nhead, num_layers, B, S):
    layer_refs = rest[:num_layers * 12]
    fcout_w_ref, fcout_b_ref, o_ref = rest[num_layers * 12:]

    BS = B * S
    D = fcin_w_ref.shape[0]          # d_model
    d2 = fcz_w_ref.shape[1]          # d_model // 2
    hd = D // nhead
    scale = 1.0 / math.sqrt(hd)

    # ---- stem: fc_z, embedding lookup (one-hot matmul; padding_idx row of the
    # table is zero), concat + fc_in + LeakyReLU.  The lane-concat is folded
    # into two matmuls against the row-split fc_in weight.
    zf = jnp.dot(z_ref[...], fcz_w_ref[...],
                 preferred_element_type=jnp.float32) + fcz_b_ref[...]
    emb = jnp.dot(oh_ref[...], emb_ref[...], preferred_element_type=jnp.float32)
    w_in = fcin_w_ref[...]
    x = (jnp.dot(zf, w_in[:d2, :], preferred_element_type=jnp.float32)
         + jnp.dot(emb, w_in[d2:, :], preferred_element_type=jnp.float32)
         + fcin_b_ref[...])
    x = jnp.where(x >= 0, x, NEG_SLOPE * x)      # LeakyReLU

    add_mask = mask_ref[...]                     # (nhead*BS, nhead*BS) additive

    for li in range(num_layers):                 # static unroll over layers
        (wqkv, bqkv, wo, bo, g1, be1,
         w1, b1, w2, b2, g2, be2) = layer_refs[li * 12:(li + 1) * 12]

        # fused QKV projection: one (BS, D) @ (D, 3D) MXU push
        qkv = jnp.dot(x, wqkv[...], preferred_element_type=jnp.float32) + bqkv[...]
        q, k, v = qkv[:, :D], qkv[:, D:2 * D], qkv[:, 2 * D:]

        # stack heads along sublanes: rows ordered (head, batch, seq)
        qs = jnp.concatenate([q[:, h * hd:(h + 1) * hd] for h in range(nhead)], axis=0)
        ks = jnp.concatenate([k[:, h * hd:(h + 1) * hd] for h in range(nhead)], axis=0)
        vs = jnp.concatenate([v[:, h * hd:(h + 1) * hd] for h in range(nhead)], axis=0)

        # ONE block-diagonal score matmul; contract last dims (no explicit .T)
        s = jax.lax.dot_general(qs, ks, (((1,), (1,)), ((), ())),
                                preferred_element_type=jnp.float32) * scale
        s = s + add_mask
        s = s - jnp.max(s, axis=-1, keepdims=True)
        p = jnp.exp(s)
        p = p * pl.reciprocal(jnp.sum(p, axis=-1, keepdims=True), approx=True)

        # ONE PV matmul, then unstack heads back onto lanes
        ctx = jnp.dot(p, vs, preferred_element_type=jnp.float32)   # (nhead*BS, hd)
        attn = jnp.concatenate(
            [ctx[h * BS:(h + 1) * BS, :] for h in range(nhead)], axis=1)
        attn = jnp.dot(attn, wo[...], preferred_element_type=jnp.float32) + bo[...]

        # post-norm residual blocks (PyTorch default norm_first=False)
        x1 = _layer_norm(x + attn, g1[...], be1[...])
        ff = jnp.dot(x1, w1[...], preferred_element_type=jnp.float32) + b1[...]
        ff = jnp.maximum(ff, 0.0)                # TransformerEncoderLayer default relu
        ff = jnp.dot(ff, w2[...], preferred_element_type=jnp.float32) + b2[...]
        x = _layer_norm(x1 + ff, g2[...], be2[...])

    out = jnp.dot(x, fcout_w_ref[...], preferred_element_type=jnp.float32) + fcout_b_ref[...]
    o_ref[...] = jax.nn.sigmoid(out).astype(o_ref.dtype)


def generator_forward(params, z, label, padding_mask, *, nhead):
    B, S, dl = z.shape
    BS = B * S
    num_layers = len(params["layers"])
    nl_pad = params["emb"].shape[0]

    z_flat = z.reshape(BS, dl).astype(jnp.float32)
    onehot = jax.nn.one_hot(label.reshape(BS), nl_pad, dtype=jnp.float32)

    # Additive attention mask over the stacked (head, batch, seq) rows/cols:
    # allow only same-head, same-batch, non-padded keys.
    R = nhead * BS
    r = jnp.arange(R)
    head = r // BS
    bat = (r % BS) // S
    same = (head[:, None] == head[None, :]) & (bat[:, None] == bat[None, :])
    key_ok = jnp.logical_not(padding_mask.reshape(BS))[r % BS]
    add_mask = jnp.where(same & key_ok[None, :], 0.0, MASK_NEG).astype(jnp.float32)

    flat_layers = [a for lp in params["layers"] for a in lp]
    inputs = [z_flat, onehot, add_mask,
              params["fc_z_w"], params["fc_z_b"], params["emb"],
              params["fc_in_w"], params["fc_in_b"],
              *flat_layers,
              params["fc_out_w"], params["fc_out_b"]]

    out = pl.pallas_call(
        functools.partial(_generator_kernel, nhead=nhead,
                          num_layers=num_layers, B=B, S=S),
        out_shape=jax.ShapeDtypeStruct((BS, 4), jnp.float32),
        in_specs=[pl.BlockSpec(memory_space=pltpu.MemorySpace.VMEM)
                  for _ in inputs],
        out_specs=pl.BlockSpec(memory_space=pltpu.MemorySpace.VMEM),
        compiler_params=pltpu.CompilerParams(vmem_limit_bytes=32 * 1024 * 1024),
    )(*inputs)
    return out.reshape(B, S, 4)


# --------------------------------------------------------------------------
# Parameter init (deterministic, synthetic — module __init__ shapes, weights
# stored pre-transposed (Din, Dout) and QKV pre-fused).
# --------------------------------------------------------------------------
def init_params(key, dim_latent, num_label, padding_idx, d_model, nhead, num_layers):
    d2 = d_model // 2
    dff = d_model // 2                       # dim_feedforward = d_model // 2
    nl_pad = ((num_label + 7) // 8) * 8      # pad label-table rows for alignment

    kit = iter(jax.random.split(key, 8 + 8 * num_layers))

    def w(shape, scale=0.05):
        return scale * jax.random.normal(next(kit), shape, jnp.float32)

    emb = w((nl_pad, d2))
    emb = emb.at[padding_idx].set(0.0)       # nn.Embedding padding_idx row is zero
    emb = emb.at[num_label:].set(0.0)        # padded (unused) rows are zero

    params = {
        "fc_z_w": w((dim_latent, d2)), "fc_z_b": w((1, d2)),
        "emb": emb,
        "fc_in_w": w((d_model, d_model)), "fc_in_b": w((1, d_model)),
        "fc_out_w": w((d_model, 4)), "fc_out_b": w((1, 4)),
        "layers": [],
    }
    ones = jnp.ones((1, d_model), jnp.float32)
    zeros = jnp.zeros((1, d_model), jnp.float32)
    for _ in range(num_layers):
        layer = (
            w((d_model, 3 * d_model)), w((1, 3 * d_model)),   # fused Wqkv, bqkv
            w((d_model, d_model)), w((1, d_model)),            # Wo, bo
            ones, zeros,                                        # LayerNorm1
            w((d_model, dff)), w((1, dff)),                     # FFN linear1
            w((dff, d_model)), w((1, d_model)),                 # FFN linear2
            ones, zeros,                                        # LayerNorm2
        )
        params["layers"].append(layer)
    return params


# --------------------------------------------------------------------------
# Pure-JAX reference (same math, straightforward per-head attention) for a
# tolerance check against the fused kernel.
# --------------------------------------------------------------------------
def reference_forward(params, z, label, padding_mask, *, nhead):
    B, S, _ = z.shape
    D = params["fc_in_w"].shape[0]
    hd = D // nhead
    zf = z.reshape(B * S, -1) @ params["fc_z_w"] + params["fc_z_b"]
    emb = params["emb"][label.reshape(-1)]
    x = jnp.concatenate([zf, emb], axis=-1) @ params["fc_in_w"] + params["fc_in_b"]
    x = jnp.where(x >= 0, x, NEG_SLOPE * x)
    x = x.reshape(B, S, D)
    neg = jnp.where(padding_mask, MASK_NEG, 0.0)[:, None, None, :]
    for lp in params["layers"]:
        wqkv, bqkv, wo, bo, g1, be1, w1, b1, w2, b2, g2, be2 = lp
        qkv = x @ wqkv + bqkv
        q, k, v = qkv[..., :D], qkv[..., D:2 * D], qkv[..., 2 * D:]
        q = q.reshape(B, S, nhead, hd).transpose(0, 2, 1, 3)
        k = k.reshape(B, S, nhead, hd).transpose(0, 2, 1, 3)
        v = v.reshape(B, S, nhead, hd).transpose(0, 2, 1, 3)
        s = jnp.einsum("bhqd,bhkd->bhqk", q, k) / math.sqrt(hd) + neg
        p = jax.nn.softmax(s, axis=-1)
        ctx = jnp.einsum("bhqk,bhkd->bhqd", p, v).transpose(0, 2, 1, 3).reshape(B, S, D)
        attn = ctx @ wo + bo
        x1 = _layer_norm(x + attn, g1, be1)
        ff = jnp.maximum(x1 @ w1 + b1, 0.0) @ w2 + b2
        x = _layer_norm(x1 + ff, g2, be2)
    out = x.reshape(B * S, D) @ params["fc_out_w"] + params["fc_out_b"]
    return jax.nn.sigmoid(out).reshape(B, S, 4)


if __name__ == "__main__":
    B, S = 2, 8
    dim_latent, num_label, padding_idx = 16, 6, 0
    d_model, nhead, num_layers = 64, 8, 2

    root = jax.random.PRNGKey(0)
    kp, kz, kl = jax.random.split(root, 3)

    params = init_params(kp, dim_latent, num_label, padding_idx,
                         d_model, nhead, num_layers)

    z = jax.random.normal(kz, (B, S, dim_latent), jnp.float32)
    label = jax.random.randint(kl, (B, S), 1, num_label)
    # last two positions of each sequence are padding
    padding_mask = jnp.zeros((B, S), dtype=bool).at[:, -2:].set(True)
    label = label.at[:, -2:].set(padding_idx)

    out = generator_forward(params, z, label, padding_mask, nhead=nhead)
    jax.block_until_ready(out)

    assert out.shape == (B, S, 4), out.shape
    assert bool(jnp.all(jnp.isfinite(out)))
    assert bool(jnp.all((out >= 0.0) & (out <= 1.0)))  # sigmoid range

    ref = reference_forward(params, z, label, padding_mask, nhead=nhead)
    max_err = float(jnp.max(jnp.abs(out - ref)))
    assert max_err < 1e-2, max_err  # loose tol: approx reciprocal + fused-head attention
    print("KERNEL_OK")
</pallas_src>

<mosaic_0001>
module attributes {stable_mosaic.version = 11 : i64} {
  func.func @_generator_kernel(%arg0: memref<16x16xf32, #tpu.memory_space<vmem>>, %arg1: memref<16x8xf32, #tpu.memory_space<vmem>>, %arg2: memref<128x128xf32, #tpu.memory_space<vmem>>, %arg3: memref<16x32xf32, #tpu.memory_space<vmem>>, %arg4: memref<1x32xf32, #tpu.memory_space<vmem>>, %arg5: memref<8x32xf32, #tpu.memory_space<vmem>>, %arg6: memref<64x64xf32, #tpu.memory_space<vmem>>, %arg7: memref<1x64xf32, #tpu.memory_space<vmem>>, %arg8: memref<64x192xf32, #tpu.memory_space<vmem>>, %arg9: memref<1x192xf32, #tpu.memory_space<vmem>>, %arg10: memref<64x64xf32, #tpu.memory_space<vmem>>, %arg11: memref<1x64xf32, #tpu.memory_space<vmem>>, %arg12: memref<1x64xf32, #tpu.memory_space<vmem>>, %arg13: memref<1x64xf32, #tpu.memory_space<vmem>>, %arg14: memref<64x32xf32, #tpu.memory_space<vmem>>, %arg15: memref<1x32xf32, #tpu.memory_space<vmem>>, %arg16: memref<32x64xf32, #tpu.memory_space<vmem>>, %arg17: memref<1x64xf32, #tpu.memory_space<vmem>>, %arg18: memref<1x64xf32, #tpu.memory_space<vmem>>, %arg19: memref<1x64xf32, #tpu.memory_space<vmem>>, %arg20: memref<64x192xf32, #tpu.memory_space<vmem>>, %arg21: memref<1x192xf32, #tpu.memory_space<vmem>>, %arg22: memref<64x64xf32, #tpu.memory_space<vmem>>, %arg23: memref<1x64xf32, #tpu.memory_space<vmem>>, %arg24: memref<1x64xf32, #tpu.memory_space<vmem>>, %arg25: memref<1x64xf32, #tpu.memory_space<vmem>>, %arg26: memref<64x32xf32, #tpu.memory_space<vmem>>, %arg27: memref<1x32xf32, #tpu.memory_space<vmem>>, %arg28: memref<32x64xf32, #tpu.memory_space<vmem>>, %arg29: memref<1x64xf32, #tpu.memory_space<vmem>>, %arg30: memref<1x64xf32, #tpu.memory_space<vmem>>, %arg31: memref<1x64xf32, #tpu.memory_space<vmem>>, %arg32: memref<64x4xf32, #tpu.memory_space<vmem>>, %arg33: memref<1x4xf32, #tpu.memory_space<vmem>>, %arg34: memref<16x4xf32, #tpu.memory_space<vmem>>) attributes {dimension_semantics = [], scalar_prefetch = 0 : i64, scratch_operands = 0 : i64, tpu.core_type = #tpu.core_type<tc>} {
    %c0 = arith.constant 0 : index
    %c0_0 = arith.constant 0 : index
    %0 = vector.load %arg0[%c0, %c0_0] : memref<16x16xf32, #tpu.memory_space<vmem>>, vector<16x16xf32>
    %c0_1 = arith.constant 0 : index
    %c0_2 = arith.constant 0 : index
    %1 = vector.load %arg3[%c0_1, %c0_2] : memref<16x32xf32, #tpu.memory_space<vmem>>, vector<16x32xf32>
    %cst = arith.constant dense<0.000000e+00> : vector<16x32xf32>
    %2 = tpu.matmul %0, %1, %cst {dimension_numbers = #tpu.dot_dimension_numbers<[1], [0], [0], [1], [0, 0, 1, 1], [], []>} : vector<16x16xf32>, vector<16x32xf32>, vector<16x32xf32> -> vector<16x32xf32>
    %c0_3 = arith.constant 0 : index
    %c0_4 = arith.constant 0 : index
    %3 = vector.load %arg4[%c0_3, %c0_4] : memref<1x32xf32, #tpu.memory_space<vmem>>, vector<1x32xf32>
    %4 = vector.broadcast %3 : vector<1x32xf32> to vector<16x32xf32>
    %5 = arith.addf %2, %4 : vector<16x32xf32>
    %c0_5 = arith.constant 0 : index
    %c0_6 = arith.constant 0 : index
    %6 = vector.load %arg1[%c0_5, %c0_6] : memref<16x8xf32, #tpu.memory_space<vmem>>, vector<16x8xf32>
    %c0_7 = arith.constant 0 : index
    %c0_8 = arith.constant 0 : index
    %7 = vector.load %arg5[%c0_7, %c0_8] : memref<8x32xf32, #tpu.memory_space<vmem>>, vector<8x32xf32>
    %cst_9 = arith.constant dense<0.000000e+00> : vector<16x32xf32>
    %8 = tpu.matmul %6, %7, %cst_9 {dimension_numbers = #tpu.dot_dimension_numbers<[1], [0], [0], [1], [0, 0, 1, 1], [], []>} : vector<16x8xf32>, vector<8x32xf32>, vector<16x32xf32> -> vector<16x32xf32>
    %c0_10 = arith.constant 0 : index
    %c0_11 = arith.constant 0 : index
    %9 = vector.load %arg6[%c0_10, %c0_11] : memref<64x64xf32, #tpu.memory_space<vmem>>, vector<64x64xf32>
    %10 = vector.extract_strided_slice %9 {offsets = [0, 0], sizes = [32, 64], strides = [1, 1]} : vector<64x64xf32> to vector<32x64xf32>
    %cst_12 = arith.constant dense<0.000000e+00> : vector<16x64xf32>
    %11 = tpu.matmul %5, %10, %cst_12 {dimension_numbers = #tpu.dot_dimension_numbers<[1], [0], [0], [1], [0, 0, 1, 1], [], []>} : vector<16x32xf32>, vector<32x64xf32>, vector<16x64xf32> -> vector<16x64xf32>
    %12 = vector.extract_strided_slice %9 {offsets = [32, 0], sizes = [32, 64], strides = [1, 1]} : vector<64x64xf32> to vector<32x64xf32>
    %cst_13 = arith.constant dense<0.000000e+00> : vector<16x64xf32>
    %13 = tpu.matmul %8, %12, %cst_13 {dimension_numbers = #tpu.dot_dimension_numbers<[1], [0], [0], [1], [0, 0, 1, 1], [], []>} : vector<16x32xf32>, vector<32x64xf32>, vector<16x64xf32> -> vector<16x64xf32>
    %14 = arith.addf %11, %13 : vector<16x64xf32>
    %c0_14 = arith.constant 0 : index
    %c0_15 = arith.constant 0 : index
    %15 = vector.load %arg7[%c0_14, %c0_15] : memref<1x64xf32, #tpu.memory_space<vmem>>, vector<1x64xf32>
    %16 = vector.broadcast %15 : vector<1x64xf32> to vector<16x64xf32>
    %17 = arith.addf %14, %16 : vector<16x64xf32>
    %cst_16 = arith.constant 0.000000e+00 : f32
    %18 = vector.broadcast %cst_16 : f32 to vector<16x64xf32>
    %19 = arith.cmpf oge, %17, %18 : vector<16x64xf32>
    %cst_17 = arith.constant 0.00999999977 : f32
    %20 = vector.broadcast %cst_17 : f32 to vector<16x64xf32>
    %21 = arith.mulf %20, %17 : vector<16x64xf32>
    %22 = arith.select %19, %17, %21 : vector<16x64xi1>, vector<16x64xf32>
    %c0_18 = arith.constant 0 : index
    %c0_19 = arith.constant 0 : index
    %23 = vector.load %arg2[%c0_18, %c0_19] : memref<128x128xf32, #tpu.memory_space<vmem>>, vector<128x128xf32>
    %c0_20 = arith.constant 0 : index
    %c0_21 = arith.constant 0 : index
    %24 = vector.load %arg8[%c0_20, %c0_21] : memref<64x192xf32, #tpu.memory_space<vmem>>, vector<64x192xf32>
    %cst_22 = arith.constant dense<0.000000e+00> : vector<16x192xf32>
    %25 = tpu.matmul %22, %24, %cst_22 {dimension_numbers = #tpu.dot_dimension_numbers<[1], [0], [0], [1], [0, 0, 1, 1], [], []>} : vector<16x64xf32>, vector<64x192xf32>, vector<16x192xf32> -> vector<16x192xf32>
    %c0_23 = arith.constant 0 : index
    %c0_24 = arith.constant 0 : index
    %26 = vector.load %arg9[%c0_23, %c0_24] : memref<1x192xf32, #tpu.memory_space<vmem>>, vector<1x192xf32>
    %27 = vector.broadcast %26 : vector<1x192xf32> to vector<16x192xf32>
    %28 = arith.addf %25, %27 : vector<16x192xf32>
    %29 = vector.extract_strided_slice %28 {offsets = [0, 0], sizes = [16, 64], strides = [1, 1]} : vector<16x192xf32> to vector<16x64xf32>
    %30 = vector.extract_strided_slice %28 {offsets = [0, 64], sizes = [16, 64], strides = [1, 1]} : vector<16x192xf32> to vector<16x64xf32>
    %31 = vector.extract_strided_slice %28 {offsets = [0, 128], sizes = [16, 64], strides = [1, 1]} : vector<16x192xf32> to vector<16x64xf32>
    %32 = vector.extract_strided_slice %29 {offsets = [0, 0], sizes = [16, 8], strides = [1, 1]} : vector<16x64xf32> to vector<16x8xf32>
    %33 = vector.extract_strided_slice %29 {offsets = [0, 8], sizes = [16, 8], strides = [1, 1]} : vector<16x64xf32> to vector<16x8xf32>
    %34 = vector.extract_strided_slice %29 {offsets = [0, 16], sizes = [16, 8], strides = [1, 1]} : vector<16x64xf32> to vector<16x8xf32>
    %35 = vector.extract_strided_slice %29 {offsets = [0, 24], sizes = [16, 8], strides = [1, 1]} : vector<16x64xf32> to vector<16x8xf32>
    %36 = vector.extract_strided_slice %29 {offsets = [0, 32], sizes = [16, 8], strides = [1, 1]} : vector<16x64xf32> to vector<16x8xf32>
    %37 = vector.extract_strided_slice %29 {offsets = [0, 40], sizes = [16, 8], strides = [1, 1]} : vector<16x64xf32> to vector<16x8xf32>
    %38 = vector.extract_strided_slice %29 {offsets = [0, 48], sizes = [16, 8], strides = [1, 1]} : vector<16x64xf32> to vector<16x8xf32>
    %39 = vector.extract_strided_slice %29 {offsets = [0, 56], sizes = [16, 8], strides = [1, 1]} : vector<16x64xf32> to vector<16x8xf32>
    %40 = tpu.concatenate %32, %33, %34, %35, %36, %37, %38, %39 in 0 : vector<16x8xf32>, vector<16x8xf32>, vector<16x8xf32>, vector<16x8xf32>, vector<16x8xf32>, vector<16x8xf32>, vector<16x8xf32>, vector<16x8xf32> -> vector<128x8xf32>
    %41 = vector.extract_strided_slice %30 {offsets = [0, 0], sizes = [16, 8], strides = [1, 1]} : vector<16x64xf32> to vector<16x8xf32>
    %42 = vector.extract_strided_slice %30 {offsets = [0, 8], sizes = [16, 8], strides = [1, 1]} : vector<16x64xf32> to vector<16x8xf32>
    %43 = vector.extract_strided_slice %30 {offsets = [0, 16], sizes = [16, 8], strides = [1, 1]} : vector<16x64xf32> to vector<16x8xf32>
    %44 = vector.extract_strided_slice %30 {offsets = [0, 24], sizes = [16, 8], strides = [1, 1]} : vector<16x64xf32> to vector<16x8xf32>
    %45 = vector.extract_strided_slice %30 {offsets = [0, 32], sizes = [16, 8], strides = [1, 1]} : vector<16x64xf32> to vector<16x8xf32>
    %46 = vector.extract_strided_slice %30 {offsets = [0, 40], sizes = [16, 8], strides = [1, 1]} : vector<16x64xf32> to vector<16x8xf32>
    %47 = vector.extract_strided_slice %30 {offsets = [0, 48], sizes = [16, 8], strides = [1, 1]} : vector<16x64xf32> to vector<16x8xf32>
    %48 = vector.extract_strided_slice %30 {offsets = [0, 56], sizes = [16, 8], strides = [1, 1]} : vector<16x64xf32> to vector<16x8xf32>
    %49 = tpu.concatenate %41, %42, %43, %44, %45, %46, %47, %48 in 0 : vector<16x8xf32>, vector<16x8xf32>, vector<16x8xf32>, vector<16x8xf32>, vector<16x8xf32>, vector<16x8xf32>, vector<16x8xf32>, vector<16x8xf32> -> vector<128x8xf32>
    %50 = vector.extract_strided_slice %31 {offsets = [0, 0], sizes = [16, 8], strides = [1, 1]} : vector<16x64xf32> to vector<16x8xf32>
    %51 = vector.extract_strided_slice %31 {offsets = [0, 8], sizes = [16, 8], strides = [1, 1]} : vector<16x64xf32> to vector<16x8xf32>
    %52 = vector.extract_strided_slice %31 {offsets = [0, 16], sizes = [16, 8], strides = [1, 1]} : vector<16x64xf32> to vector<16x8xf32>
    %53 = vector.extract_strided_slice %31 {offsets = [0, 24], sizes = [16, 8], strides = [1, 1]} : vector<16x64xf32> to vector<16x8xf32>
    %54 = vector.extract_strided_slice %31 {offsets = [0, 32], sizes = [16, 8], strides = [1, 1]} : vector<16x64xf32> to vector<16x8xf32>
    %55 = vector.extract_strided_slice %31 {offsets = [0, 40], sizes = [16, 8], strides = [1, 1]} : vector<16x64xf32> to vector<16x8xf32>
    %56 = vector.extract_strided_slice %31 {offsets = [0, 48], sizes = [16, 8], strides = [1, 1]} : vector<16x64xf32> to vector<16x8xf32>
    %57 = vector.extract_strided_slice %31 {offsets = [0, 56], sizes = [16, 8], strides = [1, 1]} : vector<16x64xf32> to vector<16x8xf32>
    %58 = tpu.concatenate %50, %51, %52, %53, %54, %55, %56, %57 in 0 : vector<16x8xf32>, vector<16x8xf32>, vector<16x8xf32>, vector<16x8xf32>, vector<16x8xf32>, vector<16x8xf32>, vector<16x8xf32>, vector<16x8xf32> -> vector<128x8xf32>
    %cst_25 = arith.constant dense<0.000000e+00> : vector<128x128xf32>
    %59 = tpu.matmul %40, %49, %cst_25 {dimension_numbers = #tpu.dot_dimension_numbers<[1], [1], [0], [0], [0, 0, 1, 0], [], []>} : vector<128x8xf32>, vector<128x8xf32>, vector<128x128xf32> -> vector<128x128xf32>
    %cst_26 = arith.constant 0.353553385 : f32
    %60 = vector.broadcast %cst_26 : f32 to vector<128x128xf32>
    %61 = arith.mulf %59, %60 : vector<128x128xf32>
    %62 = arith.addf %61, %23 : vector<128x128xf32>
    %cst_27 = arith.constant dense<0xFF800000> : vector<128xf32>
    %63 = vector.multi_reduction <maximumf>, %62, %cst_27 [1] : vector<128x128xf32> to vector<128xf32>
    %64 = vector.shape_cast %63 : vector<128xf32> to vector<128x1xf32>
    %65 = vector.broadcast %64 : vector<128x1xf32> to vector<128x128xf32>
    %66 = arith.subf %62, %65 : vector<128x128xf32>
    %67 = math.exp %66 : vector<128x128xf32>
    %cst_28 = arith.constant dense<0.000000e+00> : vector<128xf32>
    %68 = vector.multi_reduction <add>, %67, %cst_28 [1] : vector<128x128xf32> to vector<128xf32>
    %69 = vector.shape_cast %68 : vector<128xf32> to vector<128x1xf32>
    %70 = tpu.reciprocal %69 {approx = true} : vector<128x1xf32> -> vector<128x1xf32>
    %71 = vector.broadcast %70 : vector<128x1xf32> to vector<128x128xf32>
    %72 = arith.mulf %67, %71 : vector<128x128xf32>
    %cst_29 = arith.constant dense<0.000000e+00> : vector<128x8xf32>
    %73 = tpu.matmul %72, %58, %cst_29 {dimension_numbers = #tpu.dot_dimension_numbers<[1], [0], [0], [1], [0, 0, 1, 1], [], []>} : vector<128x128xf32>, vector<128x8xf32>, vector<128x8xf32> -> vector<128x8xf32>
    %74 = vector.extract_strided_slice %73 {offsets = [0, 0], sizes = [16, 8], strides = [1, 1]} : vector<128x8xf32> to vector<16x8xf32>
    %75 = vector.extract_strided_slice %73 {offsets = [16, 0], sizes = [16, 8], strides = [1, 1]} : vector<128x8xf32> to vector<16x8xf32>
    %76 = vector.extract_strided_slice %73 {offsets = [32, 0], sizes = [16, 8], strides = [1, 1]} : vector<128x8xf32> to vector<16x8xf32>
    %77 = vector.extract_strided_slice %73 {offsets = [48, 0], sizes = [16, 8], strides = [1, 1]} : vector<128x8xf32> to vector<16x8xf32>
    %78 = vector.extract_strided_slice %73 {offsets = [64, 0], sizes = [16, 8], strides = [1, 1]} : vector<128x8xf32> to vector<16x8xf32>
    %79 = vector.extract_strided_slice %73 {offsets = [80, 0], sizes = [16, 8], strides = [1, 1]} : vector<128x8xf32> to vector<16x8xf32>
    %80 = vector.extract_strided_slice %73 {offsets = [96, 0], sizes = [16, 8], strides = [1, 1]} : vector<128x8xf32> to vector<16x8xf32>
    %81 = vector.extract_strided_slice %73 {offsets = [112, 0], sizes = [16, 8], strides = [1, 1]} : vector<128x8xf32> to vector<16x8xf32>
    %82 = tpu.concatenate %74, %75, %76, %77, %78, %79, %80, %81 in 1 : vector<16x8xf32>, vector<16x8xf32>, vector<16x8xf32>, vector<16x8xf32>, vector<16x8xf32>, vector<16x8xf32>, vector<16x8xf32>, vector<16x8xf32> -> vector<16x64xf32>
    %c0_30 = arith.constant 0 : index
    %c0_31 = arith.constant 0 : index
    %83 = vector.load %arg10[%c0_30, %c0_31] : memref<64x64xf32, #tpu.memory_space<vmem>>, vector<64x64xf32>
    %cst_32 = arith.constant dense<0.000000e+00> : vector<16x64xf32>
    %84 = tpu.matmul %82, %83, %cst_32 {dimension_numbers = #tpu.dot_dimension_numbers<[1], [0], [0], [1], [0, 0, 1, 1], [], []>} : vector<16x64xf32>, vector<64x64xf32>, vector<16x64xf32> -> vector<16x64xf32>
    %c0_33 = arith.constant 0 : index
    %c0_34 = arith.constant 0 : index
    %85 = vector.load %arg11[%c0_33, %c0_34] : memref<1x64xf32, #tpu.memory_space<vmem>>, vector<1x64xf32>
    %86 = vector.broadcast %85 : vector<1x64xf32> to vector<16x64xf32>
    %87 = arith.addf %84, %86 : vector<16x64xf32>
    %88 = arith.addf %22, %87 : vector<16x64xf32>
    %c0_35 = arith.constant 0 : index
    %c0_36 = arith.constant 0 : index
    %89 = vector.load %arg12[%c0_35, %c0_36] : memref<1x64xf32, #tpu.memory_space<vmem>>, vector<1x64xf32>
    %c0_37 = arith.constant 0 : index
    %c0_38 = arith.constant 0 : index
    %90 = vector.load %arg13[%c0_37, %c0_38] : memref<1x64xf32, #tpu.memory_space<vmem>>, vector<1x64xf32>
    %cst_39 = arith.constant dense<0.000000e+00> : vector<16xf32>
    %91 = vector.multi_reduction <add>, %88, %cst_39 [1] : vector<16x64xf32> to vector<16xf32>
    %92 = vector.shape_cast %91 : vector<16xf32> to vector<16x1xf32>
    %cst_40 = arith.constant 6.400000e+01 : f32
    %93 = vector.broadcast %cst_40 : f32 to vector<16x1xf32>
    %94 = arith.divf %92, %93 : vector<16x1xf32>
    %95 = vector.broadcast %94 : vector<16x1xf32> to vector<16x64xf32>
    %96 = arith.subf %88, %95 : vector<16x64xf32>
    %97 = arith.mulf %96, %96 : vector<16x64xf32>
    %cst_41 = arith.constant dense<0.000000e+00> : vector<16xf32>
    %98 = vector.multi_reduction <add>, %97, %cst_41 [1] : vector<16x64xf32> to vector<16xf32>
    %99 = vector.shape_cast %98 : vector<16xf32> to vector<16x1xf32>
    %cst_42 = arith.constant 6.400000e+01 : f32
    %100 = vector.broadcast %cst_42 : f32 to vector<16x1xf32>
    %101 = arith.divf %99, %100 : vector<16x1xf32>
    %102 = vector.broadcast %94 : vector<16x1xf32> to vector<16x64xf32>
    %103 = arith.subf %88, %102 : vector<16x64xf32>
    %cst_43 = arith.constant 9.99999974E-6 : f32
    %104 = vector.broadcast %cst_43 : f32 to vector<16x1xf32>
    %105 = arith.addf %101, %104 : vector<16x1xf32>
    %106 = math.rsqrt %105 : vector<16x1xf32>
    %107 = vector.broadcast %106 : vector<16x1xf32> to vector<16x64xf32>
    %108 = arith.mulf %103, %107 : vector<16x64xf32>
    %109 = vector.broadcast %89 : vector<1x64xf32> to vector<16x64xf32>
    %110 = arith.mulf %108, %109 : vector<16x64xf32>
    %111 = vector.broadcast %90 : vector<1x64xf32> to vector<16x64xf32>
    %112 = arith.addf %110, %111 : vector<16x64xf32>
    %c0_44 = arith.constant 0 : index
    %c0_45 = arith.constant 0 : index
    %113 = vector.load %arg14[%c0_44, %c0_45] : memref<64x32xf32, #tpu.memory_space<vmem>>, vector<64x32xf32>
    %cst_46 = arith.constant dense<0.000000e+00> : vector<16x32xf32>
    %114 = tpu.matmul %112, %113, %cst_46 {dimension_numbers = #tpu.dot_dimension_numbers<[1], [0], [0], [1], [0, 0, 1, 1], [], []>} : vector<16x64xf32>, vector<64x32xf32>, vector<16x32xf32> -> vector<16x32xf32>
    %c0_47 = arith.constant 0 : index
    %c0_48 = arith.constant 0 : index
    %115 = vector.load %arg15[%c0_47, %c0_48] : memref<1x32xf32, #tpu.memory_space<vmem>>, vector<1x32xf32>
    %116 = vector.broadcast %115 : vector<1x32xf32> to vector<16x32xf32>
    %117 = arith.addf %114, %116 : vector<16x32xf32>
    %cst_49 = arith.constant 0.000000e+00 : f32
    %118 = vector.broadcast %cst_49 : f32 to vector<16x32xf32>
    %119 = arith.maximumf %117, %118 : vector<16x32xf32>
    %c0_50 = arith.constant 0 : index
    %c0_51 = arith.constant 0 : index
    %120 = vector.load %arg16[%c0_50, %c0_51] : memref<32x64xf32, #tpu.memory_space<vmem>>, vector<32x64xf32>
    %cst_52 = arith.constant dense<0.000000e+00> : vector<16x64xf32>
    %121 = tpu.matmul %119, %120, %cst_52 {dimension_numbers = #tpu.dot_dimension_numbers<[1], [0], [0], [1], [0, 0, 1, 1], [], []>} : vector<16x32xf32>, vector<32x64xf32>, vector<16x64xf32> -> vector<16x64xf32>
    %c0_53 = arith.constant 0 : index
    %c0_54 = arith.constant 0 : index
    %122 = vector.load %arg17[%c0_53, %c0_54] : memref<1x64xf32, #tpu.memory_space<vmem>>, vector<1x64xf32>
    %123 = vector.broadcast %122 : vector<1x64xf32> to vector<16x64xf32>
    %124 = arith.addf %121, %123 : vector<16x64xf32>
    %125 = arith.addf %112, %124 : vector<16x64xf32>
    %c0_55 = arith.constant 0 : index
    %c0_56 = arith.constant 0 : index
    %126 = vector.load %arg18[%c0_55, %c0_56] : memref<1x64xf32, #tpu.memory_space<vmem>>, vector<1x64xf32>
    %c0_57 = arith.constant 0 : index
    %c0_58 = arith.constant 0 : index
    %127 = vector.load %arg19[%c0_57, %c0_58] : memref<1x64xf32, #tpu.memory_space<vmem>>, vector<1x64xf32>
    %cst_59 = arith.constant dense<0.000000e+00> : vector<16xf32>
    %128 = vector.multi_reduction <add>, %125, %cst_59 [1] : vector<16x64xf32> to vector<16xf32>
    %129 = vector.shape_cast %128 : vector<16xf32> to vector<16x1xf32>
    %cst_60 = arith.constant 6.400000e+01 : f32
    %130 = vector.broadcast %cst_60 : f32 to vector<16x1xf32>
    %131 = arith.divf %129, %130 : vector<16x1xf32>
    %132 = vector.broadcast %131 : vector<16x1xf32> to vector<16x64xf32>
    %133 = arith.subf %125, %132 : vector<16x64xf32>
    %134 = arith.mulf %133, %133 : vector<16x64xf32>
    %cst_61 = arith.constant dense<0.000000e+00> : vector<16xf32>
    %135 = vector.multi_reduction <add>, %134, %cst_61 [1] : vector<16x64xf32> to vector<16xf32>
    %136 = vector.shape_cast %135 : vector<16xf32> to vector<16x1xf32>
    %cst_62 = arith.constant 6.400000e+01 : f32
    %137 = vector.broadcast %cst_62 : f32 to vector<16x1xf32>
    %138 = arith.divf %136, %137 : vector<16x1xf32>
    %139 = vector.broadcast %131 : vector<16x1xf32> to vector<16x64xf32>
    %140 = arith.subf %125, %139 : vector<16x64xf32>
    %cst_63 = arith.constant 9.99999974E-6 : f32
    %141 = vector.broadcast %cst_63 : f32 to vector<16x1xf32>
    %142 = arith.addf %138, %141 : vector<16x1xf32>
    %143 = math.rsqrt %142 : vector<16x1xf32>
    %144 = vector.broadcast %143 : vector<16x1xf32> to vector<16x64xf32>
    %145 = arith.mulf %140, %144 : vector<16x64xf32>
    %146 = vector.broadcast %126 : vector<1x64xf32> to vector<16x64xf32>
    %147 = arith.mulf %145, %146 : vector<16x64xf32>
    %148 = vector.broadcast %127 : vector<1x64xf32> to vector<16x64xf32>
    %149 = arith.addf %147, %148 : vector<16x64xf32>
    %c0_64 = arith.constant 0 : index
    %c0_65 = arith.constant 0 : index
    %150 = vector.load %arg20[%c0_64, %c0_65] : memref<64x192xf32, #tpu.memory_space<vmem>>, vector<64x192xf32>
    %cst_66 = arith.constant dense<0.000000e+00> : vector<16x192xf32>
    %151 = tpu.matmul %149, %150, %cst_66 {dimension_numbers = #tpu.dot_dimension_numbers<[1], [0], [0], [1], [0, 0, 1, 1], [], []>} : vector<16x64xf32>, vector<64x192xf32>, vector<16x192xf32> -> vector<16x192xf32>
    %c0_67 = arith.constant 0 : index
    %c0_68 = arith.constant 0 : index
    %152 = vector.load %arg21[%c0_67, %c0_68] : memref<1x192xf32, #tpu.memory_space<vmem>>, vector<1x192xf32>
    %153 = vector.broadcast %152 : vector<1x192xf32> to vector<16x192xf32>
    %154 = arith.addf %151, %153 : vector<16x192xf32>
    %155 = vector.extract_strided_slice %154 {offsets = [0, 0], sizes = [16, 64], strides = [1, 1]} : vector<16x192xf32> to vector<16x64xf32>
    %156 = vector.extract_strided_slice %154 {offsets = [0, 64], sizes = [16, 64], strides = [1, 1]} : vector<16x192xf32> to vector<16x64xf32>
    %157 = vector.extract_strided_slice %154 {offsets = [0, 128], sizes = [16, 64], strides = [1, 1]} : vector<16x192xf32> to vector<16x64xf32>
    %158 = vector.extract_strided_slice %155 {offsets = [0, 0], sizes = [16, 8], strides = [1, 1]} : vector<16x64xf32> to vector<16x8xf32>
    %159 = vector.extract_strided_slice %155 {offsets = [0, 8], sizes = [16, 8], strides = [1, 1]} : vector<16x64xf32> to vector<16x8xf32>
    %160 = vector.extract_strided_slice %155 {offsets = [0, 16], sizes = [16, 8], strides = [1, 1]} : vector<16x64xf32> to vector<16x8xf32>
    %161 = vector.extract_strided_slice %155 {offsets = [0, 24], sizes = [16, 8], strides = [1, 1]} : vector<16x64xf32> to vector<16x8xf32>
    %162 = vector.extract_strided_slice %155 {offsets = [0, 32], sizes = [16, 8], strides = [1, 1]} : vector<16x64xf32> to vector<16x8xf32>
    %163 = vector.extract_strided_slice %155 {offsets = [0, 40], sizes = [16, 8], strides = [1, 1]} : vector<16x64xf32> to vector<16x8xf32>
    %164 = vector.extract_strided_slice %155 {offsets = [0, 48], sizes = [16, 8], strides = [1, 1]} : vector<16x64xf32> to vector<16x8xf32>
    %165 = vector.extract_strided_slice %155 {offsets = [0, 56], sizes = [16, 8], strides = [1, 1]} : vector<16x64xf32> to vector<16x8xf32>
    %166 = tpu.concatenate %158, %159, %160, %161, %162, %163, %164, %165 in 0 : vector<16x8xf32>, vector<16x8xf32>, vector<16x8xf32>, vector<16x8xf32>, vector<16x8xf32>, vector<16x8xf32>, vector<16x8xf32>, vector<16x8xf32> -> vector<128x8xf32>
    %167 = vector.extract_strided_slice %156 {offsets = [0, 0], sizes = [16, 8], strides = [1, 1]} : vector<16x64xf32> to vector<16x8xf32>
    %168 = vector.extract_strided_slice %156 {offsets = [0, 8], sizes = [16, 8], strides = [1, 1]} : vector<16x64xf32> to vector<16x8xf32>
    %169 = vector.extract_strided_slice %156 {offsets = [0, 16], sizes = [16, 8], strides = [1, 1]} : vector<16x64xf32> to vector<16x8xf32>
    %170 = vector.extract_strided_slice %156 {offsets = [0, 24], sizes = [16, 8], strides = [1, 1]} : vector<16x64xf32> to vector<16x8xf32>
    %171 = vector.extract_strided_slice %156 {offsets = [0, 32], sizes = [16, 8], strides = [1, 1]} : vector<16x64xf32> to vector<16x8xf32>
    %172 = vector.extract_strided_slice %156 {offsets = [0, 40], sizes = [16, 8], strides = [1, 1]} : vector<16x64xf32> to vector<16x8xf32>
    %173 = vector.extract_strided_slice %156 {offsets = [0, 48], sizes = [16, 8], strides = [1, 1]} : vector<16x64xf32> to vector<16x8xf32>
    %174 = vector.extract_strided_slice %156 {offsets = [0, 56], sizes = [16, 8], strides = [1, 1]} : vector<16x64xf32> to vector<16x8xf32>
    %175 = tpu.concatenate %167, %168, %169, %170, %171, %172, %173, %174 in 0 : vector<16x8xf32>, vector<16x8xf32>, vector<16x8xf32>, vector<16x8xf32>, vector<16x8xf32>, vector<16x8xf32>, vector<16x8xf32>, vector<16x8xf32> -> vector<128x8xf32>
    %176 = vector.extract_strided_slice %157 {offsets = [0, 0], sizes = [16, 8], strides = [1, 1]} : vector<16x64xf32> to vector<16x8xf32>
    %177 = vector.extract_strided_slice %157 {offsets = [0, 8], sizes = [16, 8], strides = [1, 1]} : vector<16x64xf32> to vector<16x8xf32>
    %178 = vector.extract_strided_slice %157 {offsets = [0, 16], sizes = [16, 8], strides = [1, 1]} : vector<16x64xf32> to vector<16x8xf32>
    %179 = vector.extract_strided_slice %157 {offsets = [0, 24], sizes = [16, 8], strides = [1, 1]} : vector<16x64xf32> to vector<16x8xf32>
    %180 = vector.extract_strided_slice %157 {offsets = [0, 32], sizes = [16, 8], strides = [1, 1]} : vector<16x64xf32> to vector<16x8xf32>
    %181 = vector.extract_strided_slice %157 {offsets = [0, 40], sizes = [16, 8], strides = [1, 1]} : vector<16x64xf32> to vector<16x8xf32>
    %182 = vector.extract_strided_slice %157 {offsets = [0, 48], sizes = [16, 8], strides = [1, 1]} : vector<16x64xf32> to vector<16x8xf32>
    %183 = vector.extract_strided_slice %157 {offsets = [0, 56], sizes = [16, 8], strides = [1, 1]} : vector<16x64xf32> to vector<16x8xf32>
    %184 = tpu.concatenate %176, %177, %178, %179, %180, %181, %182, %183 in 0 : vector<16x8xf32>, vector<16x8xf32>, vector<16x8xf32>, vector<16x8xf32>, vector<16x8xf32>, vector<16x8xf32>, vector<16x8xf32>, vector<16x8xf32> -> vector<128x8xf32>
    %cst_69 = arith.constant dense<0.000000e+00> : vector<128x128xf32>
    %185 = tpu.matmul %166, %175, %cst_69 {dimension_numbers = #tpu.dot_dimension_numbers<[1], [1], [0], [0], [0, 0, 1, 0], [], []>} : vector<128x8xf32>, vector<128x8xf32>, vector<128x128xf32> -> vector<128x128xf32>
    %cst_70 = arith.constant 0.353553385 : f32
    %186 = vector.broadcast %cst_70 : f32 to vector<128x128xf32>
    %187 = arith.mulf %185, %186 : vector<128x128xf32>
    %188 = arith.addf %187, %23 : vector<128x128xf32>
    %cst_71 = arith.constant dense<0xFF800000> : vector<128xf32>
    %189 = vector.multi_reduction <maximumf>, %188, %cst_71 [1] : vector<128x128xf32> to vector<128xf32>
    %190 = vector.shape_cast %189 : vector<128xf32> to vector<128x1xf32>
    %191 = vector.broadcast %190 : vector<128x1xf32> to vector<128x128xf32>
    %192 = arith.subf %188, %191 : vector<128x128xf32>
    %193 = math.exp %192 : vector<128x128xf32>
    %cst_72 = arith.constant dense<0.000000e+00> : vector<128xf32>
    %194 = vector.multi_reduction <add>, %193, %cst_72 [1] : vector<128x128xf32> to vector<128xf32>
    %195 = vector.shape_cast %194 : vector<128xf32> to vector<128x1xf32>
    %196 = tpu.reciprocal %195 {approx = true} : vector<128x1xf32> -> vector<128x1xf32>
    %197 = vector.broadcast %196 : vector<128x1xf32> to vector<128x128xf32>
    %198 = arith.mulf %193, %197 : vector<128x128xf32>
    %cst_73 = arith.constant dense<0.000000e+00> : vector<128x8xf32>
    %199 = tpu.matmul %198, %184, %cst_73 {dimension_numbers = #tpu.dot_dimension_numbers<[1], [0], [0], [1], [0, 0, 1, 1], [], []>} : vector<128x128xf32>, vector<128x8xf32>, vector<128x8xf32> -> vector<128x8xf32>
    %200 = vector.extract_strided_slice %199 {offsets = [0, 0], sizes = [16, 8], strides = [1, 1]} : vector<128x8xf32> to vector<16x8xf32>
    %201 = vector.extract_strided_slice %199 {offsets = [16, 0], sizes = [16, 8], strides = [1, 1]} : vector<128x8xf32> to vector<16x8xf32>
    %202 = vector.extract_strided_slice %199 {offsets = [32, 0], sizes = [16, 8], strides = [1, 1]} : vector<128x8xf32> to vector<16x8xf32>
    %203 = vector.extract_strided_slice %199 {offsets = [48, 0], sizes = [16, 8], strides = [1, 1]} : vector<128x8xf32> to vector<16x8xf32>
    %204 = vector.extract_strided_slice %199 {offsets = [64, 0], sizes = [16, 8], strides = [1, 1]} : vector<128x8xf32> to vector<16x8xf32>
    %205 = vector.extract_strided_slice %199 {offsets = [80, 0], sizes = [16, 8], strides = [1, 1]} : vector<128x8xf32> to vector<16x8xf32>
    %206 = vector.extract_strided_slice %199 {offsets = [96, 0], sizes = [16, 8], strides = [1, 1]} : vector<128x8xf32> to vector<16x8xf32>
    %207 = vector.extract_strided_slice %199 {offsets = [112, 0], sizes = [16, 8], strides = [1, 1]} : vector<128x8xf32> to vector<16x8xf32>
    %208 = tpu.concatenate %200, %201, %202, %203, %204, %205, %206, %207 in 1 : vector<16x8xf32>, vector<16x8xf32>, vector<16x8xf32>, vector<16x8xf32>, vector<16x8xf32>, vector<16x8xf32>, vector<16x8xf32>, vector<16x8xf32> -> vector<16x64xf32>
    %c0_74 = arith.constant 0 : index
    %c0_75 = arith.constant 0 : index
    %209 = vector.load %arg22[%c0_74, %c0_75] : memref<64x64xf32, #tpu.memory_space<vmem>>, vector<64x64xf32>
    %cst_76 = arith.constant dense<0.000000e+00> : vector<16x64xf32>
    %210 = tpu.matmul %208, %209, %cst_76 {dimension_numbers = #tpu.dot_dimension_numbers<[1], [0], [0], [1], [0, 0, 1, 1], [], []>} : vector<16x64xf32>, vector<64x64xf32>, vector<16x64xf32> -> vector<16x64xf32>
    %c0_77 = arith.constant 0 : index
    %c0_78 = arith.constant 0 : index
    %211 = vector.load %arg23[%c0_77, %c0_78] : memref<1x64xf32, #tpu.memory_space<vmem>>, vector<1x64xf32>
    %212 = vector.broadcast %211 : vector<1x64xf32> to vector<16x64xf32>
    %213 = arith.addf %210, %212 : vector<16x64xf32>
    %214 = arith.addf %149, %213 : vector<16x64xf32>
    %c0_79 = arith.constant 0 : index
    %c0_80 = arith.constant 0 : index
    %215 = vector.load %arg24[%c0_79, %c0_80] : memref<1x64xf32, #tpu.memory_space<vmem>>, vector<1x64xf32>
    %c0_81 = arith.constant 0 : index
    %c0_82 = arith.constant 0 : index
    %216 = vector.load %arg25[%c0_81, %c0_82] : memref<1x64xf32, #tpu.memory_space<vmem>>, vector<1x64xf32>
    %cst_83 = arith.constant dense<0.000000e+00> : vector<16xf32>
    %217 = vector.multi_reduction <add>, %214, %cst_83 [1] : vector<16x64xf32> to vector<16xf32>
    %218 = vector.shape_cast %217 : vector<16xf32> to vector<16x1xf32>
    %cst_84 = arith.constant 6.400000e+01 : f32
    %219 = vector.broadcast %cst_84 : f32 to vector<16x1xf32>
    %220 = arith.divf %218, %219 : vector<16x1xf32>
    %221 = vector.broadcast %220 : vector<16x1xf32> to vector<16x64xf32>
    %222 = arith.subf %214, %221 : vector<16x64xf32>
    %223 = arith.mulf %222, %222 : vector<16x64xf32>
    %cst_85 = arith.constant dense<0.000000e+00> : vector<16xf32>
    %224 = vector.multi_reduction <add>, %223, %cst_85 [1] : vector<16x64xf32> to vector<16xf32>
    %225 = vector.shape_cast %224 : vector<16xf32> to vector<16x1xf32>
    %cst_86 = arith.constant 6.400000e+01 : f32
    %226 = vector.broadcast %cst_86 : f32 to vector<16x1xf32>
    %227 = arith.divf %225, %226 : vector<16x1xf32>
    %228 = vector.broadcast %220 : vector<16x1xf32> to vector<16x64xf32>
    %229 = arith.subf %214, %228 : vector<16x64xf32>
    %cst_87 = arith.constant 9.99999974E-6 : f32
    %230 = vector.broadcast %cst_87 : f32 to vector<16x1xf32>
    %231 = arith.addf %227, %230 : vector<16x1xf32>
    %232 = math.rsqrt %231 : vector<16x1xf32>
    %233 = vector.broadcast %232 : vector<16x1xf32> to vector<16x64xf32>
    %234 = arith.mulf %229, %233 : vector<16x64xf32>
    %235 = vector.broadcast %215 : vector<1x64xf32> to vector<16x64xf32>
    %236 = arith.mulf %234, %235 : vector<16x64xf32>
    %237 = vector.broadcast %216 : vector<1x64xf32> to vector<16x64xf32>
    %238 = arith.addf %236, %237 : vector<16x64xf32>
    %c0_88 = arith.constant 0 : index
    %c0_89 = arith.constant 0 : index
    %239 = vector.load %arg26[%c0_88, %c0_89] : memref<64x32xf32, #tpu.memory_space<vmem>>, vector<64x32xf32>
    %cst_90 = arith.constant dense<0.000000e+00> : vector<16x32xf32>
    %240 = tpu.matmul %238, %239, %cst_90 {dimension_numbers = #tpu.dot_dimension_numbers<[1], [0], [0], [1], [0, 0, 1, 1], [], []>} : vector<16x64xf32>, vector<64x32xf32>, vector<16x32xf32> -> vector<16x32xf32>
    %c0_91 = arith.constant 0 : index
    %c0_92 = arith.constant 0 : index
    %241 = vector.load %arg27[%c0_91, %c0_92] : memref<1x32xf32, #tpu.memory_space<vmem>>, vector<1x32xf32>
    %242 = vector.broadcast %241 : vector<1x32xf32> to vector<16x32xf32>
    %243 = arith.addf %240, %242 : vector<16x32xf32>
    %cst_93 = arith.constant 0.000000e+00 : f32
    %244 = vector.broadcast %cst_93 : f32 to vector<16x32xf32>
    %245 = arith.maximumf %243, %244 : vector<16x32xf32>
    %c0_94 = arith.constant 0 : index
    %c0_95 = arith.constant 0 : index
    %246 = vector.load %arg28[%c0_94, %c0_95] : memref<32x64xf32, #tpu.memory_space<vmem>>, vector<32x64xf32>
    %cst_96 = arith.constant dense<0.000000e+00> : vector<16x64xf32>
    %247 = tpu.matmul %245, %246, %cst_96 {dimension_numbers = #tpu.dot_dimension_numbers<[1], [0], [0], [1], [0, 0, 1, 1], [], []>} : vector<16x32xf32>, vector<32x64xf32>, vector<16x64xf32> -> vector<16x64xf32>
    %c0_97 = arith.constant 0 : index
    %c0_98 = arith.constant 0 : index
    %248 = vector.load %arg29[%c0_97, %c0_98] : memref<1x64xf32, #tpu.memory_space<vmem>>, vector<1x64xf32>
    %249 = vector.broadcast %248 : vector<1x64xf32> to vector<16x64xf32>
    %250 = arith.addf %247, %249 : vector<16x64xf32>
    %251 = arith.addf %238, %250 : vector<16x64xf32>
    %c0_99 = arith.constant 0 : index
    %c0_100 = arith.constant 0 : index
    %252 = vector.load %arg30[%c0_99, %c0_100] : memref<1x64xf32, #tpu.memory_space<vmem>>, vector<1x64xf32>
    %c0_101 = arith.constant 0 : index
    %c0_102 = arith.constant 0 : index
    %253 = vector.load %arg31[%c0_101, %c0_102] : memref<1x64xf32, #tpu.memory_space<vmem>>, vector<1x64xf32>
    %cst_103 = arith.constant dense<0.000000e+00> : vector<16xf32>
    %254 = vector.multi_reduction <add>, %251, %cst_103 [1] : vector<16x64xf32> to vector<16xf32>
    %255 = vector.shape_cast %254 : vector<16xf32> to vector<16x1xf32>
    %cst_104 = arith.constant 6.400000e+01 : f32
    %256 = vector.broadcast %cst_104 : f32 to vector<16x1xf32>
    %257 = arith.divf %255, %256 : vector<16x1xf32>
    %258 = vector.broadcast %257 : vector<16x1xf32> to vector<16x64xf32>
    %259 = arith.subf %251, %258 : vector<16x64xf32>
    %260 = arith.mulf %259, %259 : vector<16x64xf32>
    %cst_105 = arith.constant dense<0.000000e+00> : vector<16xf32>
    %261 = vector.multi_reduction <add>, %260, %cst_105 [1] : vector<16x64xf32> to vector<16xf32>
    %262 = vector.shape_cast %261 : vector<16xf32> to vector<16x1xf32>
    %cst_106 = arith.constant 6.400000e+01 : f32
    %263 = vector.broadcast %cst_106 : f32 to vector<16x1xf32>
    %264 = arith.divf %262, %263 : vector<16x1xf32>
    %265 = vector.broadcast %257 : vector<16x1xf32> to vector<16x64xf32>
    %266 = arith.subf %251, %265 : vector<16x64xf32>
    %cst_107 = arith.constant 9.99999974E-6 : f32
    %267 = vector.broadcast %cst_107 : f32 to vector<16x1xf32>
    %268 = arith.addf %264, %267 : vector<16x1xf32>
    %269 = math.rsqrt %268 : vector<16x1xf32>
    %270 = vector.broadcast %269 : vector<16x1xf32> to vector<16x64xf32>
    %271 = arith.mulf %266, %270 : vector<16x64xf32>
    %272 = vector.broadcast %252 : vector<1x64xf32> to vector<16x64xf32>
    %273 = arith.mulf %271, %272 : vector<16x64xf32>
    %274 = vector.broadcast %253 : vector<1x64xf32> to vector<16x64xf32>
    %275 = arith.addf %273, %274 : vector<16x64xf32>
    %c0_108 = arith.constant 0 : index
    %c0_109 = arith.constant 0 : index
    %276 = vector.load %arg32[%c0_108, %c0_109] : memref<64x4xf32, #tpu.memory_space<vmem>>, vector<64x4xf32>
    %cst_110 = arith.constant dense<0.000000e+00> : vector<16x4xf32>
    %277 = tpu.matmul %275, %276, %cst_110 {dimension_numbers = #tpu.dot_dimension_numbers<[1], [0], [0], [1], [0, 0, 1, 1], [], []>} : vector<16x64xf32>, vector<64x4xf32>, vector<16x4xf32> -> vector<16x4xf32>
    %c0_111 = arith.constant 0 : index
    %c0_112 = arith.constant 0 : index
    %278 = vector.load %arg33[%c0_111, %c0_112] : memref<1x4xf32, #tpu.memory_space<vmem>>, vector<1x4xf32>
    %279 = vector.broadcast %278 : vector<1x4xf32> to vector<16x4xf32>
    %280 = arith.addf %277, %279 : vector<16x4xf32>
    %281 = arith.negf %280 : vector<16x4xf32>
    %282 = math.exp %281 : vector<16x4xf32>
    %cst_113 = arith.constant 1.000000e+00 : f32
    %283 = vector.broadcast %cst_113 : f32 to vector<16x4xf32>
    %284 = arith.addf %283, %282 : vector<16x4xf32>
    %285 = arith.divf %283, %284 : vector<16x4xf32>
    %c0_114 = arith.constant 0 : index
    %c0_115 = arith.constant 0 : index
    %286 = vector.load %arg34[%c0_114, %c0_115] : memref<16x4xf32, #tpu.memory_space<vmem>>, vector<16x4xf32>
    tpu.vector_store %arg34[%c0_114, %c0_115], %285 {strides = array<i32>} : memref<16x4xf32, #tpu.memory_space<vmem>>, vector<16x4xf32>,
    return
  }
}

</mosaic_0001>

<bundles_post_ra>
// kernel: tpu_custom_call.1
= control target key start
LH: loop header
LB: loop body
LE: loop exit
PB: predicated region body
PF: predicated region fallthrough
CT: control target
= control target key end

     0   :  { %s5248_s6 = smov 1   ;;  %s5249_s10 = smov 2   ;;  %s6416_s0 = inlined_call_operand.smem [shape: u32[35], index: -1, kind: input, shape index: {}] }
   0x1   :  { %s5330_s5 = sld [smem:[%s6416_s0]]   ;;  %s5250_s14 = smov 3  }
   0x2   :  { %s5335_s9 = sld [smem:[%s6416_s0 + %s5248_s6]]   ;;  %s5251_s18 = smov 4  }
   0x3   :  { %s5340_s13 = sld [smem:[%s6416_s0 + %s5249_s10]]   ;;  %s5252_s22 = smov 5  }
   0x4   :  { %s5345_s17 = sld [smem:[%s6416_s0 + %s5250_s14]]   ;;  %s5253_s26 = smov 6  }
   0x5   :  { %s5350_s21 = sld [smem:[%s6416_s0 + %s5251_s18]]   ;;  %s5254_s30 = smov 7  }
   0x6   :  { %s5355_s25 = sld [smem:[%s6416_s0 + %s5252_s22]]   ;;  %s5255_s4 = smov 8  }
   0x7   :  { %s5360_s29 = sld [smem:[%s6416_s0 + %s5253_s26]]   ;;  %s5256_s10 = smov 9  }
   0x8   :  { %6432 = sst [smem:[#allocation48_spill]] %s5335_s9  ;;  %s5257_s15 = smov 10  }
   0x9   :  { %6433 = sst [smem:[#allocation49_spill]] %s5340_s13  ;;  %s5258_s20 = smov 11  }
   0xa   :  { %s5365_s3 = sld [smem:[%s6416_s0 + %s5254_s30]]   ;;  %s5259_s26 = smov 12  }
   0xb   :  { %s5370_s8 = sld [smem:[%s6416_s0 + %s5255_s4]]   ;;  %s5260_s1 = smov 13  }
   0xc   :  { %s5375_s14 = sld [smem:[%s6416_s0 + %s5256_s10]]   ;;  %s5261_s7 = smov 14  }
   0xd   :  { %s5380_s19 = sld [smem:[%s6416_s0 + %s5257_s15]]   ;;  %s5262_s15 = smov 15  }
   0xe   :  { %s5385_s24 = sld [smem:[%s6416_s0 + %s5258_s20]]   ;;  %s5263_s22 = smov 16  }
   0xf   :  { %s5390_s30 = sld [smem:[%s6416_s0 + %s5259_s26]]   ;;  %s5264_s28 = smov 17  }
  0x10   :  { %s5395_s6 = sld [smem:[%s6416_s0 + %s5260_s1]]  }
  0x11   :  { %6434 = sst [smem:[#allocation50_spill]] %s5370_s8 }
  0x12   :  { %s5400_s12 = sld [smem:[%s6416_s0 + %s5261_s7]]   ;;  %s5265_s7 = smov 18  }
  0x13   :  { %6435 = sst [smem:[#allocation51_spill]] %s5380_s19 }
  0x14   :  { %s5405_s20 = sld [smem:[%s6416_s0 + %s5262_s15]]   ;;  %s5266_s15 = smov 19  }
  0x15   :  { %6436 = sst [smem:[#allocation52_spill]] %s5390_s30 }
  0x16   :  { %s5410_s27 = sld [smem:[%s6416_s0 + %s5263_s22]]   ;;  %s5267_s22 = smov 20  }
  0x17   :  { %s5415_s4 = sld [smem:[%s6416_s0 + %s5264_s28]]   ;;  %s5268_s28 = smov 21  }
  0x18   :  { %6437 = sst [smem:[#allocation53_spill]] %s5400_s12 }
  0x19   :  { %s5420_s12 = sld [smem:[%s6416_s0 + %s5265_s7]]   ;;  %s5269_s7 = smov 22  }
  0x1a   :  { %6438 = sst [smem:[#allocation54_spill]] %s5405_s20 }
  0x1b   :  { %s5425_s19 = sld [smem:[%s6416_s0 + %s5266_s15]]   ;;  %s5270_s15 = smov 23  }
  0x1c   :  { %s5430_s13 = sld [smem:[%s6416_s0 + %s5267_s22]]   ;;  %s5271_s22 = smov 24  }
  0x1d   :  { %6439 = sst [smem:[#allocation55_spill]] %s5415_s4 }
  0x1e   :  { %s5435_s8 = sld [smem:[%s6416_s0 + %s5268_s28]]   ;;  %s5272_s28 = smov 25  }
  0x1f   :  { %s5440_s9 = sld [smem:[%s6416_s0 + %s5269_s7]]   ;;  %s5273_s7 = smov 26  }
  0x20   :  { %s5455_s4 = sld [smem:[%s6416_s0 + %s5272_s28]]   ;;  %s5276_s28 = smov 29  }
  0x21   :  { %6440 = sst [smem:[#allocation56_spill]] %s5425_s19 }
  0x22   :  { %6441 = sst [smem:[#allocation57_spill]] %s5430_s13 }
  0x23   :  { %s5445_s19 = sld [smem:[%s6416_s0 + %s5270_s15]]   ;;  %s5274_s15 = smov 27  }
  0x24   :  { %s5450_s13 = sld [smem:[%s6416_s0 + %s5271_s22]]   ;;  %s5275_s22 = smov 28  }
  0x25   :  { %6442 = sst [smem:[#allocation58_spill]] %s5440_s9 }
  0x26   :  { %s5460_s9 = sld [smem:[%s6416_s0 + %s5273_s7]]   ;;  %s5277_s7 = smov 30  }
  0x27   :  { %s5465_s20 = sld [smem:[%s6416_s0 + %s5274_s15]]   ;;  %s5278_s15 = smov 31  }
  0x28   :  { %s5475_s30 = sld [smem:[%s6416_s0 + %s5276_s28]]   ;;  %s5280_s28 = smov 33  }
  0x2a   :  { %6443 = sst [smem:[#allocation59_spill]] %s5450_s13 }
  0x2b   :  { %s5470_s13 = sld [smem:[%s6416_s0 + %s5275_s22]]   ;;  %s5279_s22 = smov 32  }
  0x2c   :  { %6444 = sst [smem:[#allocation60_spill]] %s5460_s9 }
  0x2d   :  { %6445 = sst [smem:[#allocation61_spill]] %s5465_s20 }
  0x2e   :  { %6447 = sst [smem:[#allocation63_spill]] %s5475_s30 }
  0x2f   :  { %s5480_s9 = sld [smem:[%s6416_s0 + %s5277_s7]]   ;;  %s5281_s7 = smov 34  }
  0x30   :  { %s5485_s20 = sld [smem:[%s6416_s0 + %s5278_s15]]  }
  0x31   :  { %6446 = sst [smem:[#allocation62_spill]] %s5470_s13 }
  0x32   :  { %s5490_s13 = sld [smem:[%s6416_s0 + %s5279_s22]]  }
  0x33   :  { %s5495_s30 = sld [smem:[%s6416_s0 + %s5280_s28]]  }
  0x35   :  { %6448 = sst [smem:[#allocation64_spill]] %s5480_s9 }
  0x36   :  { %s5500_s9 = sld [smem:[%s6416_s0 + %s5281_s7]]  }
  0x37   :  { %74 = vsyncpa [#allocation3], 0 }
  0x38   :  { %75 = vsyncpa [#allocation5], 0 }
  0x39   :  { %76 = vsyncpa [#allocation8], 0 }
  0x3a   :  { %77 = vsyncpa [#allocation11], 0 }
  0x3b   :  { %78 = vsyncpa [#allocation14], 0 }
  0x3c   :  { %79 = vsyncpa [#allocation17], 0 }
  0x3d   :  { %80 = vsyncpa [#allocation20], 0 }
  0x3e   :  { %81 = vsyncpa [#allocation23], 0 }
  0x3f   :  { %82 = vsyncpa [#allocation26], 0 }
  0x40   :  { %83 = vsyncpa [#allocation29], 0 }
  0x41   :  { %84 = vsyncpa [#allocation32], 0 }
  0x42   :  { %85 = vsyncpa [#allocation35], 0  ;;  %s5282_s15 = smov [#allocation4]   ;;  %s5283_s18 = smov [#allocation7]  }
  0x43   :  { %s107_s16 = sshll.u32 %s5282_s15, 4  ;;  %s130_s0 = sshll.u32 %s5283_s18, 4  ;;  %s108_s16 = int_to_ptr.vmem [resolvable:$true] %s107_s16  ;;  %s131_s0 = int_to_ptr.vmem [resolvable:$true] %s130_s0 }
  0x44   :  { %s4740_s22 = scalar_lea.hbm %s5345_s17, 256 }
  0x45   :  { %p4741_p0 = scmp.ne.s32.totalorder %s5345_s17, %s4740_s22  ;;  %p4744_p1 = scmp.lt.u32.totalorder %s4740_s22, %s5345_s17 }
  0x47   :  { %p4746_p2 = pnand %p4744_p1, %p4741_p0 }
  0x49   :  { %4749 = shalt.err (!%p4746_p2)
}
  0x4a   :  { %s4750_s23 = scalar_lea.vmem %s108_s16, 256  ;;  %p4755_p4 = scmp.lt.s32.totalorder %s108_s16, %s108_s16 }
  0x4b   :  { %p4751_p3 = scmp.ne.s32.totalorder %s108_s16, %s4750_s23  ;;  %p4756_p5 = scmp.lt.s32.totalorder %s4750_s23, %s4750_s23 }
  0x4d   :  { %p4757_p6 = por %p4756_p5, %p4755_p4 }
  0x4f   :  { %p4758_p7 = pnand %p4757_p6, %p4751_p3 }
  0x51   :  { %4761 = shalt.err (!%p4758_p7)
}
  0x52   :  { %s5284_s26 = smov 128   ;;  %s5285_s28 = smov 8  }
  0x53   :  { %113 = dma.hbm_to_vmem [thread:$0]  %s5345_s17, 256, %s108_s16, [#allocation5], %s5284_s26, %s5284_s26, %s5285_s28  }
  0x54   :  { %s4762_s1 = scalar_lea.hbm %s5355_s25, 128 }
  0x55   :  { %p4763_p8 = scmp.ne.s32.totalorder %s5355_s25, %s4762_s1  ;;  %p4766_p9 = scmp.lt.u32.totalorder %s4762_s1, %s5355_s25 }
  0x57   :  { %p4768_p10 = pnand %p4766_p9, %p4763_p8 }
  0x59   :  { %4771 = shalt.err (!%p4768_p10)
}
  0x5a   :  { %s4772_s2 = scalar_lea.vmem %s131_s0, 128  ;;  %p4777_p12 = scmp.lt.s32.totalorder %s131_s0, %s131_s0 }
  0x5b   :  { %p4773_p11 = scmp.ne.s32.totalorder %s131_s0, %s4772_s2  ;;  %p4778_p13 = scmp.lt.s32.totalorder %s4772_s2, %s4772_s2 }
  0x5d   :  { %p4779_p0 = por %p4778_p13, %p4777_p12 }
  0x5f   :  { %p4780_p1 = pnand %p4779_p0, %p4773_p11 }
  0x61   :  { %4783 = shalt.err (!%p4780_p1)
}
  0x62   :  { %133 = dma.hbm_to_vmem [thread:$0]  %s5355_s25, 128, %s131_s0, [#allocation8]  }
  0x63   :  { %s5286_s7 = smov [#allocation10]   ;;  %s5287_s17 = smov [#allocation13]  }
  0x64   :  { %s152_s10 = sshll.u32 %s5286_s7, 4  ;;  %s176_s11 = sshll.u32 %s5287_s17, 4  ;;  %s153_s10 = int_to_ptr.vmem [resolvable:$true] %s152_s10  ;;  %s177_s11 = int_to_ptr.vmem [resolvable:$true] %s176_s11 }
  0x65   :  { %s4784_s15 = scalar_lea.hbm %s5365_s3, 16 }
  0x66   :  { %p4785_p2 = scmp.ne.s32.totalorder %s5365_s3, %s4784_s15  ;;  %p4788_p3 = scmp.lt.u32.totalorder %s4784_s15, %s5365_s3 }
  0x68   :  { %p4790_p4 = pnand %p4788_p3, %p4785_p2 }
  0x6a   :  { %4793 = shalt.err (!%p4790_p4)
}
  0x6b   :  { %s4794_s16 = scalar_lea.vmem %s153_s10, 16  ;;  %s4798_s18 = scalar_lea.vmem %s153_s10, 32 }
  0x6c   :  { %p4795_p5 = scmp.ne.s32.totalorder %s153_s10, %s4794_s16  ;;  %p4799_p6 = scmp.lt.s32.totalorder %s153_s10, %s153_s10 }
  0x6d   :  { %p4800_p7 = scmp.lt.s32.totalorder %s4798_s18, %s4794_s16 }
  0x6f   :  { %p4801_p8 = por %p4800_p7, %p4799_p6 }
  0x71   :  { %p4802_p9 = pnand %p4801_p8, %p4795_p5 }
  0x73   :  { %4805 = shalt.err (!%p4802_p9)
}
  0x74   :  { %155 = dma.hbm_to_vmem [thread:$0]  %s5365_s3, 16, %s153_s10, [#allocation11]  }
  0x75   :  { %s4806_s25 = scalar_lea.hbm %s5385_s24, 16 }
  0x76   :  { %p4807_p10 = scmp.ne.s32.totalorder %s5385_s24, %s4806_s25  ;;  %p4810_p11 = scmp.lt.u32.totalorder %s4806_s25, %s5385_s24 }
  0x78   :  { %p4812_p12 = pnand %p4810_p11, %p4807_p10 }
  0x7a   :  { %4815 = shalt.err (!%p4812_p12)
}
  0x7b   :  { %s4816_s0 = scalar_lea.vmem %s177_s11, 16  ;;  %s4820_s22 = scalar_lea.vmem %s177_s11, 32 }
  0x7c   :  { %p4817_p13 = scmp.ne.s32.totalorder %s177_s11, %s4816_s0  ;;  %p4821_p0 = scmp.lt.s32.totalorder %s177_s11, %s177_s11 }
  0x7d   :  { %p4822_p1 = scmp.lt.s32.totalorder %s4820_s22, %s4816_s0 }
  0x7f   :  { %p4823_p2 = por %p4822_p1, %p4821_p0 }
  0x81   :  { %p4824_p3 = pnand %p4823_p2, %p4817_p13 }
  0x83   :  { %4827 = shalt.err (!%p4824_p3)
}
  0x84   :  { %179 = dma.hbm_to_vmem [thread:$0]  %s5385_s24, 16, %s177_s11, [#allocation14]  }
  0x85   :  { %s5288_s23 = smov [#allocation16]   ;;  %s5289_s1 = smov [#allocation19]  }
  0x86   :  { %s196_s3 = sshll.u32 %s5288_s23, 4  ;;  %s217_s2 = sshll.u32 %s5289_s1, 4  ;;  %s197_s3 = int_to_ptr.vmem [resolvable:$true] %s196_s3  ;;  %s5521_s2 = int_to_ptr.vmem [resolvable:$true] %s217_s2 }
  0x87   :  { %s4828_s7 = scalar_lea.hbm %s5395_s6, 16 }
  0x88   :  { %p4829_p4 = scmp.ne.s32.totalorder %s5395_s6, %s4828_s7  ;;  %p4832_p5 = scmp.lt.u32.totalorder %s4828_s7, %s5395_s6 }
  0x8a   :  { %p4834_p6 = pnand %p4832_p5, %p4829_p4 }
  0x8c   :  { %4837 = shalt.err (!%p4834_p6)
}
  0x8d   :  { %s4838_s10 = scalar_lea.vmem %s197_s3, 16  ;;  %s4842_s17 = scalar_lea.vmem %s197_s3, 32 }
  0x8e   :  { %p4839_p7 = scmp.ne.s32.totalorder %s197_s3, %s4838_s10  ;;  %p4843_p8 = scmp.lt.s32.totalorder %s197_s3, %s197_s3 }
  0x8f   :  { %p4844_p9 = scmp.lt.s32.totalorder %s4842_s17, %s4838_s10 }
  0x91   :  { %p4845_p10 = por %p4844_p9, %p4843_p8 }
  0x93   :  { %p4846_p11 = pnand %p4845_p10, %p4839_p7 }
  0x95   :  { %4849 = shalt.err (!%p4846_p11)
}
  0x96   :  { %199 = dma.hbm_to_vmem [thread:$0]  %s5395_s6, 16, %s197_s3, [#allocation17]  }
  0x97   :  { %s4850_s24 = scalar_lea.hbm %s5410_s27, 512 }
  0x98   :  { %p4851_p12 = scmp.ne.s32.totalorder %s5410_s27, %s4850_s24  ;;  %p4854_p13 = scmp.lt.u32.totalorder %s4850_s24, %s5410_s27 }
  0x9a   :  { %p4856_p0 = pnand %p4854_p13, %p4851_p12 }
  0x9c   :  { %4859 = shalt.err (!%p4856_p0)
}
  0x9d   :  { %s4860_s11 = scalar_lea.vmem %s5521_s2, 512  ;;  %p4865_p2 = scmp.lt.s32.totalorder %s5521_s2, %s5521_s2 }
  0x9e   :  { %p4861_p1 = scmp.ne.s32.totalorder %s5521_s2, %s4860_s11  ;;  %p4866_p3 = scmp.lt.s32.totalorder %s4860_s11, %s4860_s11 }
  0xa0   :  { %p4867_p4 = por %p4866_p3, %p4865_p2 }
  0xa2   :  { %p4868_p5 = pnand %p4867_p4, %p4861_p1 }
  0xa4   :  { %4871 = shalt.err (!%p4868_p5)
}
  0xa5   :  { %223 = dma.hbm_to_vmem [thread:$0]  %s5410_s27, 512, %s5521_s2, [#allocation20], %s5284_s26, %s5284_s26, %s5285_s28  }
  0xa6   :  { %s5290_s6 = smov [#allocation22]   ;;  %s5291_s16 = smov [#allocation25]  }
  0xa7   :  { %s240_s15 = sshll.u32 %s5290_s6, 4  ;;  %s264_s18 = sshll.u32 %s5291_s16, 4  ;;  %s241_s15 = int_to_ptr.vmem [resolvable:$true] %s240_s15  ;;  %s265_s18 = int_to_ptr.vmem [resolvable:$true] %s264_s18 }
  0xa8   :  { %s4872_s25 = scalar_lea.hbm %s5420_s12, 16 }
  0xa9   :  { %p4873_p6 = scmp.ne.s32.totalorder %s5420_s12, %s4872_s25  ;;  %p4876_p7 = scmp.lt.u32.totalorder %s4872_s25, %s5420_s12 }
  0xab   :  { %p4878_p8 = pnand %p4876_p7, %p4873_p6 }
  0xad   :  { %4881 = shalt.err (!%p4878_p8)
}
  0xae   :  { %s4882_s0 = scalar_lea.vmem %s241_s15, 16  ;;  %s4886_s22 = scalar_lea.vmem %s241_s15, 32 }
  0xaf   :  { %p4883_p9 = scmp.ne.s32.totalorder %s241_s15, %s4882_s0  ;;  %p4887_p10 = scmp.lt.s32.totalorder %s241_s15, %s241_s15 }
  0xb0   :  { %p4888_p11 = scmp.lt.s32.totalorder %s4886_s22, %s4882_s0 }
  0xb2   :  { %p4889_p12 = por %p4888_p11, %p4887_p10 }
  0xb4   :  { %p4890_p13 = pnand %p4889_p12, %p4883_p9 }
  0xb6   :  { %4893 = shalt.err (!%p4890_p13)
}
  0xb7   :  { %243 = dma.hbm_to_vmem [thread:$0]  %s5420_s12, 16, %s241_s15, [#allocation23]  }
  0xb8   :  { %s4894_s27 = scalar_lea.hbm %s5435_s8, 32 }
  0xb9   :  { %p4895_p0 = scmp.ne.s32.totalorder %s5435_s8, %s4894_s27  ;;  %p4898_p1 = scmp.lt.u32.totalorder %s4894_s27, %s5435_s8 }
  0xbb   :  { %p4900_p2 = pnand %p4898_p1, %p4895_p0 }
  0xbd   :  { %4903 = shalt.err (!%p4900_p2)
}
  0xbe   :  { %s4904_s23 = scalar_lea.vmem %s265_s18, 32  ;;  %p4909_p4 = scmp.lt.s32.totalorder %s265_s18, %s265_s18 }
  0xbf   :  { %p4905_p3 = scmp.ne.s32.totalorder %s265_s18, %s4904_s23  ;;  %p4910_p5 = scmp.lt.s32.totalorder %s4904_s23, %s4904_s23 }
  0xc1   :  { %p4911_p6 = por %p4910_p5, %p4909_p4 }
  0xc3   :  { %p4912_p7 = pnand %p4911_p6, %p4905_p3 }
  0xc5   :  { %4915 = shalt.err (!%p4912_p7)
}
  0xc6   :  { %267 = dma.hbm_to_vmem [thread:$0]  %s5435_s8, 32, %s265_s18, [#allocation26]  }
  0xc7   :  { %s5292_s3 = smov [#allocation28]   ;;  %s5293_s12 = smov [#allocation31]  }
  0xc8   :  { %s286_s1 = sshll.u32 %s5292_s3, 4  ;;  %s306_s2 = sshll.u32 %s5293_s12, 4  ;;  %s287_s1 = int_to_ptr.vmem [resolvable:$true] %s286_s1  ;;  %s307_s2 = int_to_ptr.vmem [resolvable:$true] %s306_s2 }
  0xc9   :  { %s4916_s7 = scalar_lea.hbm %s5445_s19, 16 }
  0xca   :  { %p4917_p8 = scmp.ne.s32.totalorder %s5445_s19, %s4916_s7  ;;  %p4920_p9 = scmp.lt.u32.totalorder %s4916_s7, %s5445_s19 }
  0xcc   :  { %p4922_p10 = pnand %p4920_p9, %p4917_p8 }
  0xce   :  { %4925 = shalt.err (!%p4922_p10)
}
  0xcf   :  { %s4926_s10 = scalar_lea.vmem %s287_s1, 16  ;;  %s4930_s17 = scalar_lea.vmem %s287_s1, 32 }
  0xd0   :  { %p4927_p11 = scmp.ne.s32.totalorder %s287_s1, %s4926_s10  ;;  %p4931_p12 = scmp.lt.s32.totalorder %s287_s1, %s287_s1 }
  0xd1   :  { %p4932_p13 = scmp.lt.s32.totalorder %s4930_s17, %s4926_s10 }
  0xd3   :  { %p4933_p0 = por %p4932_p13, %p4931_p12 }
  0xd5   :  { %p4934_p1 = pnand %p4933_p0, %p4927_p11 }
  0xd7   :  { %4937 = shalt.err (!%p4934_p1)
}
  0xd8   :  { %289 = dma.hbm_to_vmem [thread:$0]  %s5445_s19, 16, %s287_s1, [#allocation29]  }
  0xd9   :  { %s4938_s8 = scalar_lea.hbm %s5455_s4, 16 }
  0xda   :  { %p4939_p2 = scmp.ne.s32.totalorder %s5455_s4, %s4938_s8  ;;  %p4942_p3 = scmp.lt.u32.totalorder %s4938_s8, %s5455_s4 }
  0xdc   :  { %p4944_p4 = pnand %p4942_p3, %p4939_p2 }
  0xde   :  { %4947 = shalt.err (!%p4944_p4)
}
  0xdf   :  { %s4948_s24 = scalar_lea.vmem %s307_s2, 16  ;;  %s4952_s11 = scalar_lea.vmem %s307_s2, 32 }
  0xe0   :  { %p4949_p5 = scmp.ne.s32.totalorder %s307_s2, %s4948_s24  ;;  %p4953_p6 = scmp.lt.s32.totalorder %s307_s2, %s307_s2 }
  0xe1   :  { %p4954_p7 = scmp.lt.s32.totalorder %s4952_s11, %s4948_s24 }
  0xe3   :  { %p4955_p8 = por %p4954_p7, %p4953_p6 }
  0xe5   :  { %p4956_p9 = pnand %p4955_p8, %p4949_p5 }
  0xe7   :  { %4959 = shalt.err (!%p4956_p9)
}
  0xe8   :  { %309 = dma.hbm_to_vmem [thread:$0]  %s5455_s4, 16, %s307_s2, [#allocation32]  }
  0xe9   :  { %s5294_s6 = smov [#allocation2]   ;;  %s5295_s15 = smov [#allocation6]  }
  0xea   :  { %s91_s19 = sshll.u32 %s5294_s6, 4  ;;  %s120_s16 = sshll.u32 %s5295_s15, 4  ;;  %s92_s19 = int_to_ptr.vmem [resolvable:$true] %s91_s19  ;;  %s121_s16 = int_to_ptr.vmem [resolvable:$true] %s120_s16 }
  0xeb   :  { %s4960_s18 = scalar_lea.hbm %s5330_s5, 256 }
  0xec   :  { %p4961_p10 = scmp.ne.s32.totalorder %s5330_s5, %s4960_s18  ;;  %p4964_p11 = scmp.lt.u32.totalorder %s4960_s18, %s5330_s5 }
  0xee   :  { %p4966_p12 = pnand %p4964_p11, %p4961_p10 }
  0xf0   :  { %4969 = shalt.err (!%p4966_p12)
}
  0xf1   :  { %s4970_s25 = scalar_lea.vmem %s92_s19, 256  ;;  %p4975_p0 = scmp.lt.s32.totalorder %s92_s19, %s92_s19 }
  0xf2   :  { %p4971_p13 = scmp.ne.s32.totalorder %s92_s19, %s4970_s25  ;;  %p4976_p1 = scmp.lt.s32.totalorder %s4970_s25, %s4970_s25 }
  0xf4   :  { %p4977_p2 = por %p4976_p1, %p4975_p0 }
  0xf6   :  { %p4978_p3 = pnand %p4977_p2, %p4971_p13 }
  0xf8   :  { %4981 = shalt.err (!%p4978_p3)
}
  0xf9   :  { %97 = dma.hbm_to_vmem [thread:$0]  %s5330_s5, 256, %s92_s19, [#allocation3], %s5284_s26, %s5284_s26, %s5285_s28  }
  0xfa   :  { %s4982_s4 = scalar_lea.hbm %s5350_s21, 16 }
  0xfb   :  { %p4983_p4 = scmp.ne.s32.totalorder %s5350_s21, %s4982_s4  ;;  %p4986_p5 = scmp.lt.u32.totalorder %s4982_s4, %s5350_s21 }
  0xfd   :  { %p4988_p6 = pnand %p4986_p5, %p4983_p4 }
  0xff   :  { %4991 = shalt.err (!%p4988_p6)
}
 0x100   :  { %s4992_s0 = scalar_lea.vmem %s121_s16, 16  ;;  %s4996_s22 = scalar_lea.vmem %s121_s16, 32 }
 0x101   :  { %p4993_p7 = scmp.ne.s32.totalorder %s121_s16, %s4992_s0  ;;  %p4997_p8 = scmp.lt.s32.totalorder %s121_s16, %s121_s16 }
 0x102   :  { %p4998_p9 = scmp.lt.s32.totalorder %s4996_s22, %s4992_s0 }
 0x104   :  { %p4999_p10 = por %p4998_p9, %p4997_p8 }
 0x106   :  { %p5000_p11 = pnand %p4999_p10, %p4993_p7 }
 0x108   :  { %5003 = shalt.err (!%p5000_p11)
}
 0x109   :  { %123 = dma.hbm_to_vmem [thread:$0]  %s5350_s21, 16, %s121_s16, [#allocation5]  }
 0x10a   :  { %s5296_s27 = smov [#allocation9]   ;;  %s5297_s23 = smov [#allocation12]  }
 0x10b   :  { %s139_s5 = sshll.u32 %s5296_s27, 4  ;;  %s164_s3 = sshll.u32 %s5297_s23, 4  ;;  %s140_s5 = int_to_ptr.vmem [resolvable:$true] %s139_s5  ;;  %s165_s3 = int_to_ptr.vmem [resolvable:$true] %s164_s3 }
 0x10c   :  { %s5004_s1 = scalar_lea.hbm %s5360_s29, 1024 }
 0x10d   :  { %p5005_p12 = scmp.ne.s32.totalorder %s5360_s29, %s5004_s1  ;;  %p5008_p13 = scmp.lt.u32.totalorder %s5004_s1, %s5360_s29 }
 0x10f   :  { %p5010_p0 = pnand %p5008_p13, %p5005_p12 }
 0x111   :  { %5013 = shalt.err (!%p5010_p0)
}
 0x112   :  { %s5014_s12 = scalar_lea.vmem %s140_s5, 1024  ;;  %p5019_p2 = scmp.lt.s32.totalorder %s140_s5, %s140_s5 }
 0x113   :  { %p5015_p1 = scmp.ne.s32.totalorder %s140_s5, %s5014_s12  ;;  %p5020_p3 = scmp.lt.s32.totalorder %s5014_s12, %s5014_s12 }
 0x115   :  { %p5021_p4 = por %p5020_p3, %p5019_p2 }
 0x117   :  { %p5022_p5 = pnand %p5021_p4, %p5015_p1 }
 0x119   :  { %5025 = shalt.err (!%p5022_p5)
}
 0x11a   :  { %145 = dma.hbm_to_vmem [thread:$0]  %s5360_s29, 1024, %s140_s5, [#allocation8], %s5284_s26, %s5284_s26, %s5285_s28  }
 0x11b   :  { %s5026_s21 = scalar_lea.hbm %s5375_s14, 32 }
 0x11c   :  { %p5027_p6 = scmp.ne.s32.totalorder %s5375_s14, %s5026_s21  ;;  %p5030_p7 = scmp.lt.u32.totalorder %s5026_s21, %s5375_s14 }
 0x11e   :  { %p5032_p8 = pnand %p5030_p7, %p5027_p6 }
 0x120   :  { %5035 = shalt.err (!%p5032_p8)
}
 0x121   :  { %s5036_s2 = scalar_lea.vmem %s165_s3, 32  ;;  %p5041_p10 = scmp.lt.s32.totalorder %s165_s3, %s165_s3 }
 0x122   :  { %p5037_p9 = scmp.ne.s32.totalorder %s165_s3, %s5036_s2  ;;  %p5042_p11 = scmp.lt.s32.totalorder %s5036_s2, %s5036_s2 }
 0x124   :  { %p5043_p12 = por %p5042_p11, %p5041_p10 }
 0x126   :  { %p5044_p13 = pnand %p5043_p12, %p5037_p9 }
 0x128   :  { %5047 = shalt.err (!%p5044_p13)
}
 0x129   :  { %s6449_s7 = sld [smem:[#allocation52_spill]]  ;;  %s5298_s10 = smov [#allocation15]  }
 0x12a   :  { %167 = dma.hbm_to_vmem [thread:$0]  %s5375_s14, 32, %s165_s3, [#allocation11]  }
 0x12b   :  { %s186_s17 = sshll.u32 %s5298_s10, 4  ;;  %s5299_s29 = smov [#allocation18]   ;;  %s187_s17 = int_to_ptr.vmem [resolvable:$true] %s186_s17 }
 0x12c   :  { %s208_s8 = sshll.u32 %s5299_s29, 4  ;;  %s209_s8 = int_to_ptr.vmem [resolvable:$true] %s208_s8 }
 0x12f   :  { %s5048_s24 = scalar_lea.hbm %s6449_s7, 16 }
 0x130   :  { %p5049_p0 = scmp.ne.s32.totalorder %s6449_s7, %s5048_s24  ;;  %p5052_p1 = scmp.lt.u32.totalorder %s5048_s24, %s6449_s7 }
 0x132   :  { %p5054_p2 = pnand %p5052_p1, %p5049_p0 }
 0x134   :  { %5057 = shalt.err (!%p5054_p2)
}
 0x135   :  { %s5058_s11 = scalar_lea.vmem %s187_s17, 16  ;;  %s5062_s6 = scalar_lea.vmem %s187_s17, 32 }
 0x136   :  { %p5059_p3 = scmp.ne.s32.totalorder %s187_s17, %s5058_s11  ;;  %p5063_p4 = scmp.lt.s32.totalorder %s187_s17, %s187_s17 }
 0x137   :  { %p5064_p5 = scmp.lt.s32.totalorder %s5062_s6, %s5058_s11 }
 0x139   :  { %p5065_p6 = por %p5064_p5, %p5063_p4 }
 0x13b   :  { %p5066_p7 = pnand %p5065_p6, %p5059_p3 }
 0x13d   :  { %5069 = shalt.err (!%p5066_p7)
}
 0x13e   :  { %s6450_s14 = sld [smem:[#allocation54_spill]] }
 0x13f   :  { %189 = dma.hbm_to_vmem [thread:$0]  %s6449_s7, 16, %s187_s17, [#allocation14]  }
 0x144   :  { %s5070_s19 = scalar_lea.hbm %s6450_s14, 16 }
 0x145   :  { %p5071_p8 = scmp.ne.s32.totalorder %s6450_s14, %s5070_s19  ;;  %p5074_p9 = scmp.lt.u32.totalorder %s5070_s19, %s6450_s14 }
 0x147   :  { %p5076_p10 = pnand %p5074_p9, %p5071_p8 }
 0x149   :  { %5079 = shalt.err (!%p5076_p10)
}
 0x14a   :  { %s5080_s15 = scalar_lea.vmem %s209_s8, 16  ;;  %s5084_s16 = scalar_lea.vmem %s209_s8, 32 }
 0x14b   :  { %p5081_p11 = scmp.ne.s32.totalorder %s209_s8, %s5080_s15  ;;  %p5085_p12 = scmp.lt.s32.totalorder %s209_s8, %s209_s8 }
 0x14c   :  { %p5086_p13 = scmp.lt.s32.totalorder %s5084_s16, %s5080_s15 }
 0x14e   :  { %p5087_p0 = por %p5086_p13, %p5085_p12 }
 0x150   :  { %p5088_p1 = pnand %p5087_p0, %p5081_p11 }
 0x152   :  { %5091 = shalt.err (!%p5088_p1)
}
 0x153   :  { %s6451_s18 = sld [smem:[#allocation55_spill]]  ;;  %s5300_s25 = smov [#allocation21]  }
 0x154   :  { %211 = dma.hbm_to_vmem [thread:$0]  %s6450_s14, 16, %s209_s8, [#allocation17]  }
 0x155   :  { %s230_s4 = sshll.u32 %s5300_s25, 4  ;;  %s5301_s0 = smov [#allocation24]   ;;  %s231_s4 = int_to_ptr.vmem [resolvable:$true] %s230_s4 }
 0x156   :  { %s251_s22 = sshll.u32 %s5301_s0, 4  ;;  %s5585_s22 = int_to_ptr.vmem [resolvable:$true] %s251_s22 }
 0x159   :  { %s5092_s27 = scalar_lea.hbm %s6451_s18, 16 }
 0x15a   :  { %p5093_p2 = scmp.ne.s32.totalorder %s6451_s18, %s5092_s27  ;;  %p5096_p3 = scmp.lt.u32.totalorder %s5092_s27, %s6451_s18 }
 0x15c   :  { %p5098_p4 = pnand %p5096_p3, %p5093_p2 }
 0x15e   :  { %5101 = shalt.err (!%p5098_p4)
}
 0x15f   :  { %s5102_s5 = scalar_lea.vmem %s231_s4, 16  ;;  %s5106_s23 = scalar_lea.vmem %s231_s4, 32 }
 0x160   :  { %p5103_p5 = scmp.ne.s32.totalorder %s231_s4, %s5102_s5  ;;  %p5107_p6 = scmp.lt.s32.totalorder %s231_s4, %s231_s4 }
 0x161   :  { %p5108_p7 = scmp.lt.s32.totalorder %s5106_s23, %s5102_s5 }
 0x163   :  { %p5109_p8 = por %p5108_p7, %p5107_p6 }
 0x165   :  { %p5110_p9 = pnand %p5109_p8, %p5103_p5 }
 0x167   :  { %5113 = shalt.err (!%p5110_p9)
}
 0x168   :  { %s6452_s3 = sld [smem:[#allocation57_spill]] }
 0x169   :  { %233 = dma.hbm_to_vmem [thread:$0]  %s6451_s18, 16, %s231_s4, [#allocation20]  }
 0x16e   :  { %s5114_s1 = scalar_lea.hbm %s6452_s3, 2048 }
 0x16f   :  { %p5115_p10 = scmp.ne.s32.totalorder %s6452_s3, %s5114_s1  ;;  %p5118_p11 = scmp.lt.u32.totalorder %s5114_s1, %s6452_s3 }
 0x171   :  { %p5120_p12 = pnand %p5118_p11, %p5115_p10 }
 0x173   :  { %5123 = shalt.err (!%p5120_p12)
}
 0x174   :  { %s5124_s12 = scalar_lea.vmem %s5585_s22, 2048  ;;  %p5129_p0 = scmp.lt.s32.totalorder %s5585_s22, %s5585_s22 }
 0x175   :  { %p5125_p13 = scmp.ne.s32.totalorder %s5585_s22, %s5124_s12  ;;  %p5130_p1 = scmp.lt.s32.totalorder %s5124_s12, %s5124_s12 }
 0x177   :  { %p5131_p2 = por %p5130_p1, %p5129_p0 }
 0x179   :  { %p5132_p3 = pnand %p5131_p2, %p5125_p13 }
 0x17b   :  { %5135 = shalt.err (!%p5132_p3)
}
 0x17c   :  { %s5302_s21 = smov 256   ;;  %s6453_s2 = sld [smem:[#allocation58_spill]] }
 0x17d   :  { %s5303_s7 = smov 16   ;;  %s5304_s10 = smov [#allocation27]  }
 0x17e   :  { %257 = dma.hbm_to_vmem [thread:$0]  %s6452_s3, 2048, %s5585_s22, [#allocation23], %s5302_s21, %s5302_s21, %s5303_s7  }
 0x17f   :  { %s273_s17 = sshll.u32 %s5304_s10, 4  ;;  %s5305_s29 = smov [#allocation30]   ;;  %s274_s17 = int_to_ptr.vmem [resolvable:$true] %s273_s17 }
 0x180   :  { %s296_s8 = sshll.u32 %s5305_s29, 4  ;;  %s297_s8 = int_to_ptr.vmem [resolvable:$true] %s296_s8 }
 0x182   :  { %s5136_s24 = scalar_lea.hbm %s6453_s2, 1024 }
 0x183   :  { %p5137_p4 = scmp.ne.s32.totalorder %s6453_s2, %s5136_s24  ;;  %p5140_p5 = scmp.lt.u32.totalorder %s5136_s24, %s6453_s2 }
 0x185   :  { %p5142_p6 = pnand %p5140_p5, %p5137_p4 }
 0x187   :  { %5145 = shalt.err (!%p5142_p6)
}
 0x188   :  { %s5146_s11 = scalar_lea.vmem %s274_s17, 1024  ;;  %p5151_p8 = scmp.lt.s32.totalorder %s274_s17, %s274_s17 }
 0x189   :  { %p5147_p7 = scmp.ne.s32.totalorder %s274_s17, %s5146_s11  ;;  %p5152_p9 = scmp.lt.s32.totalorder %s5146_s11, %s5146_s11 }
 0x18b   :  { %p5153_p10 = por %p5152_p9, %p5151_p8 }
 0x18d   :  { %p5154_p11 = pnand %p5153_p10, %p5147_p7 }
 0x18f   :  { %5157 = shalt.err (!%p5154_p11)
}
 0x190   :  { %s6454_s6 = sld [smem:[#allocation59_spill]] }
 0x191   :  { %279 = dma.hbm_to_vmem [thread:$0]  %s6453_s2, 1024, %s274_s17, [#allocation26], %s5284_s26, %s5284_s26, %s5285_s28  }
 0x196   :  { %s5158_s14 = scalar_lea.hbm %s6454_s6, 16 }
 0x197   :  { %p5159_p12 = scmp.ne.s32.totalorder %s6454_s6, %s5158_s14  ;;  %p5162_p13 = scmp.lt.u32.totalorder %s5158_s14, %s6454_s6 }
 0x199   :  { %p5164_p0 = pnand %p5162_p13, %p5159_p12 }
 0x19b   :  { %5167 = shalt.err (!%p5164_p0)
}
 0x19c   :  { %s5168_s19 = scalar_lea.vmem %s297_s8, 16  ;;  %s5172_s15 = scalar_lea.vmem %s297_s8, 32 }
 0x19d   :  { %p5169_p1 = scmp.ne.s32.totalorder %s297_s8, %s5168_s19  ;;  %p5173_p2 = scmp.lt.s32.totalorder %s297_s8, %s297_s8 }
 0x19e   :  { %p5174_p3 = scmp.lt.s32.totalorder %s5172_s15, %s5168_s19 }
 0x1a0   :  { %p5175_p4 = por %p5174_p3, %p5173_p2 }
 0x1a2   :  { %p5176_p5 = pnand %p5175_p4, %p5169_p1 }
 0x1a4   :  { %5179 = shalt.err (!%p5176_p5)
}
 0x1a5   :  { %s6455_s16 = sld [smem:[#allocation61_spill]]  ;;  %s5306_s18 = smov [#allocation33]  }
 0x1a6   :  { %299 = dma.hbm_to_vmem [thread:$0]  %s6454_s6, 16, %s297_s8, [#allocation29]  }
 0x1a7   :  { %s318_s26 = sshll.u32 %s5306_s18, 4  ;;  %s5307_s25 = smov [#allocation34]   ;;  %s319_s26 = int_to_ptr.vmem [resolvable:$true] %s318_s26 }
 0x1a8   :  { %s330_s4 = sshll.u32 %s5307_s25, 4  ;;  %s331_s4 = int_to_ptr.vmem [resolvable:$true] %s330_s4 }
 0x1ab   :  { %s5180_s0 = scalar_lea.hbm %s6455_s16, 16 }
 0x1ac   :  { %p5181_p6 = scmp.ne.s32.totalorder %s6455_s16, %s5180_s0  ;;  %p5184_p7 = scmp.lt.u32.totalorder %s5180_s0, %s6455_s16 }
 0x1ae   :  { %p5186_p8 = pnand %p5184_p7, %p5181_p6 }
 0x1b0   :  { %5189 = shalt.err (!%p5186_p8)
}
 0x1b1   :  { %s5190_s22 = scalar_lea.vmem %s319_s26, 16  ;;  %s5194_s27 = scalar_lea.vmem %s319_s26, 32 }
 0x1b2   :  { %p5191_p9 = scmp.ne.s32.totalorder %s319_s26, %s5190_s22  ;;  %p5195_p10 = scmp.lt.s32.totalorder %s319_s26, %s319_s26 }
 0x1b3   :  { %p5196_p11 = scmp.lt.s32.totalorder %s5194_s27, %s5190_s22 }
 0x1b5   :  { %p5197_p12 = por %p5196_p11, %p5195_p10 }
 0x1b7   :  { %p5198_p13 = pnand %p5197_p12, %p5191_p9 }
 0x1b9   :  { %5201 = shalt.err (!%p5198_p13)
}
 0x1ba   :  { %s6456_s5 = sld [smem:[#allocation63_spill]] }
 0x1bb   :  { %321 = dma.hbm_to_vmem [thread:$0]  %s6455_s16, 16, %s319_s26, [#allocation32]  }
 0x1c0   :  { %s5202_s23 = scalar_lea.hbm %s6456_s5, 16 }
 0x1c1   :  { %p5203_p0 = scmp.ne.s32.totalorder %s6456_s5, %s5202_s23  ;;  %p5206_p1 = scmp.lt.u32.totalorder %s5202_s23, %s6456_s5 }
 0x1c3   :  { %p5208_p2 = pnand %p5206_p1, %p5203_p0 }
 0x1c5   :  { %5211 = shalt.err (!%p5208_p2)
}
 0x1c6   :  { %s5212_s3 = scalar_lea.vmem %s331_s4, 16  ;;  %s5216_s1 = scalar_lea.vmem %s331_s4, 32 }
 0x1c7   :  { %p5213_p3 = scmp.ne.s32.totalorder %s331_s4, %s5212_s3  ;;  %p5217_p4 = scmp.lt.s32.totalorder %s331_s4, %s331_s4 }
 0x1c8   :  { %p5218_p5 = scmp.lt.s32.totalorder %s5216_s1, %s5212_s3 }
 0x1ca   :  { %p5219_p6 = por %p5218_p5, %p5217_p4 }
 0x1cc   :  { %p5220_p7 = pnand %p5219_p6, %p5213_p3 }
 0x1ce   :  { %5223 = shalt.err (!%p5220_p7)
}
 0x1cf   :  { %333 = dma.hbm_to_vmem [thread:$0]  %s6456_s5, 16, %s331_s4, [#allocation35]  }
 0x1d0   :  { %5224 = dma.done.wait [#allocation3], 256  }
 0x1d1   :  { %5225 = vsyncadd [#allocation3], 4294967040 }
 0x1d2   :  { %5226 = dma.done.wait [#allocation5], 272  }
 0x1d3   :  { %5227 = vsyncadd [#allocation5], 4294967024 }
 0x1d4   :  { %5228 = dma.done.wait [#allocation8], 1152  }
 0x1d5   :  { %5229 = vsyncadd [#allocation8], 4294966144 }
 0x1d6   :  { %5230 = dma.done.wait [#allocation11], 48  }
 0x1d7   :  { %5231 = vsyncadd [#allocation11], 4294967248 }
 0x1d8   :  { %5232 = dma.done.wait [#allocation14], 32  }
 0x1d9   :  { %5233 = vsyncadd [#allocation14], 4294967264 }
 0x1da   :  { %5234 = dma.done.wait [#allocation17], 32  }
 0x1db   :  { %5235 = vsyncadd [#allocation17], 4294967264 }
 0x1dc   :  { %5236 = dma.done.wait [#allocation20], 528  }
 0x1dd   :  { %5237 = vsyncadd [#allocation20], 4294966768 }
 0x1de   :  { %5238 = dma.done.wait [#allocation23], 2064  }
 0x1df   :  { %5239 = vsyncadd [#allocation23], 4294965232 }
 0x1e0   :  { %5240 = dma.done.wait [#allocation26], 1056  }
 0x1e1   :  { %5241 = vsyncadd [#allocation26], 4294966240 }
 0x1e2   :  { %5242 = dma.done.wait [#allocation29], 32  }
 0x1e3   :  { %5243 = vsyncadd [#allocation29], 4294967264 }
 0x1e4   :  { %5244 = dma.done.wait [#allocation32], 32  }
 0x1e5   :  { %5245 = vsyncadd [#allocation32], 4294967264 }
 0x1e6   :  { %5246 = dma.done.wait [#allocation35], 16  }
 0x1e7   :  { %5247 = vsyncadd [#allocation35], 4294967280  ;;  %s6457_s12 = sld [smem:[#allocation48_spill]]  ;;  %vm504_vm0 = vcmask 64512   ;;  %vm419_vm1 = vcmask 130048   ;;  %v503_v0 = vld [vmem:[#allocation7] sm:$0xff]  ;;  %v806_v61 = vlaneseq }
 0x1e8   :  { %3670 = vmatprep.subr.mxu1 %v503_v0  ;;  %v410_v3 = vld [vmem:[#allocation4] sm:$0xff]  ;;  %v411_v4 = vld [vmem:[#allocation4 + $0x8] sm:$0xff]  ;;  %v408_v5 = vld [vmem:[#allocation2] sm:$0xff]  ;;  %s6458_s21 = sld [smem:[#allocation50_spill]]  ;;  %vm594_vm2 = vcmask 261120   ;;  %v5308_v51 = vmov 0.0  }
 0x1e9   :  { %3671 = vmatpush3.msra.mxu1 %v503_v0  ;;  %v4038_v6 = vpack.c.bf16 %v411_v4, %v410_v3  ;;  %3667 = vmatprep.mubr.msk.f32.mxu0 %vm419_vm1, %v408_v5  ;;  %v590_v7 = vld [vmem:[#allocation9 + $0x20] sm:$0xff]  ;;  %v591_v8 = vld [vmem:[#allocation9 + $0x28] sm:$0xff]  ;;  %v592_v10 = vld [vmem:[#allocation9 + $0x30] sm:$0xff]  ;;  %vm816_vm4 = vcmask 523264   ;;  %v5656_v62 = vshrl.u32 %v806_v61, 7  ;;  %s5309_s2 = smov 112  }
 0x1ea   :  { %v4042_v9 = vpack.c.bf16 %v591_v8, %v590_v7  ;;  %v593_v11 = vld [vmem:[#allocation9 + $0x38] sm:$0xff]  ;;  %v586_v14 = vld [vmem:[#allocation9] sm:$0xff]  ;;  %v587_v15 = vld [vmem:[#allocation9 + $0x8] sm:$0xff]  ;;  %s5310_s10 = smov 120   ;;  %s5311_s17 = smov 104   ;;  %vm1596_vm7 = vcmask 195584  }
 0x1eb   :  { %4039 = vmatprep.subr.bf16.mxu0 %v4038_v6  ;;  %v4046_v12 = vpack.c.bf16 %v593_v11, %v592_v10  ;;  %v409_v13 = vld [vmem:[#allocation2 + $0x8] sm:$0xff]  ;;  %v4050_v16 = vpack.c.bf16 %v587_v15, %v586_v14  ;;  %v588_v32 = vld [vmem:[#allocation9 + $0x10] sm:$0xff]  ;;  %v808_v63 = vsub.s32 0, %v5656_v62  ;;  %s5312_s29 = smov 96   ;;  %s5313_s8 = smov 88   ;;  %vm5745_vm6 = vmpackc.low %vm504_vm0, %vm504_vm0  ;;  %vm1601_vm8 = vcmask 326656  }
 0x1ec   :  { %4041 = vmatpush3.bf16.msra.mxu0 %v4038_v6  ;;  %4043 = vmatprep.subr.bf16.mxu1 %v4042_v9  ;;  %v589_v33 = vld [vmem:[#allocation9 + $0x18] sm:$0xff]  ;;  %v3345_v37 = vld [vmem:[#allocation6] ss:$0 sm:$0xff]  ;;  %v3354_v52 = vld [vmem:[#allocation10] ss:$0 sm:$0xff]  ;;  %s5314_s24 = smov 80  }
 0x1ed   :  { %v501_v1 = vld [vmem:[%s6457_s12] sm:$0xff]  ;;  %v502_v2 = vld [vmem:[%s6457_s12 + $0x8] sm:$0xff]  ;;  %v4054_v36 = vpack.c.bf16 %v589_v33, %v588_v32  ;;  %s5315_s11 = smov 72   ;;  %s5316_s6 = smov 64   ;;  %vm1604_vm9 = vcmask 392192   ;;  %vm1607_vm10 = vcmask 457728  }
 0x1ee   :  { %3672 = vmatprep.mubr.msk.f32.mxu1 %vm504_vm0, %v501_v1  ;;  %v789_v17 = vld [vmem:[%s6458_s21 + $0x8] sm:$0xff]  ;;  %v791_v18 = vld [vmem:[%s6458_s21 + $0x18] sm:$0xff]  ;;  %v788_v19 = vld [vmem:[%s6458_s21] sm:$0xff]  ;;  %s6461_s14 = sld [smem:[#allocation49_spill]]  ;;  %s6462_s19 = sld [smem:[#allocation51_spill]]  ;;  %vm3292_vm11 = vcmask 31744  }
 0x1ef   :  { %3673 = vmatmul.mubr.msk.f32.vlgmr.msra.gmra.mrb[0].mxu1 %vm504_vm0, %v502_v2  ;;  %3668 = vmatmul.mubr.msk.f32.vlgmr.msra.gmra.mrb[0].mxu0 %vm419_vm1, %v409_v13  ;;  %v4058_v20 = vpack.c.bf16 %v791_v18, %v789_v17  ;;  %v790_v21 = vld [vmem:[%s6458_s21 + $0x10] sm:$0xff]  ;;  %v793_v22 = vld [vmem:[%s6458_s21 + $0x28] sm:$0xff]  ;;  %v795_v23 = vld [vmem:[%s6458_s21 + $0x38] sm:$0xff]  ;;  %v812_v2 = vsub.s32 1, %v5656_v62  ;;  %s5317_s15 = smov 24   ;;  %s5318_s16 = smov 32  }
 0x1f0   :  { %4045 = vmatpush3.bf16.msra.mxu1 %v4042_v9  ;;  %v4060_v24 = vpack.c.bf16 %v790_v21, %v788_v19  ;;  %v4062_v25 = vpack.c.bf16 %v795_v23, %v793_v22  ;;  %v792_v26 = vld [vmem:[%s6458_s21 + $0x20] sm:$0xff]  ;;  %v794_v27 = vld [vmem:[%s6458_s21 + $0x30] sm:$0xff]  ;;  %v797_v28 = vld [vmem:[%s6458_s21 + $0x48] sm:$0xff]  ;;  %887 = vmatprep.mubr.f32.mxu0 %v5308_v51  ;;  %s5319_s18 = smov 40   ;;  %s5320_s26 = smov 48  }
 0x1f1   :  { %4047 = vmatprep.subr.bf16.mxu1 %v4046_v12  ;;  %4059 = vmatprep.subr.bf16.mxu0 %v4058_v20  ;;  %v799_v29 = vld [vmem:[%s6458_s21 + $0x58] sm:$0xff]  ;;  %v4064_v30 = vpack.c.bf16 %v794_v27, %v792_v26  ;;  %v796_v42 = vld [vmem:[%s6458_s21 + $0x40] sm:$0xff]  ;;  %v798_v43 = vld [vmem:[%s6458_s21 + $0x50] sm:$0xff]  ;;  %s5321_s25 = smov 56   ;;  %s6463_s4 = sld [smem:[#allocation53_spill]] }
 0x1f2   :  { %4061 = vmatpush1.bf16.msra.mxu0 %v4060_v24  ;;  %v4066_v31 = vpack.c.bf16 %v799_v29, %v797_v28  ;;  %v4068_v44 = vpack.c.bf16 %v798_v43, %v796_v42  ;;  %v801_v45 = vld [vmem:[%s6458_s21 + $0x68] sm:$0xff]  ;;  %v803_v46 = vld [vmem:[%s6458_s21 + $0x78] sm:$0xff]  ;;  %v800_v48 = vld [vmem:[%s6458_s21 + $0x60] sm:$0xff]  ;;  %s6464_s0 = sld [smem:[#allocation56_spill]] }
 0x1f3   :  { %4063 = vmatprep.subr.bf16.mxu0 %v4062_v25  ;;  %v4070_v47 = vpack.c.bf16 %v803_v46, %v801_v45  ;;  %v802_v49 = vld [vmem:[%s6458_s21 + $0x70] sm:$0xff]  ;;  %v804_v0 = vld [vmem:[#allocation12] sm:$0x3]  ;;  %s6467_s22 = sld [smem:[#allocation64_spill]] }
 0x1f4   :  { %4049 = vmatpush3.bf16.msra.mxu1 %v4046_v12  ;;  %v4072_v50 = vpack.c.bf16 %v802_v49, %v800_v48  ;;  %v809_v1 = vrot.slane %v804_v0, %v808_v63  ;;  %v813_v6 = vrot.slane %v804_v0, %v812_v2 }
 0x1f5   :  { %4051 = vmatprep.subr.bf16.mxu1 %v4050_v16 }
 0x1f6   :  { %4065 = vmatpush1.bf16.msra.mxu0 %v4064_v30 }
 0x1f7   :  { %4067 = vmatprep.subr.bf16.mxu0 %v4066_v31 }
 0x1fa   :  { %4069 = vmatpush1.bf16.msra.mxu0 %v4068_v44 }
 0x1fb   :  { %4071 = vmatprep.subr.bf16.mxu0 %v4070_v47 }
 0x1fe   :  { %4073 = vmatpush1.bf16.msra.mxu0 %v4072_v50 }
 0x2c2   :  { %v3674_v34 = vpop.f32.mrb[0].mxu1  ;;  %v3669_v38 = vpop.f32.mrb[0].mxu0 }
 0x2c3   :  { %v577_v35 = vpop.f32.mrb[1].mxu1  ;;  %v492_v39 = vpop.f32.mrb[1].mxu0  ;;  %v498_v41 = vadd.f32 %v3669_v38, %v3345_v37 }
 0x2c4   :  { %3683 = vmatprep.mubr.msk.f32.mxu1 %vm594_vm2, %v577_v35  ;;  %v493_v40 = vadd.f32 %v3345_v37, %v492_v39 }
 0x2c5   :  { %3684 = vmatmul.mubr.msk.f32.vlgmr.msra.gmra.mrb[2].mxu1 %vm594_vm2, %v3674_v34 }
 0x2c6   :  { %4053 = vmatpush3.bf16.msra.mxu1 %v4050_v16  ;;  %3694 = vmatprep.mubr.msk.f32.mxu1 %vm594_vm2, %v493_v40 }
 0x2c7   :  { %4055 = vmatprep.subr.bf16.mxu1 %v4054_v36 }
 0x2ca   :  { %4057 = vmatpush3.bf16.msra.mxu1 %v4054_v36 }
 0x2cd   :  { %3695 = vmatmul.mubr.msk.f32.vlgmr.msra.gmra.mrb[2].mxu1 %vm594_vm2, %v498_v41 }
 0x3a0   :  { %v3696_v53 = vpop.f32.mrb[2].mxu1 }
 0x3a1   :  { %v748_v54 = vpop.f32.mrb[3].mxu1  ;;  %v765_v55 = vadd.f32 %v3696_v53, %v3354_v52 }
 0x3a2   :  { %v764_v56 = vadd.f32 %v3354_v52, %v748_v54 }
 0x3a3   :  { %v769_v58 = vmul.f32 0.01, %v765_v55  ;;  %vm767_vm5 = vcmp.ge.f32.partialorder %v765_v55, 0.0 }
 0x3a4   :  { %vm766_vm3 = vcmp.ge.f32.partialorder %v764_v56, 0.0  ;;  %v768_v57 = vmul.f32 0.01, %v764_v56 }
 0x3a5   :  { %v5652_v60 = vsel %vm767_vm5, %v765_v55, %v769_v58 }
 0x3a6   :  { %v5647_v59 = vsel %vm766_vm3, %v764_v56, %v768_v57 }
 0x3a7   :  { %3355 = vmatmul.mubr.msk.f32.vlgmr.msra.gmra.mrb[2].mxu0 %vm816_vm4, %v5647_v59 }
 0x3a8   :  { %893 = vmatprep.mubr.f32.mxu0 %v5308_v51 }
 0x3ab   :  { %3356 = vmatmul.mubr.msk.f32.gmra.mrb[4].mxu0 %vm816_vm4, %v5652_v60 }
 0x47a   :  { %v889_v3 = vpop.f32.mrb[2].mxu0 }
 0x47b   :  { %v890_v4 = vadd.f32 %v889_v3, %v809_v1  ;;  %v891_v5 = vpop.f32.mrb[3].mxu0 }
 0x47c   :  { %v892_v10 = vadd.f32 %v891_v5, %v813_v6 }
 0x47d   :  { %906 = vrot.lane.b32.xlu1 %v890_v4, %s5309_s2  ;;  %902 = vrot.lane.b32.xlu0 %v890_v4, %s5310_s10 }
 0x47e   :  { %3729 = vmatprep.mubr.msk.f32.mxu1 %vm504_vm0, %v890_v4  ;;  %v895_v7 = vpop.f32.mrb[4].mxu0 }
 0x47f   :  { %v5667_v8 = vadd.f32 %v895_v7, %v809_v1  ;;  %v897_v9 = vpop.f32.mrb[5].mxu0 }
 0x480   :  { %v898_v11 = vadd.f32 %v897_v9, %v813_v6 }
 0x481   :  { %908 = vrot.lane.b32.xlu1 %v5667_v8, %s5309_s2  ;;  %904 = vrot.lane.b32.xlu0 %v5667_v8, %s5310_s10  ;;  %v4422_v14 = vpack.i.bf16 %v5667_v8, %v890_v4 }
 0x482   :  { %v4122_v12 = vpack.c.bf16 %v898_v11, %v892_v10  ;;  %v5673_v13 = vpack.i.bf16 %v898_v11, %v892_v10 }
 0x484   :  { %4123 = vmatprep.subr.bf16.mxu0 %v4122_v12 }
 0x485   :  { %4125 = vmatpush3.bf16.msra.mxu0 %v4122_v12  ;;  %912 = vrot.lane.b32.xlu1 %v5667_v8, %s5311_s17 }
 0x486   :  { %910 = vrot.lane.b32.xlu0 %v890_v4, %s5311_s17 }
 0x489   :  { %916 = vrot.lane.b32.xlu1 %v5667_v8, %s5312_s29 }
 0x48a   :  { %914 = vrot.lane.b32.xlu0 %v890_v4, %s5312_s29 }
 0x48d   :  { %920 = vrot.lane.b32.xlu1 %v5667_v8, %s5313_s8 }
 0x48e   :  { %918 = vrot.lane.b32.xlu0 %v890_v4, %s5313_s8 }
 0x491   :  { %924 = vrot.lane.b32.xlu1 %v5667_v8, %s5314_s24 }
 0x492   :  { %922 = vrot.lane.b32.xlu0 %v890_v4, %s5314_s24 }
 0x495   :  { %928 = vrot.lane.b32.xlu1 %v5667_v8, %s5315_s11 }
 0x496   :  { %926 = vrot.lane.b32.xlu0 %v890_v4, %s5315_s11 }
 0x49a   :  { %4423 = vrot.lane.b32.xlu0 %v4422_v14, %s5316_s6 }
 0x4ef   :  { %v5692_v15 = vpop.permute.xlu1 %906  ;;  %v5694_v16 = vpop.permute.xlu0 %902 }
 0x4f3   :  { %v5696_v17 = vpop.permute.xlu1 %908  ;;  %v5698_v18 = vpop.permute.xlu0 %904 }
 0x4f4   :  { %v4432_v19 = vpack.i.bf16 %v5696_v17, %v5692_v15  ;;  %v4427_v20 = vpack.i.bf16 %v5698_v18, %v5694_v16 }
 0x4f6   :  { %4433 = vrot.lane.b32.xlu0 %v4432_v19, %s5316_s6  ;;  %4428 = vrot.lane.b32.xlu1 %v4427_v20, %s5316_s6 }
 0x4f7   :  { %v5706_v21 = vpop.permute.xlu1 %912 }
 0x4f8   :  { %v5708_v22 = vpop.permute.xlu0 %910 }
 0x4f9   :  { %v4437_v23 = vpack.i.bf16 %v5706_v21, %v5708_v22 }
 0x4fb   :  { %4438 = vrot.lane.b32.xlu1 %v4437_v23, %s5316_s6  ;;  %v5713_v24 = vpop.permute.xlu1 %916 }
 0x4fc   :  { %v5715_v25 = vpop.permute.xlu0 %914 }
 0x4fd   :  { %v4442_v26 = vpack.i.bf16 %v5713_v24, %v5715_v25 }
 0x4ff   :  { %4443 = vrot.lane.b32.xlu0 %v4442_v26, %s5316_s6  ;;  %v5720_v27 = vpop.permute.xlu1 %920 }
 0x500   :  { %v5722_v28 = vpop.permute.xlu0 %918 }
 0x501   :  { %v4447_v29 = vpack.i.bf16 %v5720_v27, %v5722_v28 }
 0x503   :  { %4448 = vrot.lane.b32.xlu1 %v4447_v29, %s5316_s6  ;;  %v5727_v30 = vpop.permute.xlu1 %924 }
 0x504   :  { %v5729_v31 = vpop.permute.xlu0 %922 }
 0x505   :  { %v4452_v32 = vpack.i.bf16 %v5727_v30, %v5729_v31 }
 0x507   :  { %4453 = vrot.lane.b32.xlu0 %v4452_v32, %s5316_s6  ;;  %v5734_v33 = vpop.permute.xlu1 %928 }
 0x508   :  { %v5736_v34 = vpop.permute.xlu0 %926 }
 0x509   :  { %v4457_v35 = vpack.i.bf16 %v5734_v33, %v5736_v34 }
 0x50b   :  { %4468 = vrot.lane.b32.xlu0 %v5673_v13, %s5309_s2  ;;  %4458 = vrot.lane.b32.xlu1 %v4457_v35, %s5316_s6 }
 0x50c   :  { %v4424_v36 = vpop.permute.xlu0 %4423 }
 0x50d   :  { %v4426_v37 = vunpack.i.h.bf16 %v4424_v36  ;;  %v4425_v38 = vunpack.i.l.bf16 %v4424_v36 }
 0x50f   :  { %v4074_v40 = vpack.c.bf16 %v4426_v37, %v4425_v38  ;;  %4463 = vrot.lane.b32.xlu1 %v5673_v13, %s5310_s10 }
 0x511   :  { %4076 = vmatprep.subr.msk.bf16.mxu1 %vm5745_vm6, %v4074_v40 }
 0x512   :  { %4079 = vmatpush3.bf16.xpose.msk.msra.mxu1 %vm5745_vm6, %v4074_v40 }
 0x513   :  { %4473 = vrot.lane.b32.xlu1 %v5673_v13, %s5311_s17 }
 0x568   :  { %v4429_v41 = vpop.permute.xlu1 %4428  ;;  %v4434_v42 = vpop.permute.xlu0 %4433 }
 0x569   :  { %v4431_v43 = vunpack.i.h.bf16 %v4429_v41  ;;  %v4430_v44 = vunpack.i.l.bf16 %v4429_v41  ;;  %v4436_v45 = vunpack.i.h.bf16 %v4434_v42  ;;  %v4435_v46 = vunpack.i.l.bf16 %v4434_v42  ;;  %v774_v41 = vld [vmem:[%s6461_s14 + $0x10] sm:$0xff]  ;;  %v776_v42 = vld [vmem:[%s6461_s14 + $0x20] sm:$0xff] }
 0x56b   :  { %v4080_v47 = vpack.c.bf16 %v4431_v43, %v4430_v44  ;;  %v4086_v48 = vpack.c.bf16 %v4436_v45, %v4435_v46 }
 0x56d   :  { %4082 = vmatprep.subr.msk.bf16.mxu1 %vm5745_vm6, %v4080_v47  ;;  %v4439_v49 = vpop.permute.xlu1 %4438 }
 0x56e   :  { %4085 = vmatpush3.bf16.xpose.msk.msra.mxu1 %vm5745_vm6, %v4080_v47  ;;  %v4441_v50 = vunpack.i.h.bf16 %v4439_v49  ;;  %v4440_v52 = vunpack.i.l.bf16 %v4439_v49  ;;  %v777_v49 = vld [vmem:[%s6461_s14 + $0x28] sm:$0xff] }
 0x56f   :  { %4088 = vmatprep.subr.msk.bf16.mxu1 %vm5745_vm6, %v4086_v48 }
 0x570   :  { %v4092_v53 = vpack.c.bf16 %v4441_v50, %v4440_v52  ;;  %v778_v50 = vld [vmem:[%s6461_s14 + $0x30] sm:$0xff] }
 0x571   :  { %v4444_v54 = vpop.permute.xlu0 %4443 }
 0x572   :  { %v4446_v55 = vunpack.i.h.bf16 %v4444_v54  ;;  %v4445_v56 = vunpack.i.l.bf16 %v4444_v54 }
 0x574   :  { %v4098_v61 = vpack.c.bf16 %v4446_v55, %v4445_v56 }
 0x575   :  { %v4449_v57 = vpop.permute.xlu1 %4448 }
 0x576   :  { %4091 = vmatpush3.bf16.xpose.msk.msra.mxu1 %vm5745_vm6, %v4086_v48  ;;  %v4451_v3 = vunpack.i.h.bf16 %v4449_v57  ;;  %v4450_v4 = vunpack.i.l.bf16 %v4449_v57 }
 0x577   :  { %4094 = vmatprep.subr.msk.bf16.mxu1 %vm5745_vm6, %v4092_v53 }
 0x578   :  { %v4104_v12 = vpack.c.bf16 %v4451_v3, %v4450_v4 }
 0x579   :  { %v4454_v58 = vpop.permute.xlu0 %4453 }
 0x57a   :  { %v4456_v26 = vunpack.i.h.bf16 %v4454_v58  ;;  %v4455_v29 = vunpack.i.l.bf16 %v4454_v58  ;;  %v779_v58 = vld [vmem:[%s6461_s14 + $0x38] sm:$0xff] }
 0x57c   :  { %v4110_v35 = vpack.c.bf16 %v4456_v26, %v4455_v29  ;;  %v784_v26 = vld [vmem:[%s6461_s14 + $0x60] sm:$0xff] }
 0x57d   :  { %v4459_v0 = vpop.permute.xlu1 %4458  ;;  %v4469_v1 = vpop.permute.xlu0 %4468 }
 0x57e   :  { %4097 = vmatpush3.bf16.xpose.msk.msra.mxu1 %vm5745_vm6, %v4092_v53  ;;  %v4471_v6 = vunpack.i.h.bf16 %v4469_v1  ;;  %v4470_v7 = vunpack.i.l.bf16 %v4469_v1  ;;  %v4461_v36 = vunpack.i.h.bf16 %v4459_v0  ;;  %v4460_v37 = vunpack.i.l.bf16 %v4459_v0 }
 0x57f   :  { %4100 = vmatprep.subr.msk.bf16.mxu1 %vm5745_vm6, %v4098_v61 }
 0x580   :  { %v4130_v23 = vpack.c.bf16 %v4471_v6, %v4470_v7  ;;  %v4116_v38 = vpack.c.bf16 %v4461_v36, %v4460_v37  ;;  %v781_v7 = vld [vmem:[%s6461_s14 + $0x48] sm:$0xff] }
 0x581   :  { %v4464_v5 = vpop.permute.xlu1 %4463 }
 0x582   :  { %v4466_v9 = vunpack.i.h.bf16 %v4464_v5  ;;  %v4465_v10 = vunpack.i.l.bf16 %v4464_v5 }
 0x584   :  { %v4126_v11 = vpack.c.bf16 %v4466_v9, %v4465_v10  ;;  %v782_v9 = vld [vmem:[%s6461_s14 + $0x50] sm:$0xff] }
 0x585   :  { %v4474_v14 = vpop.permute.xlu1 %4473 }
 0x586   :  { %v4476_v19 = vunpack.i.h.bf16 %v4474_v14  ;;  %v4475_v20 = vunpack.i.l.bf16 %v4474_v14  ;;  %4127 = vmatprep.subr.bf16.mxu0 %v4126_v11  ;;  %4103 = vmatpush3.bf16.xpose.msk.msra.mxu1 %vm5745_vm6, %v4098_v61  ;;  %v780_v61 = vld [vmem:[%s6461_s14 + $0x40] sm:$0xff] }
 0x587   :  { %4129 = vmatpush3.bf16.msra.mxu0 %v4126_v11  ;;  %4106 = vmatprep.subr.msk.bf16.mxu1 %vm5745_vm6, %v4104_v12 }
 0x588   :  { %4131 = vmatprep.subr.bf16.mxu0 %v4130_v23  ;;  %v4134_v32 = vpack.c.bf16 %v4476_v19, %v4475_v20 }
 0x58b   :  { %4133 = vmatpush3.bf16.msra.mxu0 %v4130_v23  ;;  %v783_v23 = vld [vmem:[%s6461_s14 + $0x58] sm:$0xff] }
 0x58c   :  { %4135 = vmatprep.subr.bf16.mxu0 %v4134_v32 }
 0x58e   :  { %4109 = vmatpush3.bf16.xpose.msk.msra.mxu1 %vm5745_vm6, %v4104_v12 }
 0x58f   :  { %4137 = vmatpush3.bf16.msra.mxu0 %v4134_v32  ;;  %4112 = vmatprep.subr.msk.bf16.mxu1 %vm5745_vm6, %v4110_v35 }
 0x596   :  { %4115 = vmatpush3.bf16.xpose.msk.msra.mxu1 %vm5745_vm6, %v4110_v35 }
 0x597   :  { %4118 = vmatprep.subr.msk.bf16.mxu1 %vm5745_vm6, %v4116_v38 }
 0x59e   :  { %4121 = vmatpush3.bf16.xpose.msk.msra.mxu1 %vm5745_vm6, %v4116_v38 }
 0x5a5   :  { %3730 = vmatmul.mubr.msk.f32.vlgmr.msra.gmra.mrb[4].mxu1 %vm504_vm0, %v5667_v8 }
 0x5a6   :  { %3732 = vmatprep.mubr.msk.f32.mxu1 %vm504_vm0, %v5694_v16 }
 0x5a9   :  { %3733 = vmatmul.mubr.msk.f32.gmra.mrb[6].mxu1 %vm504_vm0, %v5698_v18  ;;  %v772_v18 = vld [vmem:[%s6461_s14] sm:$0xff] }
 0x5aa   :  { %3735 = vmatprep.mubr.msk.f32.mxu1 %vm504_vm0, %v5692_v15  ;;  %v773_v15 = vld [vmem:[%s6461_s14 + $0x8] sm:$0xff] }
 0x5ad   :  { %3736 = vmatmul.mubr.msk.f32.gmra.mrb[8].mxu1 %vm504_vm0, %v5696_v17 }
 0x5ae   :  { %3738 = vmatprep.mubr.msk.f32.mxu1 %vm504_vm0, %v5708_v22 }
 0x5b1   :  { %3739 = vmatmul.mubr.msk.f32.gmra.mrb[10].mxu1 %vm504_vm0, %v5706_v21 }
 0x5b2   :  { %3741 = vmatprep.mubr.msk.f32.mxu1 %vm504_vm0, %v5715_v25 }
 0x5b5   :  { %3742 = vmatmul.mubr.msk.f32.gmra.mrb[12].mxu1 %vm504_vm0, %v5713_v24 }
 0x5b6   :  { %3744 = vmatprep.mubr.msk.f32.mxu1 %vm504_vm0, %v5722_v28 }
 0x5b9   :  { %3745 = vmatmul.mubr.msk.f32.gmra.mrb[14].mxu1 %vm504_vm0, %v5720_v27  ;;  %v775_v27 = vld [vmem:[%s6461_s14 + $0x18] sm:$0xff] }
 0x5ba   :  { %3747 = vmatprep.mubr.msk.f32.mxu1 %vm504_vm0, %v5729_v31 }
 0x5bd   :  { %3748 = vmatmul.mubr.msk.f32.gmra.mrb[16].mxu1 %vm504_vm0, %v5727_v30 }
 0x5be   :  { %3750 = vmatprep.mubr.msk.f32.mxu1 %vm504_vm0, %v5736_v34 }
 0x5c1   :  { %3751 = vmatmul.mubr.msk.f32.gmra.mrb[18].mxu1 %vm504_vm0, %v5734_v33 }
 0x5c2   :  { %2087 = vmatprep.mubr.f32.mxu1 %v5308_v51 }
 0x678   :  { %v3731_v8 = vpop.f32.mrb[4].mxu1 }
 0x679   :  { %v1216_v16 = vmul.f32 0.35355338, %v3731_v8  ;;  %v1136_v17 = vpop.f32.mrb[5].mxu1  ;;  %v785_v8 = vld [vmem:[%s6461_s14 + $0x68] sm:$0xff] }
 0x67a   :  { %v1215_v21 = vmul.f32 0.35355338, %v1136_v17 }
 0x67b   :  { %v5818_v22 = vadd.f32 %v1216_v16, %v773_v15  ;;  %v786_v15 = vld [vmem:[%s6461_s14 + $0x70] sm:$0xff] }
 0x67c   :  { %v3734_v24 = vpop.f32.mrb[6].mxu1  ;;  %v5820_v25 = vadd.f32 %v1215_v21, %v772_v18 }
 0x67d   :  { %v1218_v28 = vmul.f32 0.35355338, %v3734_v24  ;;  %1249 = vmax.xlane.f32.xlu1 %v5818_v22  ;;  %v1146_v30 = vpop.f32.mrb[7].mxu1  ;;  %v787_v24 = vld [vmem:[%s6461_s14 + $0x78] sm:$0xff] }
 0x67e   :  { %1247 = vmax.xlane.f32.xlu0 %v5820_v25  ;;  %v1217_v33 = vmul.f32 0.35355338, %v1146_v30 }
 0x67f   :  { %v5825_v31 = vadd.f32 %v1218_v28, %v775_v27 }
 0x680   :  { %v3737_v34 = vpop.f32.mrb[8].mxu1  ;;  %v5830_v46 = vadd.f32 %v1217_v33, %v774_v41 }
 0x681   :  { %v1156_v40 = vpop.f32.mrb[9].mxu1  ;;  %v1220_v44 = vmul.f32 0.35355338, %v3737_v34 }
 0x682   :  { %v1219_v43 = vmul.f32 0.35355338, %v1156_v40  ;;  %1253 = vmax.xlane.f32.xlu0 %v5825_v31 }
 0x683   :  { %v5838_v55 = vadd.f32 %v1220_v44, %v777_v49 }
 0x684   :  { %v3740_v45 = vpop.f32.mrb[10].mxu1  ;;  %v5832_v47 = vadd.f32 %v1219_v43, %v776_v42 }
 0x685   :  { %v1166_v48 = vpop.f32.mrb[11].mxu1  ;;  %v1222_v53 = vmul.f32 0.35355338, %v3740_v45 }
 0x686   :  { %v1221_v52 = vmul.f32 0.35355338, %v1166_v48  ;;  %1251 = vmax.xlane.f32.xlu0 %v5830_v46  ;;  %1255 = vmax.xlane.f32.xlu1 %v5832_v47 }
 0x687   :  { %v5846_v4 = vadd.f32 %v1222_v53, %v779_v58 }
 0x688   :  { %v3743_v54 = vpop.f32.mrb[12].mxu1  ;;  %v5840_v56 = vadd.f32 %v1221_v52, %v778_v50 }
 0x689   :  { %v1176_v57 = vpop.f32.mrb[13].mxu1  ;;  %v1224_v1 = vmul.f32 0.35355338, %v3743_v54 }
 0x68a   :  { %v1223_v0 = vmul.f32 0.35355338, %v1176_v57  ;;  %1257 = vmax.xlane.f32.xlu0 %v5838_v55  ;;  %1259 = vmax.xlane.f32.xlu1 %v5840_v56 }
 0x68b   :  { %v5854_v14 = vadd.f32 %v1224_v1, %v781_v7 }
 0x68c   :  { %v3746_v3 = vpop.f32.mrb[14].mxu1  ;;  %v5848_v5 = vadd.f32 %v1223_v0, %v780_v61 }
 0x68d   :  { %v1186_v6 = vpop.f32.mrb[15].mxu1  ;;  %v1226_v11 = vmul.f32 0.35355338, %v3746_v3 }
 0x68e   :  { %v1225_v10 = vmul.f32 0.35355338, %v1186_v6  ;;  %1261 = vmax.xlane.f32.xlu0 %v5846_v4  ;;  %1263 = vmax.xlane.f32.xlu1 %v5848_v5 }
 0x68f   :  { %v5862_v36 = vadd.f32 %v1226_v11, %v783_v23 }
 0x690   :  { %v3749_v12 = vpop.f32.mrb[16].mxu1  ;;  %v5856_v19 = vadd.f32 %v1225_v10, %v782_v9 }
 0x691   :  { %v1196_v20 = vpop.f32.mrb[17].mxu1  ;;  %v1228_v32 = vmul.f32 0.35355338, %v3749_v12 }
 0x692   :  { %v1227_v29 = vmul.f32 0.35355338, %v1196_v20  ;;  %1265 = vmax.xlane.f32.xlu0 %v5854_v14  ;;  %1267 = vmax.xlane.f32.xlu1 %v5856_v19 }
 0x693   :  { %v5870_v18 = vadd.f32 %v1228_v32, %v785_v8 }
 0x694   :  { %v3752_v35 = vpop.f32.mrb[18].mxu1  ;;  %v5864_v37 = vadd.f32 %v1227_v29, %v784_v26 }
 0x695   :  { %v1206_v38 = vpop.f32.mrb[19].mxu1  ;;  %v1230_v17 = vmul.f32 0.35355338, %v3752_v35 }
 0x696   :  { %v1229_v16 = vmul.f32 0.35355338, %v1206_v38  ;;  %1269 = vmax.xlane.f32.xlu0 %v5862_v36  ;;  %1271 = vmax.xlane.f32.xlu1 %v5864_v37 }
 0x697   :  { %v5877_v27 = vadd.f32 %v1230_v17, %v787_v24 }
 0x698   :  { %v5872_v21 = vadd.f32 %v1229_v16, %v786_v15 }
 0x69a   :  { %1273 = vmax.xlane.f32.xlu0 %v5870_v18  ;;  %1275 = vmax.xlane.f32.xlu1 %v5872_v21 }
 0x69e   :  { %1277 = vmax.xlane.f32.xlu0 %v5877_v27 }
 0x6ab   :  { %4478 = vrot.lane.b32.xlu1 %v5673_v13, %s5312_s29 }
 0x6b4   :  { %4483 = vrot.lane.b32.xlu0 %v5673_v13, %s5313_s8 }
 0x70a   :  { %v1250_v28 = vpop.xlane.xlu1 %1249 }
 0x70b   :  { %v1280_v30 = vsub.f32 %v5818_v22, %v1250_v28  ;;  %v1248_v33 = vpop.xlane.xlu0 %1247 }
 0x70c   :  { %v1279_v34 = vsub.f32 %v5820_v25, %v1248_v33 }
 0x70d   :  { %v1297_v40 = vmul.f32 1.442695, %v1280_v30 }
 0x70e   :  { %v1295_v41 = vmul.f32 1.442695, %v1279_v34 }
 0x70f   :  { %4572 = vpow2.f32 %v1297_v40  ;;  %v1254_v42 = vpop.xlane.xlu0 %1253 }
 0x710   :  { %v1282_v43 = vsub.f32 %v5825_v31, %v1254_v42  ;;  %4574 = vpow2.f32 %v1295_v41 }
 0x712   :  { %v1301_v44 = vmul.f32 1.442695, %v1282_v43 }
 0x713   :  { %v1252_v45 = vpop.xlane.xlu0 %1251  ;;  %v1256_v48 = vpop.xlane.xlu1 %1255 }
 0x714   :  { %v1281_v49 = vsub.f32 %v5830_v46, %v1252_v45  ;;  %4576 = vpow2.f32 %v1301_v44  ;;  %v1283_v38 = vsub.f32 %v5832_v47, %v1256_v48 }
 0x716   :  { %v1299_v50 = vmul.f32 1.442695, %v1281_v49  ;;  %v1303_v17 = vmul.f32 1.442695, %v1283_v38 }
 0x717   :  { %v1258_v52 = vpop.xlane.xlu0 %1257  ;;  %v1260_v53 = vpop.xlane.xlu1 %1259 }
 0x718   :  { %4578 = vpow2.f32 %v1299_v50  ;;  %v1284_v32 = vsub.f32 %v5838_v55, %v1258_v52  ;;  %v1285_v24 = vsub.f32 %v5840_v56, %v1260_v53 }
 0x719   :  { %v5888_v22 = vpop.eup %4572 }
 0x71a   :  { %1329 = vadd.xlane.f32.xlu0 %v5888_v22  ;;  %v5891_v57 = vpop.eup %4574  ;;  %v1305_v8 = vmul.f32 1.442695, %v1284_v32 }
 0x71b   :  { %v1262_v25 = vpop.xlane.xlu0 %1261  ;;  %v1264_v54 = vpop.xlane.xlu1 %1263 }
 0x71c   :  { %v1286_v35 = vsub.f32 %v5846_v4, %v1262_v25  ;;  %4580 = vpow2.f32 %v1305_v8  ;;  %v1287_v55 = vsub.f32 %v5848_v5, %v1264_v54 }
 0x71e   :  { %1327 = vadd.xlane.f32.xlu0 %v5891_v57  ;;  %v5894_v61 = vpop.eup %4576  ;;  %v1309_v15 = vmul.f32 1.442695, %v1286_v35  ;;  %v1311_v33 = vmul.f32 1.442695, %v1287_v55 }
 0x71f   :  { %v1266_v31 = vpop.xlane.xlu0 %1265  ;;  %v1268_v58 = vpop.xlane.xlu1 %1267 }
 0x720   :  { %v1288_v16 = vsub.f32 %v5854_v14, %v1266_v31  ;;  %4582 = vpow2.f32 %v1309_v15  ;;  %v1289_v14 = vsub.f32 %v5856_v19, %v1268_v58 }
 0x721   :  { %4584 = vpow2.f32 %v1303_v17 }
 0x722   :  { %v5896_v46 = vpop.eup %4578  ;;  %1333 = vadd.xlane.f32.xlu0 %v5894_v61  ;;  %v1313_v28 = vmul.f32 1.442695, %v1288_v16  ;;  %v1315_v5 = vmul.f32 1.442695, %v1289_v14 }
 0x723   :  { %v1270_v0 = vpop.xlane.xlu0 %1269  ;;  %v1272_v1 = vpop.xlane.xlu1 %1271  ;;  %1331 = vadd.xlane.f32.xlu1 %v5896_v46 }
 0x724   :  { %v1290_v30 = vsub.f32 %v5862_v36, %v1270_v0  ;;  %4586 = vpow2.f32 %v1313_v28  ;;  %v1291_v36 = vsub.f32 %v5864_v37, %v1272_v1 }
 0x726   :  { %v1317_v4 = vmul.f32 1.442695, %v1290_v30  ;;  %v5914_v40 = vpop.eup %4580 }
 0x727   :  { %v1274_v3 = vpop.xlane.xlu0 %1273  ;;  %v1276_v6 = vpop.xlane.xlu1 %1275 }
 0x728   :  { %v1292_v47 = vsub.f32 %v5870_v18, %v1274_v3  ;;  %v1293_v56 = vsub.f32 %v5872_v21, %v1276_v6  ;;  %v1319_v21 = vmul.f32 1.442695, %v1291_v36 }
 0x72a   :  { %v1321_v34 = vmul.f32 1.442695, %v1292_v47  ;;  %v5916_v41 = vpop.eup %4582  ;;  %v1323_v18 = vmul.f32 1.442695, %v1293_v56 }
 0x72b   :  { %v1278_v7 = vpop.xlane.xlu0 %1277  ;;  %v4479_v9 = vpop.permute.xlu1 %4478 }
 0x72c   :  { %v4481_v10 = vunpack.i.h.bf16 %v4479_v9  ;;  %v4480_v11 = vunpack.i.l.bf16 %v4479_v9  ;;  %v1294_v19 = vsub.f32 %v5877_v27, %v1278_v7  ;;  %v5922_v42 = vpop.eup %4584 }
 0x72e   :  { %v4138_v12 = vpack.c.bf16 %v4481_v10, %v4480_v11  ;;  %v5924_v43 = vpop.eup %4586  ;;  %v1325_v44 = vmul.f32 1.442695, %v1294_v19 }
 0x72f   :  { %v4484_v20 = vpop.permute.xlu0 %4483 }
 0x730   :  { %v4486_v23 = vunpack.i.h.bf16 %v4484_v20  ;;  %v4485_v26 = vunpack.i.l.bf16 %v4484_v20  ;;  %4139 = vmatprep.subr.bf16.mxu0 %v4138_v12 }
 0x731   :  { %4141 = vmatpush3.bf16.msra.mxu0 %v4138_v12 }
 0x732   :  { %v4142_v29 = vpack.c.bf16 %v4486_v23, %v4485_v26 }
 0x734   :  { %4488 = vrot.lane.b32.xlu1 %v5673_v13, %s5314_s24  ;;  %4143 = vmatprep.subr.bf16.mxu0 %v4142_v29 }
 0x735   :  { %4145 = vmatpush3.bf16.msra.mxu0 %v4142_v29 }
 0x738   :  { %4493 = vrot.lane.b32.xlu0 %v5673_v13, %s5315_s11  ;;  %v1307_v13 = vmul.f32 1.442695, %v1285_v24 }
 0x73a   :  { %4588 = vpow2.f32 %v1307_v13 }
 0x73b   :  { %4590 = vpow2.f32 %v1317_v4 }
 0x73c   :  { %4592 = vpow2.f32 %v1311_v33 }
 0x73d   :  { %4594 = vpow2.f32 %v1321_v34 }
 0x73e   :  { %4596 = vpow2.f32 %v1315_v5 }
 0x73f   :  { %4598 = vpow2.f32 %v1323_v18 }
 0x740   :  { %4600 = vpow2.f32 %v1319_v21 }
 0x741   :  { %4602 = vpow2.f32 %v1325_v44 }
 0x744   :  { %v5928_v45 = vpop.eup %4588 }
 0x745   :  { %v5930_v37 = vpop.eup %4590 }
 0x746   :  { %v5934_v27 = vpop.eup %4592 }
 0x747   :  { %v5936_v48 = vpop.eup %4594 }
 0x748   :  { %v5940_v49 = vpop.eup %4596 }
 0x749   :  { %v5942_v50 = vpop.eup %4598 }
 0x74a   :  { %v5946_v52 = vpop.eup %4600 }
 0x74b   :  { %v5948_v53 = vpop.eup %4602 }
 0x757   :  { %1337 = vadd.xlane.f32.xlu0 %v5914_v40 }
 0x758   :  { %1341 = vadd.xlane.f32.xlu1 %v5916_v41 }
 0x75b   :  { %1335 = vadd.xlane.f32.xlu0 %v5922_v42 }
 0x75c   :  { %1345 = vadd.xlane.f32.xlu1 %v5924_v43 }
 0x75f   :  { %1339 = vadd.xlane.f32.xlu0 %v5928_v45 }
 0x760   :  { %1349 = vadd.xlane.f32.xlu1 %v5930_v37 }
 0x763   :  { %1343 = vadd.xlane.f32.xlu0 %v5934_v27 }
 0x764   :  { %1353 = vadd.xlane.f32.xlu1 %v5936_v48 }
 0x767   :  { %1347 = vadd.xlane.f32.xlu0 %v5940_v49 }
 0x768   :  { %1355 = vadd.xlane.f32.xlu1 %v5942_v50 }
 0x76b   :  { %1351 = vadd.xlane.f32.xlu0 %v5946_v52 }
 0x76c   :  { %1357 = vadd.xlane.f32.xlu1 %v5948_v53 }
 0x7a7   :  { %v1330_v25 = vpop.xlane.xlu0 %1329 }
 0x7ab   :  { %v1328_v54 = vpop.xlane.xlu0 %1327 }
 0x7ac   :  { %4604 = vrcp.f32 %v1328_v54 }
 0x7ad   :  { %4606 = vrcp.f32 %v1330_v25 }
 0x7af   :  { %v1334_v31 = vpop.xlane.xlu0 %1333 }
 0x7b0   :  { %v1332_v58 = vpop.xlane.xlu1 %1331 }
 0x7b1   :  { %4608 = vrcp.f32 %v1332_v58 }
 0x7b2   :  { %4610 = vrcp.f32 %v1334_v31 }
 0x7b3   :  { %v4494_v0 = vpop.permute.xlu0 %4493 }
 0x7b4   :  { %v4489_v1 = vpop.permute.xlu1 %4488  ;;  %v4496_v3 = vunpack.i.h.bf16 %v4494_v0  ;;  %v4495_v6 = vunpack.i.l.bf16 %v4494_v0  ;;  %v1611_v0 = vld [vmem:[%s6462_s19 + $0x8] sm:$0xff] }
 0x7b5   :  { %v4491_v7 = vunpack.i.h.bf16 %v4489_v1  ;;  %v4490_v9 = vunpack.i.l.bf16 %v4489_v1 }
 0x7b6   :  { %v4605_v10 = vpop.eup %4604  ;;  %v4150_v20 = vpack.c.bf16 %v4496_v3, %v4495_v6  ;;  %v1613_v6 = vld [vmem:[%s6462_s19 + $0x18] sm:$0xff] }
 0x7b7   :  { %v4146_v11 = vpack.c.bf16 %v4491_v7, %v4490_v9  ;;  %v1375_v12 = vmul.f32 %v4605_v10, %v5891_v57  ;;  %v4607_v23 = vpop.eup %4606  ;;  %v1614_v9 = vld [vmem:[%s6462_s19 + $0x20] sm:$0xff]  ;;  %v1615_v10 = vld [vmem:[%s6462_s19 + $0x28] sm:$0xff] }
 0x7b8   :  { %v1376_v29 = vmul.f32 %v4607_v23, %v5888_v22 }
 0x7b9   :  { %4147 = vmatprep.subr.bf16.mxu0 %v4146_v11  ;;  %3785 = vmatprep.mubr.f32.mxu0 %v1375_v12 }
 0x7ba   :  { %4149 = vmatpush3.bf16.msra.mxu0 %v4146_v11  ;;  %v4162_v11 = vpack.c.bf16 %v1615_v10, %v1614_v9 }
 0x7bb   :  { %4151 = vmatprep.subr.bf16.mxu0 %v4150_v20  ;;  %v4609_v26 = vpop.eup %4608 }
 0x7bc   :  { %v4611_v32 = vpop.eup %4610  ;;  %v1377_v35 = vmul.f32 %v4609_v26, %v5896_v46  ;;  %v1616_v26 = vld [vmem:[%s6462_s19 + $0x30] sm:$0xff] }
 0x7bd   :  { %v1378_v38 = vmul.f32 %v4611_v32, %v5894_v61 }
 0x7be   :  { %4153 = vmatpush3.bf16.msra.mxu0 %v4150_v20 }
 0x7c1   :  { %3786 = vmatmul.mubr.f32.vlgmr.msra.gmra.mrb[6].mxu0 %v1376_v29  ;;  %v1617_v29 = vld [vmem:[%s6462_s19 + $0x38] sm:$0xff] }
 0x7c2   :  { %3788 = vmatprep.mubr.f32.mxu0 %v1377_v35  ;;  %v4166_v35 = vpack.c.bf16 %v1617_v29, %v1616_v26  ;;  %v1753_v26 = vld [vmem:[%s6463_s4] sm:$0xff]  ;;  %v1754_v29 = vld [vmem:[%s6463_s4 + $0x8] sm:$0xff] }
 0x7c5   :  { %3789 = vmatmul.mubr.f32.gmra.mrb[8].mxu0 %v1378_v38 }
 0x7e4   :  { %v1338_v8 = vpop.xlane.xlu0 %1337 }
 0x7e5   :  { %v1342_v57 = vpop.xlane.xlu1 %1341  ;;  %4612 = vrcp.f32 %v1338_v8 }
 0x7e8   :  { %v1336_v15 = vpop.xlane.xlu0 %1335 }
 0x7e9   :  { %4614 = vrcp.f32 %v1336_v15  ;;  %v1346_v16 = vpop.xlane.xlu1 %1345 }
 0x7ea   :  { %4616 = vrcp.f32 %v1342_v57 }
 0x7ec   :  { %v1340_v17 = vpop.xlane.xlu0 %1339 }
 0x7ed   :  { %4618 = vrcp.f32 %v1340_v17  ;;  %v1350_v24 = vpop.xlane.xlu1 %1349 }
 0x7ee   :  { %4620 = vrcp.f32 %v1346_v16 }
 0x7ef   :  { %v4613_v46 = vpop.eup %4612 }
 0x7f0   :  { %v1344_v22 = vpop.xlane.xlu0 %1343  ;;  %v1380_v4 = vmul.f32 %v4613_v46, %v5914_v40 }
 0x7f1   :  { %4622 = vrcp.f32 %v1344_v22  ;;  %v1354_v28 = vpop.xlane.xlu1 %1353 }
 0x7f2   :  { %4624 = vrcp.f32 %v1350_v24 }
 0x7f3   :  { %v4615_v30 = vpop.eup %4614 }
 0x7f4   :  { %v1348_v13 = vpop.xlane.xlu0 %1347  ;;  %v1379_v61 = vmul.f32 %v4615_v30, %v5922_v42  ;;  %v4617_v47 = vpop.eup %4616 }
 0x7f5   :  { %4626 = vrcp.f32 %v1348_v13  ;;  %v1356_v55 = vpop.xlane.xlu1 %1355  ;;  %v1382_v5 = vmul.f32 %v4617_v47, %v5916_v41 }
 0x7f6   :  { %3791 = vmatprep.mubr.f32.mxu0 %v1379_v61  ;;  %4628 = vrcp.f32 %v1354_v28 }
 0x7f7   :  { %v4619_v33 = vpop.eup %4618  ;;  %3792 = vmatmul.mubr.f32.gmra.mrb[10].mxu0 %v1380_v4  ;;  %4630 = vrcp.f32 %v1356_v55 }
 0x7f8   :  { %v1352_v14 = vpop.xlane.xlu0 %1351  ;;  %v1381_v34 = vmul.f32 %v4619_v33, %v5928_v45  ;;  %v4621_v36 = vpop.eup %4620 }
 0x7f9   :  { %4632 = vrcp.f32 %v1352_v14  ;;  %v1358_v56 = vpop.xlane.xlu1 %1357  ;;  %v1384_v19 = vmul.f32 %v4621_v36, %v5924_v43 }
 0x7fa   :  { %3794 = vmatprep.mubr.f32.mxu0 %v1381_v34  ;;  %4634 = vrcp.f32 %v1358_v56 }
 0x7fb   :  { %v4623_v18 = vpop.eup %4622  ;;  %3795 = vmatmul.mubr.f32.gmra.mrb[12].mxu0 %v1382_v5 }
 0x7fc   :  { %v1383_v40 = vmul.f32 %v4623_v18, %v5934_v27  ;;  %v4625_v42 = vpop.eup %4624 }
 0x7fd   :  { %v1386_v41 = vmul.f32 %v4625_v42, %v5930_v37  ;;  %v1610_v37 = vld [vmem:[%s6462_s19] sm:$0xff] }
 0x7fe   :  { %3797 = vmatprep.mubr.f32.mxu0 %v1383_v40  ;;  %v4154_v1 = vpack.c.bf16 %v1611_v0, %v1610_v37 }
 0x7ff   :  { %v4627_v21 = vpop.eup %4626  ;;  %3798 = vmatmul.mubr.f32.gmra.mrb[14].mxu0 %v1384_v19 }
 0x800   :  { %v1385_v44 = vmul.f32 %v4627_v21, %v5940_v49  ;;  %v4629_v45 = vpop.eup %4628  ;;  %4155 = vmatprep.subr.bf16.mxu0 %v4154_v1 }
 0x801   :  { %v4631_v25 = vpop.eup %4630  ;;  %v1388_v27 = vmul.f32 %v4629_v45, %v5936_v48  ;;  %4157 = vmatpush3.bf16.msra.mxu0 %v4154_v1 }
 0x802   :  { %3800 = vmatprep.mubr.f32.mxu0 %v1385_v44  ;;  %v1389_v58 = vmul.f32 %v4631_v25, %v5942_v50 }
 0x803   :  { %v4633_v54 = vpop.eup %4632  ;;  %3801 = vmatmul.mubr.f32.gmra.mrb[16].mxu0 %v1386_v41 }
 0x804   :  { %v1387_v31 = vmul.f32 %v4633_v54, %v5946_v52  ;;  %v4635_v43 = vpop.eup %4634 }
 0x805   :  { %v1390_v49 = vmul.f32 %v4635_v43, %v5948_v53  ;;  %v1612_v53 = vld [vmem:[%s6462_s19 + $0x10] sm:$0xff] }
 0x806   :  { %3803 = vmatprep.mubr.f32.mxu0 %v1387_v31  ;;  %v4158_v7 = vpack.c.bf16 %v1613_v6, %v1612_v53 }
 0x807   :  { %3804 = vmatmul.mubr.f32.gmra.mrb[18].mxu0 %v1388_v27 }
 0x808   :  { %3806 = vmatprep.mubr.f32.mxu0 %v1389_v58  ;;  %4159 = vmatprep.subr.bf16.mxu0 %v4158_v7 }
 0x809   :  { %4161 = vmatpush3.bf16.msra.mxu0 %v4158_v7 }
 0x80a   :  { %4163 = vmatprep.subr.bf16.mxu0 %v4162_v11 }
 0x80b   :  { %3807 = vmatmul.mubr.f32.gmra.mrb[20].mxu0 %v1390_v49  ;;  %v3389_v49 = vld [vmem:[#allocation13] ss:$0 sm:$0xff] }
 0x80d   :  { %4165 = vmatpush3.bf16.msra.mxu0 %v4162_v11 }
 0x80e   :  { %4167 = vmatprep.subr.bf16.mxu0 %v4166_v35 }
 0x811   :  { %4169 = vmatpush3.bf16.msra.mxu0 %v4166_v35  ;;  %v1755_v35 = vld [vmem:[%s6463_s4 + $0x10] sm:$0xff] }
 0x894   :  { %v5970_v52 = vpop.f32.mrb[6].mxu0 }
 0x895   :  { %v1457_v48 = vpop.f32.mrb[7].mxu0 }
 0x898   :  { %v3790_v3 = vpop.f32.mrb[8].mxu0 }
 0x899   :  { %1540 = vrot.lane.b32.xlu0 %v3790_v3, %s5285_s28  ;;  %v1467_v50 = vpop.f32.mrb[9].mxu0 }
 0x89a   :  { %1538 = vrot.lane.b32.xlu1 %v1467_v50, %s5285_s28 }
 0x8ca   :  { %v3793_v12 = vpop.f32.mrb[10].mxu0 }
 0x8cb   :  { %1548 = vrot.lane.b32.xlu1 %v3793_v12, %s5303_s7  ;;  %v1477_v20 = vpop.f32.mrb[11].mxu0 }
 0x8ce   :  { %v3796_v23 = vpop.f32.mrb[12].mxu0 }
 0x8cf   :  { %1546 = vrot.lane.b32.xlu1 %v1477_v20, %s5303_s7  ;;  %1556 = vrot.lane.b32.xlu0 %v3796_v23, %s5317_s15  ;;  %v1487_v32 = vpop.f32.mrb[13].mxu0 }
 0x8d2   :  { %v3799_v38 = vpop.f32.mrb[14].mxu0 }
 0x8d3   :  { %1554 = vrot.lane.b32.xlu1 %v1487_v32, %s5317_s15  ;;  %1564 = vrot.lane.b32.xlu0 %v3799_v38, %s5318_s16  ;;  %v1497_v8 = vpop.f32.mrb[15].mxu0  ;;  %v4170_v32 = vpack.c.bf16 %v1754_v29, %v1753_v26  ;;  %v1756_v38 = vld [vmem:[%s6463_s4 + $0x18] sm:$0xff]  ;;  %v1995_v29 = vld [vmem:[#allocation24 + $0x30] sm:$0xff] }
 0x8d4   :  { %v1993_v26 = vld [vmem:[#allocation24 + $0x20] sm:$0xff] }
 0x8d5   :  { %4171 = vmatprep.subr.bf16.mxu0 %v4170_v32 }
 0x8d6   :  { %v3802_v57 = vpop.f32.mrb[16].mxu0 }
 0x8d7   :  { %1562 = vrot.lane.b32.xlu1 %v1497_v8, %s5318_s16  ;;  %1572 = vrot.lane.b32.xlu0 %v3802_v57, %s5319_s18  ;;  %v1507_v15 = vpop.f32.mrb[17].mxu0  ;;  %v4174_v8 = vpack.c.bf16 %v1756_v38, %v1755_v35  ;;  %v1757_v57 = vld [vmem:[%s6463_s4 + $0x20] sm:$0xff] }
 0x8da   :  { %v3805_v16 = vpop.f32.mrb[18].mxu0 }
 0x8db   :  { %1570 = vrot.lane.b32.xlu1 %v1507_v15, %s5319_s18  ;;  %1580 = vrot.lane.b32.xlu0 %v3805_v16, %s5320_s26  ;;  %v1517_v17 = vpop.f32.mrb[19].mxu0  ;;  %v1758_v15 = vld [vmem:[%s6463_s4 + $0x28] sm:$0xff] }
 0x8dc   :  { %v4178_v16 = vpack.c.bf16 %v1758_v15, %v1757_v57 }
 0x8de   :  { %v3808_v24 = vpop.f32.mrb[20].mxu0 }
 0x8df   :  { %1578 = vrot.lane.b32.xlu1 %v1517_v17, %s5320_s26  ;;  %1588 = vrot.lane.b32.xlu0 %v3808_v24, %s5321_s25  ;;  %v1527_v22 = vpop.f32.mrb[21].mxu0  ;;  %v1759_v17 = vld [vmem:[%s6463_s4 + $0x30] sm:$0xff]  ;;  %v1760_v24 = vld [vmem:[%s6463_s4 + $0x38] sm:$0xff] }
 0x8e3   :  { %1586 = vrot.lane.b32.xlu1 %v1527_v22, %s5321_s25  ;;  %v4182_v22 = vpack.c.bf16 %v1760_v24, %v1759_v17 }
 0x90b   :  { %v1541_v46 = vpop.permute.xlu0 %1540 }
 0x90c   :  { %v1539_v28 = vpop.permute.xlu1 %1538  ;;  %v1593_v5 = vsel %vm504_vm0, %v5970_v52, %v1541_v46  ;;  %v1852_v46 = vld [vmem:[#allocation19 + $0x8] sm:$0xff] }
 0x90d   :  { %v1592_v56 = vsel %vm504_vm0, %v1457_v48, %v1539_v28  ;;  %v1851_v28 = vld [vmem:[#allocation19] sm:$0xff] }
 0x93d   :  { %v1549_v30 = vpop.permute.xlu1 %1548 }
 0x93e   :  { %v1595_v40 = vsel %vm419_vm1, %v1593_v5, %v1549_v30  ;;  %v4186_v30 = vpack.c.bf16 %v1852_v46, %v1851_v28  ;;  %v1998_v46 = vld [vmem:[#allocation24 + $0x48] sm:$0xff] }
 0x941   :  { %v1547_v13 = vpop.permute.xlu1 %1546  ;;  %v1557_v61 = vpop.permute.xlu0 %1556 }
 0x942   :  { %v1594_v36 = vsel %vm419_vm1, %v1592_v56, %v1547_v13  ;;  %v1598_v42 = vsel %vm1596_vm7, %v1595_v40, %v1557_v61 }
 0x945   :  { %v1555_v55 = vpop.permute.xlu1 %1554  ;;  %v1565_v4 = vpop.permute.xlu0 %1564 }
 0x946   :  { %v1597_v19 = vsel %vm1596_vm7, %v1594_v36, %v1555_v55  ;;  %v1600_v44 = vsel %vm594_vm2, %v1598_v42, %v1565_v4 }
 0x949   :  { %v1563_v47 = vpop.permute.xlu1 %1562  ;;  %v1573_v33 = vpop.permute.xlu0 %1572 }
 0x94a   :  { %v1599_v21 = vsel %vm594_vm2, %v1597_v19, %v1563_v47  ;;  %v1603_v25 = vsel %vm1601_vm8, %v1600_v44, %v1573_v33  ;;  %v1853_v44 = vld [vmem:[#allocation19 + $0x10] sm:$0xff] }
 0x94d   :  { %v1571_v14 = vpop.permute.xlu1 %1570  ;;  %v1581_v34 = vpop.permute.xlu0 %1580 }
 0x94e   :  { %v1602_v45 = vsel %vm1601_vm8, %v1599_v21, %v1571_v14  ;;  %v1606_v27 = vsel %vm1604_vm9, %v1603_v25, %v1581_v34  ;;  %v3392_v34 = vld [vmem:[#allocation15] ss:$0 sm:$0xff]  ;;  %v3394_v25 = vld [vmem:[#allocation18] ss:$0 sm:$0xff] }
 0x951   :  { %v1579_v18 = vpop.permute.xlu1 %1578  ;;  %v1589_v41 = vpop.permute.xlu0 %1588 }
 0x952   :  { %v1605_v54 = vsel %vm1604_vm9, %v1602_v45, %v1579_v18  ;;  %v1609_v58 = vsel %vm1607_vm10, %v1606_v27, %v1589_v41  ;;  %v3393_v18 = vld [vmem:[#allocation16] ss:$0 sm:$0xff] }
 0x953   :  { %v1854_v45 = vld [vmem:[#allocation19 + $0x18] sm:$0xff] }
 0x954   :  { %v4190_v41 = vpack.c.bf16 %v1854_v45, %v1853_v44 }
 0x955   :  { %v1587_v31 = vpop.permute.xlu1 %1586 }
 0x956   :  { %v1608_v43 = vsel %vm1607_vm10, %v1605_v54, %v1587_v31 }
 0x957   :  { %3825 = vmatprep.mubr.msk.f32.mxu0 %vm816_vm4, %v1608_v43 }
 0x958   :  { %3826 = vmatmul.mubr.msk.f32.vlgmr.msra.gmra.mrb[22].mxu0 %vm816_vm4, %v1609_v58 }
 0x959   :  { %4173 = vmatpush3.bf16.msra.mxu0 %v4170_v32  ;;  %v4200_v32 = vpack.c.bf16 %v1995_v29, %v1993_v26 }
 0x95a   :  { %4175 = vmatprep.subr.bf16.mxu0 %v4174_v8 }
 0x95d   :  { %4177 = vmatpush3.bf16.msra.mxu0 %v4174_v8 }
 0x95e   :  { %4179 = vmatprep.subr.bf16.mxu0 %v4178_v16 }
 0x961   :  { %4181 = vmatpush3.bf16.msra.mxu0 %v4178_v16 }
 0x962   :  { %4183 = vmatprep.subr.bf16.mxu0 %v4182_v22 }
 0x965   :  { %4185 = vmatpush3.bf16.msra.mxu0 %v4182_v22 }
 0x966   :  { %4187 = vmatprep.subr.bf16.mxu0 %v4186_v30 }
 0xa2b   :  { %v3827_v37 = vpop.f32.mrb[22].mxu0 }
 0xa2c   :  { %v1703_v0 = vadd.f32 %v3827_v37, %v3389_v49  ;;  %v1697_v1 = vpop.f32.mrb[23].mxu0  ;;  %v3397_v37 = vld [vmem:[#allocation21] ss:$0 sm:$0xff] }
 0xa2d   :  { %v1698_v52 = vadd.f32 %v3389_v49, %v1697_v1 }
 0xa2e   :  { %v1707_v48 = vadd.f32 %v1703_v0, %v5652_v60 }
 0xa2f   :  { %v1706_v3 = vadd.f32 %v1698_v52, %v5647_v59 }
 0xa30   :  { %v1713_v50 = vsel %vm816_vm4, %v1707_v48, 0.0 }
 0xa31   :  { %1714 = vadd.xlane.f32.xlu0 %v1713_v50  ;;  %v1710_v53 = vsel %vm816_vm4, %v1706_v3, 0.0 }
 0xa32   :  { %1711 = vadd.xlane.f32.xlu1 %v1710_v53 }
 0xabe   :  { %v1715_v6 = vpop.xlane.xlu0 %1714 }
 0xabf   :  { %v1718_v7 = vmul.f32 0.015625, %v1715_v6  ;;  %v1712_v9 = vpop.xlane.xlu1 %1711 }
 0xac0   :  { %v1717_v10 = vmul.f32 0.015625, %v1712_v9  ;;  %v1992_v9 = vld [vmem:[#allocation24 + $0x18] sm:$0xff] }
 0xac1   :  { %v1720_v11 = vsub.f32 %v1707_v48, %v1718_v7  ;;  %v1990_v7 = vld [vmem:[#allocation24 + $0x8] sm:$0xff] }
 0xac2   :  { %v1719_v12 = vsub.f32 %v1706_v3, %v1717_v10  ;;  %v1989_v10 = vld [vmem:[#allocation24] sm:$0xff] }
 0xac3   :  { %v1722_v20 = vmul.f32 %v1720_v11, %v1720_v11 }
 0xac4   :  { %v1721_v60 = vmul.f32 %v1719_v12, %v1719_v12 }
 0xac5   :  { %v1726_v59 = vsel %vm816_vm4, %v1722_v20, 0.0  ;;  %v1994_v20 = vld [vmem:[#allocation24 + $0x28] sm:$0xff] }
 0xac6   :  { %1727 = vadd.xlane.f32.xlu1 %v1726_v59  ;;  %v1723_v23 = vsel %vm816_vm4, %v1721_v60, 0.0  ;;  %v1996_v60 = vld [vmem:[#allocation24 + $0x38] sm:$0xff] }
 0xac7   :  { %1724 = vadd.xlane.f32.xlu0 %v1723_v23  ;;  %v4198_v23 = vpack.c.bf16 %v1996_v60, %v1994_v20 }
 0xb53   :  { %v1728_v13 = vpop.xlane.xlu1 %1727 }
 0xb54   :  { %v1730_v61 = vmul.f32 0.015625, %v1728_v13  ;;  %v1725_v55 = vpop.xlane.xlu0 %1724 }
 0xb55   :  { %v1729_v4 = vmul.f32 0.015625, %v1725_v55  ;;  %v1999_v55 = vld [vmem:[#allocation24 + $0x50] sm:$0xff] }
 0xb56   :  { %v1732_v47 = vadd.f32 1e-05, %v1730_v61  ;;  %v1997_v61 = vld [vmem:[#allocation24 + $0x40] sm:$0xff] }
 0xb57   :  { %v1731_v33 = vadd.f32 1e-05, %v1729_v4  ;;  %v4204_v4 = vpack.c.bf16 %v1999_v55, %v1997_v61 }
 0xb58   :  { %4636 = vrsqrt.f32 %v1732_v47  ;;  %v2002_v47 = vld [vmem:[#allocation24 + $0x68] sm:$0xff] }
 0xb59   :  { %4638 = vrsqrt.f32 %v1731_v33  ;;  %v2004_v33 = vld [vmem:[#allocation24 + $0x78] sm:$0xff] }
 0xb62   :  { %v4637_v14 = vpop.eup %4636 }
 0xb63   :  { %v4639_v56 = vpop.eup %4638  ;;  %v1736_v5 = vmul.f32 %v4637_v14, %v1720_v11  ;;  %v4194_v11 = vpack.c.bf16 %v1992_v9, %v1990_v7  ;;  %v4206_v14 = vpack.c.bf16 %v2004_v33, %v2002_v47 }
 0xb64   :  { %v1735_v36 = vmul.f32 %v4639_v56, %v1719_v12  ;;  %v1991_v12 = vld [vmem:[#allocation24 + $0x10] sm:$0xff] }
 0xb65   :  { %v1744_v40 = vmul.f32 %v3392_v34, %v1736_v5  ;;  %v4196_v59 = vpack.c.bf16 %v1991_v12, %v1989_v10  ;;  %4195 = vmatprep.subr.bf16.mxu1 %v4194_v11  ;;  %v2003_v56 = vld [vmem:[#allocation24 + $0x70] sm:$0xff] }
 0xb66   :  { %v1743_v19 = vmul.f32 %v3392_v34, %v1735_v36  ;;  %v2001_v34 = vld [vmem:[#allocation24 + $0x60] sm:$0xff] }
 0xb67   :  { %v1752_v21 = vadd.f32 %v3393_v18, %v1744_v40  ;;  %4197 = vmatpush1.bf16.msra.mxu1 %v4196_v59  ;;  %v4208_v5 = vpack.c.bf16 %v2003_v56, %v2001_v34 }
 0xb68   :  { %v1751_v42 = vadd.f32 %v3393_v18, %v1743_v19  ;;  %4199 = vmatprep.subr.bf16.mxu1 %v4198_v23 }
 0xb6a   :  { %3844 = vmatprep.mubr.msk.f32.mxu0 %vm816_vm4, %v1751_v42 }
 0xb6b   :  { %3845 = vmatmul.mubr.msk.f32.vlgmr.msra.gmra.mrb[24].mxu0 %vm816_vm4, %v1752_v21  ;;  %4201 = vmatpush1.bf16.msra.mxu1 %v4200_v32 }
 0xb6c   :  { %4189 = vmatpush3.bf16.msra.mxu0 %v4186_v30  ;;  %v2000_v30 = vld [vmem:[#allocation24 + $0x58] sm:$0xff] }
 0xb6d   :  { %4191 = vmatprep.subr.bf16.mxu0 %v4190_v41  ;;  %v4202_v13 = vpack.c.bf16 %v2000_v30, %v1998_v46 }
 0xb6f   :  { %4203 = vmatprep.subr.bf16.mxu1 %v4202_v13 }
 0xb70   :  { %4193 = vmatpush3.bf16.msra.mxu0 %v4190_v41  ;;  %4205 = vmatpush1.bf16.msra.mxu1 %v4204_v4  ;;  %v3400_v41 = vld [vmem:[#allocation22] ss:$0 sm:$0xff] }
 0xb71   :  { %4207 = vmatprep.subr.bf16.mxu1 %v4206_v14 }
 0xb74   :  { %4209 = vmatpush1.bf16.msra.mxu1 %v4208_v5 }
 0xc3e   :  { %v3846_v54 = vpop.f32.mrb[24].mxu0 }
 0xc3f   :  { %v1846_v31 = vadd.f32 %v3846_v54, %v3394_v25  ;;  %v1840_v27 = vpop.f32.mrb[25].mxu0 }
 0xc40   :  { %v1841_v43 = vadd.f32 %v3394_v25, %v1840_v27 }
 0xc41   :  { %v1850_v49 = vmax.f32 %v1846_v31, 0.0  ;;  %v3401_v31 = vld [vmem:[%s6464_s0] ss:$0 sm:$0xff] }
 0xc42   :  { %v1849_v58 = vmax.f32 %v1841_v43, 0.0 }
 0xc44   :  { %3855 = vmatprep.mubr.msk.f32.mxu0 %vm594_vm2, %v1849_v58 }
 0xc45   :  { %3856 = vmatmul.mubr.msk.f32.vlgmr.msra.gmra.mrb[26].mxu0 %vm594_vm2, %v1850_v49 }
 0xd18   :  { %v3857_v0 = vpop.f32.mrb[26].mxu0 }
 0xd19   :  { %v1940_v1 = vadd.f32 %v3857_v0, %v3397_v37  ;;  %v1934_v52 = vpop.f32.mrb[27].mxu0 }
 0xd1a   :  { %v1935_v48 = vadd.f32 %v3397_v37, %v1934_v52  ;;  %v2005_v37 = vld [vmem:[#allocation25] sm:$0x3] }
 0xd1b   :  { %v1944_v3 = vadd.f32 %v1940_v1, %v1752_v21  ;;  %v2010_v0 = vrot.slane %v2005_v37, %v808_v63 }
 0xd1c   :  { %v1943_v50 = vadd.f32 %v1935_v48, %v1751_v42 }
 0xd1d   :  { %v1950_v53 = vsel %vm816_vm4, %v1944_v3, 0.0 }
 0xd1e   :  { %1951 = vadd.xlane.f32.xlu1 %v1950_v53  ;;  %v1947_v6 = vsel %vm816_vm4, %v1943_v50, 0.0 }
 0xd1f   :  { %1948 = vadd.xlane.f32.xlu0 %v1947_v6 }
 0xdab   :  { %v1952_v35 = vpop.xlane.xlu1 %1951 }
 0xdac   :  { %v1954_v38 = vmul.f32 0.015625, %v1952_v35  ;;  %v1949_v8 = vpop.xlane.xlu0 %1948 }
 0xdad   :  { %v1953_v57 = vmul.f32 0.015625, %v1949_v8 }
 0xdae   :  { %v1956_v15 = vsub.f32 %v1944_v3, %v1954_v38  ;;  %v2014_v3 = vrot.slane %v2005_v37, %v812_v2 }
 0xdaf   :  { %v1955_v16 = vsub.f32 %v1943_v50, %v1953_v57 }
 0xdb0   :  { %v1958_v17 = vmul.f32 %v1956_v15, %v1956_v15 }
 0xdb1   :  { %v1957_v24 = vmul.f32 %v1955_v16, %v1955_v16 }
 0xdb2   :  { %v1962_v22 = vsel %vm816_vm4, %v1958_v17, 0.0 }
 0xdb3   :  { %1963 = vadd.xlane.f32.xlu1 %v1962_v22  ;;  %v1959_v28 = vsel %vm816_vm4, %v1957_v24, 0.0 }
 0xdb4   :  { %1960 = vadd.xlane.f32.xlu0 %v1959_v28 }
 0xe40   :  { %v1964_v36 = vpop.xlane.xlu1 %1963 }
 0xe41   :  { %v1966_v18 = vmul.f32 0.015625, %v1964_v36  ;;  %v1961_v40 = vpop.xlane.xlu0 %1960 }
 0xe42   :  { %v1965_v19 = vmul.f32 0.015625, %v1961_v40 }
 0xe43   :  { %v1968_v42 = vadd.f32 1e-05, %v1966_v18 }
 0xe44   :  { %v1967_v21 = vadd.f32 1e-05, %v1965_v19 }
 0xe45   :  { %4640 = vrsqrt.f32 %v1968_v42 }
 0xe46   :  { %4642 = vrsqrt.f32 %v1967_v21 }
 0xe4f   :  { %v4641_v44 = vpop.eup %4640 }
 0xe50   :  { %v4643_v45 = vpop.eup %4642  ;;  %v1972_v54 = vmul.f32 %v4641_v44, %v1956_v15 }
 0xe51   :  { %v1971_v25 = vmul.f32 %v4643_v45, %v1955_v16 }
 0xe52   :  { %v1980_v58 = vmul.f32 %v3400_v41, %v1972_v54 }
 0xe53   :  { %v1979_v27 = vmul.f32 %v3400_v41, %v1971_v25 }
 0xe54   :  { %v6037_v49 = vadd.f32 %v3401_v31, %v1980_v58 }
 0xe55   :  { %v6032_v43 = vadd.f32 %v3401_v31, %v1979_v27 }
 0xe57   :  { %3402 = vmatmul.mubr.msk.f32.vlgmr.msra.gmra.mrb[20].mxu1 %vm816_vm4, %v6032_v43 }
 0xe58   :  { %2093 = vmatprep.mubr.f32.mxu1 %v5308_v51 }
 0xe5b   :  { %3403 = vmatmul.mubr.msk.f32.gmra.mrb[22].mxu1 %vm816_vm4, %v6037_v49 }
 0xf2a   :  { %v2089_v1 = vpop.f32.mrb[20].mxu1 }
 0xf2b   :  { %v2090_v52 = vadd.f32 %v2089_v1, %v2010_v0  ;;  %v2091_v48 = vpop.f32.mrb[21].mxu1 }
 0xf2c   :  { %v2092_v6 = vadd.f32 %v2091_v48, %v2014_v3 }
 0xf2d   :  { %2102 = vrot.lane.b32.xlu0 %v2090_v52, %s5310_s10  ;;  %3890 = vmatprep.mubr.msk.f32.mxu0 %vm504_vm0, %v2090_v52 }
 0xf2e   :  { %v2095_v51 = vpop.f32.mrb[22].mxu1 }
 0xf2f   :  { %v6047_v50 = vadd.f32 %v2095_v51, %v2010_v0  ;;  %v2097_v53 = vpop.f32.mrb[23].mxu1 }
 0xf30   :  { %v2098_v7 = vadd.f32 %v2097_v53, %v2014_v3 }
 0xf31   :  { %2104 = vrot.lane.b32.xlu1 %v6047_v50, %s5310_s10  ;;  %2108 = vrot.lane.b32.xlu0 %v6047_v50, %s5309_s2  ;;  %v4497_v62 = vpack.i.bf16 %v6047_v50, %v2090_v52 }
 0xf32   :  { %v4258_v63 = vpack.c.bf16 %v2098_v7, %v2092_v6  ;;  %v6053_v9 = vpack.i.bf16 %v2098_v7, %v2092_v6 }
 0xf34   :  { %4259 = vmatprep.subr.bf16.mxu1 %v4258_v63 }
 0xf35   :  { %4261 = vmatpush3.bf16.msra.mxu1 %v4258_v63  ;;  %2106 = vrot.lane.b32.xlu1 %v2090_v52, %s5309_s2 }
 0xf36   :  { %2112 = vrot.lane.b32.xlu0 %v6047_v50, %s5311_s17 }
 0xf39   :  { %2110 = vrot.lane.b32.xlu1 %v2090_v52, %s5311_s17 }
 0xf3a   :  { %2116 = vrot.lane.b32.xlu0 %v6047_v50, %s5312_s29 }
 0xf3d   :  { %2114 = vrot.lane.b32.xlu1 %v2090_v52, %s5312_s29 }
 0xf3e   :  { %2120 = vrot.lane.b32.xlu0 %v6047_v50, %s5313_s8 }
 0xf41   :  { %2118 = vrot.lane.b32.xlu1 %v2090_v52, %s5313_s8 }
 0xf42   :  { %2124 = vrot.lane.b32.xlu0 %v6047_v50, %s5314_s24 }
 0xf45   :  { %2122 = vrot.lane.b32.xlu1 %v2090_v52, %s5314_s24 }
 0xf46   :  { %2128 = vrot.lane.b32.xlu0 %v6047_v50, %s5315_s11 }
 0xf49   :  { %2126 = vrot.lane.b32.xlu1 %v2090_v52, %s5315_s11 }
 0xf4d   :  { %4498 = vrot.lane.b32.xlu1 %v4497_v62, %s5316_s6 }
 0xf9f   :  { %v6073_v2 = vpop.permute.xlu0 %2102 }
 0xfa3   :  { %v6075_v10 = vpop.permute.xlu1 %2104  ;;  %v6077_v11 = vpop.permute.xlu0 %2108 }
 0xfa4   :  { %v4502_v12 = vpack.i.bf16 %v6075_v10, %v6073_v2 }
 0xfa6   :  { %4503 = vrot.lane.b32.xlu0 %v4502_v12, %s5316_s6 }
 0xfa7   :  { %v6082_v20 = vpop.permute.xlu1 %2106 }
 0xfa8   :  { %v4507_v60 = vpack.i.bf16 %v6077_v11, %v6082_v20  ;;  %v6086_v59 = vpop.permute.xlu0 %2112 }
 0xfaa   :  { %4508 = vrot.lane.b32.xlu1 %v4507_v60, %s5316_s6 }
 0xfab   :  { %v6089_v23 = vpop.permute.xlu1 %2110 }
 0xfac   :  { %v4512_v26 = vpack.i.bf16 %v6086_v59, %v6089_v23  ;;  %v6093_v29 = vpop.permute.xlu0 %2116 }
 0xfae   :  { %4513 = vrot.lane.b32.xlu0 %v4512_v26, %s5316_s6 }
 0xfaf   :  { %v6096_v32 = vpop.permute.xlu1 %2114 }
 0xfb0   :  { %v4517_v35 = vpack.i.bf16 %v6093_v29, %v6096_v32  ;;  %v6100_v38 = vpop.permute.xlu0 %2120 }
 0xfb2   :  { %4518 = vrot.lane.b32.xlu1 %v4517_v35, %s5316_s6 }
 0xfb3   :  { %v6103_v8 = vpop.permute.xlu1 %2118 }
 0xfb4   :  { %v4522_v57 = vpack.i.bf16 %v6100_v38, %v6103_v8  ;;  %v6107_v15 = vpop.permute.xlu0 %2124 }
 0xfb6   :  { %4523 = vrot.lane.b32.xlu0 %v4522_v57, %s5316_s6 }
 0xfb7   :  { %v6110_v16 = vpop.permute.xlu1 %2122 }
 0xfb8   :  { %v4527_v17 = vpack.i.bf16 %v6107_v15, %v6110_v16  ;;  %v6115_v24 = vpop.permute.xlu0 %2128 }
 0xfba   :  { %4528 = vrot.lane.b32.xlu1 %v4527_v17, %s5316_s6 }
 0xfbb   :  { %v6117_v22 = vpop.permute.xlu1 %2126 }
 0xfbc   :  { %v4532_v28 = vpack.i.bf16 %v6115_v24, %v6117_v22 }
 0xfbe   :  { %4543 = vrot.lane.b32.xlu1 %v6053_v9, %s5309_s2  ;;  %4533 = vrot.lane.b32.xlu0 %v4532_v28, %s5316_s6 }
 0xfbf   :  { %v4499_v46 = vpop.permute.xlu1 %4498 }
 0xfc0   :  { %v4501_v30 = vunpack.i.h.bf16 %v4499_v46  ;;  %v4500_v13 = vunpack.i.l.bf16 %v4499_v46 }
 0xfc2   :  { %v4210_v61 = vpack.c.bf16 %v4501_v30, %v4500_v13  ;;  %4553 = vrot.lane.b32.xlu1 %v6053_v9, %s5312_s29  ;;  %4538 = vrot.lane.b32.xlu0 %v6053_v9, %s5310_s10 }
 0xfc4   :  { %4212 = vmatprep.subr.msk.bf16.mxu0 %vm5745_vm6, %v4210_v61 }
 0xfc5   :  { %4215 = vmatpush3.bf16.xpose.msk.msra.mxu0 %vm5745_vm6, %v4210_v61 }
 0xfc6   :  { %4548 = vrot.lane.b32.xlu0 %v6053_v9, %s5311_s17 }
0x1018   :  { %v4504_v55 = vpop.permute.xlu0 %4503 }
0x1019   :  { %v4506_v4 = vunpack.i.h.bf16 %v4504_v55  ;;  %v4505_v47 = vunpack.i.l.bf16 %v4504_v55 }
0x101b   :  { %v4216_v33 = vpack.c.bf16 %v4506_v4, %v4505_v47 }
0x101c   :  { %v4509_v14 = vpop.permute.xlu1 %4508 }
0x101d   :  { %v4511_v34 = vunpack.i.h.bf16 %v4509_v14  ;;  %v4510_v56 = vunpack.i.l.bf16 %v4509_v14  ;;  %4218 = vmatprep.subr.msk.bf16.mxu0 %vm5745_vm6, %v4216_v33 }
0x101e   :  { %4221 = vmatpush3.bf16.xpose.msk.msra.mxu0 %vm5745_vm6, %v4216_v33  ;;  %v4728_v33 = vld [vmem:[%s6461_s14 + $0x28] sm:$0xff] }
0x101f   :  { %v4222_v5 = vpack.c.bf16 %v4511_v34, %v4510_v56  ;;  %v4729_v34 = vld [vmem:[%s6461_s14 + $0x20] sm:$0xff] }
0x1020   :  { %v4514_v36 = vpop.permute.xlu0 %4513 }
0x1021   :  { %v4516_v18 = vunpack.i.h.bf16 %v4514_v36  ;;  %v4515_v40 = vunpack.i.l.bf16 %v4514_v36  ;;  %4224 = vmatprep.subr.msk.bf16.mxu0 %vm5745_vm6, %v4222_v5 }
0x1023   :  { %v4228_v19 = vpack.c.bf16 %v4516_v18, %v4515_v40 }
0x1024   :  { %v4519_v42 = vpop.permute.xlu1 %4518 }
0x1025   :  { %v4521_v21 = vunpack.i.h.bf16 %v4519_v42  ;;  %v4520_v44 = vunpack.i.l.bf16 %v4519_v42 }
0x1026   :  { %4227 = vmatpush3.bf16.xpose.msk.msra.mxu0 %vm5745_vm6, %v4222_v5 }
0x1027   :  { %4230 = vmatprep.subr.msk.bf16.mxu0 %vm5745_vm6, %v4228_v19  ;;  %v4234_v25 = vpack.c.bf16 %v4521_v21, %v4520_v44  ;;  %v4731_v21 = vld [vmem:[%s6461_s14 + $0x30] sm:$0xff] }
0x1028   :  { %v4524_v45 = vpop.permute.xlu0 %4523 }
0x1029   :  { %v4526_v54 = vunpack.i.h.bf16 %v4524_v45  ;;  %v4525_v31 = vunpack.i.l.bf16 %v4524_v45 }
0x102b   :  { %v4240_v37 = vpack.c.bf16 %v4526_v54, %v4525_v31  ;;  %v4732_v31 = vld [vmem:[%s6461_s14 + $0x48] sm:$0xff] }
0x102c   :  { %v4529_v41 = vpop.permute.xlu1 %4528 }
0x102d   :  { %v4531_v53 = vunpack.i.h.bf16 %v4529_v41  ;;  %v4530_v7 = vunpack.i.l.bf16 %v4529_v41 }
0x102e   :  { %4233 = vmatpush3.bf16.xpose.msk.msra.mxu0 %vm5745_vm6, %v4228_v19  ;;  %v4730_v19 = vld [vmem:[%s6461_s14 + $0x38] sm:$0xff] }
0x102f   :  { %4236 = vmatprep.subr.msk.bf16.mxu0 %vm5745_vm6, %v4234_v25  ;;  %v4246_v26 = vpack.c.bf16 %v4531_v53, %v4530_v7  ;;  %v4735_v53 = vld [vmem:[%s6461_s14 + $0x50] sm:$0xff] }
0x1030   :  { %v4534_v27 = vpop.permute.xlu0 %4533  ;;  %v4544_v58 = vpop.permute.xlu1 %4543 }
0x1031   :  { %v4546_v1 = vunpack.i.h.bf16 %v4544_v58  ;;  %v4545_v52 = vunpack.i.l.bf16 %v4544_v58  ;;  %v4536_v28 = vunpack.i.h.bf16 %v4534_v27  ;;  %v4535_v46 = vunpack.i.l.bf16 %v4534_v27  ;;  %v4733_v58 = vld [vmem:[%s6461_s14 + $0x40] sm:$0xff] }
0x1033   :  { %v4266_v63 = vpack.c.bf16 %v4546_v1, %v4545_v52  ;;  %v4252_v13 = vpack.c.bf16 %v4536_v28, %v4535_v46 }
0x1034   :  { %v4539_v0 = vpop.permute.xlu0 %4538  ;;  %v4554_v60 = vpop.permute.xlu1 %4553 }
0x1035   :  { %v4541_v48 = vunpack.i.h.bf16 %v4539_v0  ;;  %v4540_v3 = vunpack.i.l.bf16 %v4539_v0  ;;  %v4556_v35 = vunpack.i.h.bf16 %v4554_v60  ;;  %v4555_v57 = vunpack.i.l.bf16 %v4554_v60  ;;  %v4736_v60 = vld [vmem:[%s6461_s14 + $0x68] sm:$0xff] }
0x1036   :  { %4239 = vmatpush3.bf16.xpose.msk.msra.mxu0 %vm5745_vm6, %v4234_v25 }
0x1037   :  { %v4262_v51 = vpack.c.bf16 %v4541_v48, %v4540_v3  ;;  %4242 = vmatprep.subr.msk.bf16.mxu0 %vm5745_vm6, %v4240_v37  ;;  %v4274_v30 = vpack.c.bf16 %v4556_v35, %v4555_v57  ;;  %v4734_v3 = vld [vmem:[%s6461_s14 + $0x58] sm:$0xff]  ;;  %v4737_v35 = vld [vmem:[%s6461_s14 + $0x60] sm:$0xff] }
0x1038   :  { %v4549_v6 = vpop.permute.xlu0 %4548 }
0x1039   :  { %v4551_v62 = vunpack.i.h.bf16 %v4549_v6  ;;  %v4550_v12 = vunpack.i.l.bf16 %v4549_v6  ;;  %4263 = vmatprep.subr.bf16.mxu1 %v4262_v51 }
0x103a   :  { %4265 = vmatpush3.bf16.msra.mxu1 %v4262_v51 }
0x103b   :  { %4267 = vmatprep.subr.bf16.mxu1 %v4266_v63  ;;  %v4270_v17 = vpack.c.bf16 %v4551_v62, %v4550_v12 }
0x103e   :  { %4245 = vmatpush3.bf16.xpose.msk.msra.mxu0 %vm5745_vm6, %v4240_v37  ;;  %4269 = vmatpush3.bf16.msra.mxu1 %v4266_v63 }
0x103f   :  { %4248 = vmatprep.subr.msk.bf16.mxu0 %vm5745_vm6, %v4246_v26  ;;  %4271 = vmatprep.subr.bf16.mxu1 %v4270_v17 }
0x1042   :  { %4273 = vmatpush3.bf16.msra.mxu1 %v4270_v17 }
0x1043   :  { %4275 = vmatprep.subr.bf16.mxu1 %v4274_v30 }
0x1046   :  { %4251 = vmatpush3.bf16.xpose.msk.msra.mxu0 %vm5745_vm6, %v4246_v26  ;;  %4277 = vmatpush3.bf16.msra.mxu1 %v4274_v30 }
0x1047   :  { %4254 = vmatprep.subr.msk.bf16.mxu0 %vm5745_vm6, %v4252_v13 }
0x104e   :  { %4257 = vmatpush3.bf16.xpose.msk.msra.mxu0 %vm5745_vm6, %v4252_v13  ;;  %v4738_v13 = vld [vmem:[%s6461_s14 + $0x78] sm:$0xff] }
0x1055   :  { %3891 = vmatmul.mubr.msk.f32.vlgmr.msra.gmra.mrb[28].mxu0 %vm504_vm0, %v6047_v50 }
0x1056   :  { %3893 = vmatprep.mubr.msk.f32.mxu0 %vm504_vm0, %v6073_v2 }
0x1059   :  { %3894 = vmatmul.mubr.msk.f32.gmra.mrb[30].mxu0 %vm504_vm0, %v6075_v10 }
0x105a   :  { %3896 = vmatprep.mubr.msk.f32.mxu0 %vm504_vm0, %v6082_v20 }
0x105d   :  { %3897 = vmatmul.mubr.msk.f32.gmra.mrb[32].mxu0 %vm504_vm0, %v6077_v11  ;;  %v4724_v11 = vld [vmem:[%s6461_s14 + $0x8] sm:$0xff] }
0x105e   :  { %3899 = vmatprep.mubr.msk.f32.mxu0 %vm504_vm0, %v6089_v23 }
0x1061   :  { %3900 = vmatmul.mubr.msk.f32.gmra.mrb[34].mxu0 %vm504_vm0, %v6086_v59  ;;  %v4725_v59 = vld [vmem:[%s6461_s14] sm:$0xff] }
0x1062   :  { %3902 = vmatprep.mubr.msk.f32.mxu0 %vm504_vm0, %v6096_v32 }
0x1065   :  { %3903 = vmatmul.mubr.msk.f32.gmra.mrb[36].mxu0 %vm504_vm0, %v6093_v29 }
0x1066   :  { %3905 = vmatprep.mubr.msk.f32.mxu0 %vm504_vm0, %v6103_v8 }
0x1069   :  { %3906 = vmatmul.mubr.msk.f32.gmra.mrb[38].mxu0 %vm504_vm0, %v6100_v38 }
0x106a   :  { %3908 = vmatprep.mubr.msk.f32.mxu0 %vm504_vm0, %v6110_v16 }
0x106d   :  { %3909 = vmatmul.mubr.msk.f32.gmra.mrb[40].mxu0 %vm504_vm0, %v6107_v15  ;;  %v4726_v15 = vld [vmem:[%s6461_s14 + $0x18] sm:$0xff] }
0x106e   :  { %3911 = vmatprep.mubr.msk.f32.mxu0 %vm504_vm0, %v6117_v22 }
0x1071   :  { %3912 = vmatmul.mubr.msk.f32.gmra.mrb[42].mxu0 %vm504_vm0, %v6115_v24  ;;  %v4727_v24 = vld [vmem:[%s6461_s14 + $0x10] sm:$0xff] }
0x1128   :  { %v3892_v39 = vpop.f32.mrb[28].mxu0 }
0x1129   :  { %v2416_v50 = vmul.f32 0.35355338, %v3892_v39  ;;  %v2336_v2 = vpop.f32.mrb[29].mxu0 }
0x112a   :  { %v2415_v10 = vmul.f32 0.35355338, %v2336_v2 }
0x112b   :  { %v6193_v20 = vadd.f32 %v4724_v11, %v2416_v50  ;;  %v4739_v50 = vld [vmem:[%s6461_s14 + $0x70] sm:$0xff] }
0x112c   :  { %v6196_v23 = vadd.f32 %v4725_v59, %v2415_v10  ;;  %v3895_v29 = vpop.f32.mrb[30].mxu0 }
0x112d   :  { %v2418_v32 = vmul.f32 0.35355338, %v3895_v29  ;;  %2449 = vmax.xlane.f32.xlu0 %v6193_v20  ;;  %v2346_v38 = vpop.f32.mrb[31].mxu0 }
0x112e   :  { %v2417_v8 = vmul.f32 0.35355338, %v2346_v38  ;;  %2447 = vmax.xlane.f32.xlu1 %v6196_v23 }
0x112f   :  { %v6201_v16 = vadd.f32 %v4726_v15, %v2418_v32 }
0x1130   :  { %v6204_v22 = vadd.f32 %v4727_v24, %v2417_v8  ;;  %v3898_v61 = vpop.f32.mrb[32].mxu0 }
0x1131   :  { %v2420_v55 = vmul.f32 0.35355338, %v3898_v61  ;;  %v2356_v4 = vpop.f32.mrb[33].mxu0 }
0x1132   :  { %v2419_v47 = vmul.f32 0.35355338, %v2356_v4  ;;  %2453 = vmax.xlane.f32.xlu1 %v6201_v16  ;;  %2451 = vmax.xlane.f32.xlu0 %v6204_v22 }
0x1133   :  { %v6209_v14 = vadd.f32 %v4728_v33, %v2420_v55 }
0x1134   :  { %v6212_v56 = vadd.f32 %v4729_v34, %v2419_v47  ;;  %v3901_v5 = vpop.f32.mrb[34].mxu0 }
0x1135   :  { %v2422_v36 = vmul.f32 0.35355338, %v3901_v5  ;;  %v2366_v18 = vpop.f32.mrb[35].mxu0 }
0x1136   :  { %v2421_v40 = vmul.f32 0.35355338, %v2366_v18  ;;  %2457 = vmax.xlane.f32.xlu1 %v6209_v14  ;;  %2455 = vmax.xlane.f32.xlu0 %v6212_v56 }
0x1137   :  { %v6217_v42 = vadd.f32 %v4730_v19, %v2422_v36 }
0x1138   :  { %v6220_v44 = vadd.f32 %v4731_v21, %v2421_v40  ;;  %v3904_v45 = vpop.f32.mrb[36].mxu0 }
0x1139   :  { %v2424_v41 = vmul.f32 0.35355338, %v3904_v45  ;;  %v2376_v25 = vpop.f32.mrb[37].mxu0 }
0x113a   :  { %v2423_v54 = vmul.f32 0.35355338, %v2376_v25  ;;  %2461 = vmax.xlane.f32.xlu1 %v6217_v42  ;;  %2459 = vmax.xlane.f32.xlu0 %v6220_v44 }
0x113b   :  { %v6225_v27 = vadd.f32 %v4732_v31, %v2424_v41 }
0x113c   :  { %v6228_v37 = vadd.f32 %v4733_v58, %v2423_v54  ;;  %v3907_v0 = vpop.f32.mrb[38].mxu0 }
0x113d   :  { %v2426_v1 = vmul.f32 0.35355338, %v3907_v0  ;;  %v2386_v52 = vpop.f32.mrb[39].mxu0 }
0x113e   :  { %v2425_v48 = vmul.f32 0.35355338, %v2386_v52  ;;  %2465 = vmax.xlane.f32.xlu1 %v6225_v27  ;;  %2463 = vmax.xlane.f32.xlu0 %v6228_v37 }
0x113f   :  { %v6233_v51 = vadd.f32 %v4734_v3, %v2426_v1 }
0x1140   :  { %v6236_v6 = vadd.f32 %v4735_v53, %v2425_v48  ;;  %v3910_v7 = vpop.f32.mrb[40].mxu0 }
0x1141   :  { %v2428_v63 = vmul.f32 0.35355338, %v3910_v7  ;;  %v2396_v62 = vpop.f32.mrb[41].mxu0 }
0x1142   :  { %v2427_v12 = vmul.f32 0.35355338, %v2396_v62  ;;  %2469 = vmax.xlane.f32.xlu1 %v6233_v51  ;;  %2467 = vmax.xlane.f32.xlu0 %v6236_v6 }
0x1143   :  { %v6241_v26 = vadd.f32 %v4736_v60, %v2428_v63 }
0x1144   :  { %v6244_v57 = vadd.f32 %v4737_v35, %v2427_v12  ;;  %v3913_v17 = vpop.f32.mrb[42].mxu0 }
0x1145   :  { %v2430_v28 = vmul.f32 0.35355338, %v3913_v17  ;;  %v2406_v46 = vpop.f32.mrb[43].mxu0 }
0x1146   :  { %v2429_v30 = vmul.f32 0.35355338, %v2406_v46  ;;  %2473 = vmax.xlane.f32.xlu1 %v6241_v26  ;;  %2471 = vmax.xlane.f32.xlu0 %v6244_v57 }
0x1147   :  { %v6249_v39 = vadd.f32 %v4738_v13, %v2430_v28 }
0x1148   :  { %v6252_v2 = vadd.f32 %v4739_v50, %v2429_v30 }
0x114a   :  { %2477 = vmax.xlane.f32.xlu1 %v6249_v39  ;;  %2475 = vmax.xlane.f32.xlu0 %v6252_v2 }
0x1160   :  { %4558 = vrot.lane.b32.xlu0 %v6053_v9, %s5313_s8 }
0x11ba   :  { %v2450_v10 = vpop.xlane.xlu0 %2449 }
0x11bb   :  { %v2480_v11 = vsub.f32 %v6193_v20, %v2450_v10  ;;  %v2448_v59 = vpop.xlane.xlu1 %2447 }
0x11bc   :  { %v2479_v29 = vsub.f32 %v6196_v23, %v2448_v59 }
0x11bd   :  { %v2497_v32 = vmul.f32 1.442695, %v2480_v11 }
0x11be   :  { %v2495_v38 = vmul.f32 1.442695, %v2479_v29 }
0x11bf   :  { %4644 = vpow2.f32 %v2497_v32  ;;  %v2454_v8 = vpop.xlane.xlu1 %2453  ;;  %v2452_v15 = vpop.xlane.xlu0 %2451 }
0x11c0   :  { %v2482_v24 = vsub.f32 %v6201_v16, %v2454_v8  ;;  %v2481_v61 = vsub.f32 %v6204_v22, %v2452_v15  ;;  %4646 = vpow2.f32 %v2495_v38 }
0x11c2   :  { %v2499_v55 = vmul.f32 1.442695, %v2481_v61  ;;  %v2501_v4 = vmul.f32 1.442695, %v2482_v24 }
0x11c3   :  { %v2458_v47 = vpop.xlane.xlu1 %2457  ;;  %v2456_v33 = vpop.xlane.xlu0 %2455 }
0x11c4   :  { %v2484_v34 = vsub.f32 %v6209_v14, %v2458_v47  ;;  %4648 = vpow2.f32 %v2499_v55  ;;  %v2483_v23 = vsub.f32 %v6212_v56, %v2456_v33 }
0x11c5   :  { %4650 = vpow2.f32 %v2501_v4 }
0x11c6   :  { %v2505_v20 = vmul.f32 1.442695, %v2484_v34  ;;  %v2503_v22 = vmul.f32 1.442695, %v2483_v23 }
0x11c7   :  { %v2460_v5 = vpop.xlane.xlu0 %2459  ;;  %v2462_v36 = vpop.xlane.xlu1 %2461 }
0x11c8   :  { %v2485_v18 = vsub.f32 %v6220_v44, %v2460_v5  ;;  %4652 = vpow2.f32 %v2505_v20  ;;  %v2486_v19 = vsub.f32 %v6217_v42, %v2462_v36 }
0x11c9   :  { %v6265_v40 = vpop.eup %4644 }
0x11ca   :  { %v2507_v16 = vmul.f32 1.442695, %v2485_v18  ;;  %2529 = vadd.xlane.f32.xlu1 %v6265_v40  ;;  %v6269_v14 = vpop.eup %4646  ;;  %v2509_v45 = vmul.f32 1.442695, %v2486_v19 }
0x11cb   :  { %v2464_v21 = vpop.xlane.xlu0 %2463  ;;  %v2466_v53 = vpop.xlane.xlu1 %2465 }
0x11cc   :  { %4654 = vpow2.f32 %v2507_v16  ;;  %v2488_v35 = vsub.f32 %v6225_v27, %v2466_v53  ;;  %v2487_v13 = vsub.f32 %v6228_v37, %v2464_v21 }
0x11cd   :  { %4656 = vpow2.f32 %v2503_v22 }
0x11ce   :  { %2527 = vadd.xlane.f32.xlu1 %v6269_v14  ;;  %v6272_v56 = vpop.eup %4648  ;;  %4658 = vpow2.f32 %v2509_v45  ;;  %v2513_v30 = vmul.f32 1.442695, %v2488_v35 }
0x11cf   :  { %v2468_v44 = vpop.xlane.xlu0 %2467  ;;  %2531 = vadd.xlane.f32.xlu0 %v6272_v56  ;;  %v6275_v41 = vpop.eup %4650 }
0x11d0   :  { %v2470_v7 = vpop.xlane.xlu1 %2469  ;;  %v2489_v10 = vsub.f32 %v6236_v6, %v2468_v44 }
0x11d1   :  { %v2490_v63 = vsub.f32 %v6233_v51, %v2470_v7  ;;  %v2511_v51 = vmul.f32 1.442695, %v2487_v13 }
0x11d2   :  { %2533 = vadd.xlane.f32.xlu1 %v6275_v41  ;;  %v6278_v42 = vpop.eup %4652  ;;  %v2515_v27 = vmul.f32 1.442695, %v2489_v10 }
0x11d3   :  { %v2472_v25 = vpop.xlane.xlu0 %2471  ;;  %v2517_v12 = vmul.f32 1.442695, %v2490_v63 }
0x11d4   :  { %v2474_v62 = vpop.xlane.xlu1 %2473 }
0x11d5   :  { %v2492_v60 = vsub.f32 %v6241_v26, %v2474_v62  ;;  %4660 = vpow2.f32 %v2517_v12 }
0x11d6   :  { %2537 = vadd.xlane.f32.xlu1 %v6278_v42  ;;  %v6281_v54 = vpop.eup %4654 }
0x11d7   :  { %v2476_v31 = vpop.xlane.xlu0 %2475  ;;  %2539 = vadd.xlane.f32.xlu0 %v6281_v54  ;;  %v6284_v58 = vpop.eup %4656  ;;  %v2521_v17 = vmul.f32 1.442695, %v2492_v60 }
0x11d8   :  { %v6287_v48 = vpop.eup %4658  ;;  %v2493_v28 = vsub.f32 %v6252_v2, %v2476_v31  ;;  %v2478_v46 = vpop.xlane.xlu1 %2477  ;;  %v2491_v2 = vsub.f32 %v6244_v57, %v2472_v25 }
0x11d9   :  { %4662 = vpow2.f32 %v2521_v17 }
0x11da   :  { %2535 = vadd.xlane.f32.xlu1 %v6284_v58  ;;  %v2523_v50 = vmul.f32 1.442695, %v2493_v28  ;;  %4664 = vpow2.f32 %v2513_v30 }
0x11db   :  { %v4559_v0 = vpop.permute.xlu0 %4558 }
0x11dc   :  { %v4561_v1 = vunpack.i.h.bf16 %v4559_v0  ;;  %v4560_v52 = vunpack.i.l.bf16 %v4559_v0  ;;  %4666 = vpow2.f32 %v2523_v50 }
0x11dd   :  { %4668 = vpow2.f32 %v2511_v51 }
0x11de   :  { %v4278_v3 = vpack.c.bf16 %v4561_v1, %v4560_v52  ;;  %2541 = vadd.xlane.f32.xlu1 %v6287_v48 }
0x11df   :  { %v6301_v26 = vpop.eup %4660 }
0x11e0   :  { %4279 = vmatprep.subr.bf16.mxu1 %v4278_v3 }
0x11e1   :  { %4281 = vmatpush3.bf16.msra.mxu1 %v4278_v3 }
0x11e3   :  { %v6305_v37 = vpop.eup %4662 }
0x11e4   :  { %v6308_v59 = vpop.eup %4664 }
0x11e6   :  { %v6311_v6 = vpop.eup %4666 }
0x11e7   :  { %v6314_v29 = vpop.eup %4668 }
0x11ed   :  { %4563 = vrot.lane.b32.xlu0 %v6053_v9, %s5314_s24 }
0x11ef   :  { %4568 = vrot.lane.b32.xlu1 %v6053_v9, %s5315_s11  ;;  %v2494_v9 = vsub.f32 %v6249_v39, %v2478_v46  ;;  %v2519_v39 = vmul.f32 1.442695, %v2491_v2 }
0x11f1   :  { %v2525_v11 = vmul.f32 1.442695, %v2494_v9 }
0x11f3   :  { %4670 = vpow2.f32 %v2525_v11 }
0x11f4   :  { %4672 = vpow2.f32 %v2515_v27 }
0x11f5   :  { %4674 = vpow2.f32 %v2519_v39 }
0x11fd   :  { %v6317_v57 = vpop.eup %4670 }
0x11fe   :  { %v6320_v32 = vpop.eup %4672 }
0x11ff   :  { %v6323_v38 = vpop.eup %4674 }
0x120c   :  { %2549 = vadd.xlane.f32.xlu0 %v6301_v26 }
0x1210   :  { %2553 = vadd.xlane.f32.xlu0 %v6305_v37 }
0x1213   :  { %2545 = vadd.xlane.f32.xlu1 %v6308_v59 }
0x1214   :  { %2555 = vadd.xlane.f32.xlu0 %v6311_v6 }
0x1217   :  { %2543 = vadd.xlane.f32.xlu1 %v6314_v29 }
0x1218   :  { %2557 = vadd.xlane.f32.xlu0 %v6317_v57 }
0x121b   :  { %2547 = vadd.xlane.f32.xlu1 %v6320_v32 }
0x121f   :  { %2551 = vadd.xlane.f32.xlu1 %v6323_v38 }
0x1257   :  { %v2530_v8 = vpop.xlane.xlu1 %2529 }
0x125b   :  { %v2528_v15 = vpop.xlane.xlu1 %2527 }
0x125c   :  { %4676 = vrcp.f32 %v2528_v15  ;;  %v2532_v61 = vpop.xlane.xlu0 %2531 }
0x125d   :  { %4678 = vrcp.f32 %v2530_v8 }
0x125e   :  { %4680 = vrcp.f32 %v2532_v61  ;;  %v2808_v61 = vld [vmem:[#allocation27 + $0x10] sm:$0xff] }
0x125f   :  { %v2534_v24 = vpop.xlane.xlu1 %2533 }
0x1260   :  { %4682 = vrcp.f32 %v2534_v24  ;;  %v2806_v24 = vld [vmem:[#allocation27] sm:$0xff] }
0x1263   :  { %v2538_v55 = vpop.xlane.xlu1 %2537 }
0x1264   :  { %v2540_v4 = vpop.xlane.xlu0 %2539 }
0x1266   :  { %v4677_v47 = vpop.eup %4676 }
0x1267   :  { %v2536_v33 = vpop.xlane.xlu1 %2535  ;;  %v2575_v34 = vmul.f32 %v4677_v47, %v6269_v14  ;;  %v4679_v45 = vpop.eup %4678  ;;  %v2811_v47 = vld [vmem:[#allocation27 + $0x28] sm:$0xff] }
0x1268   :  { %v4564_v20 = vpop.permute.xlu0 %4563  ;;  %4684 = vrcp.f32 %v2536_v33  ;;  %v4681_v14 = vpop.eup %4680  ;;  %v2576_v44 = vmul.f32 %v4679_v45, %v6265_v40 }
0x1269   :  { %3946 = vmatprep.mubr.f32.mxu1 %v2575_v34  ;;  %v4566_v23 = vunpack.i.h.bf16 %v4564_v20  ;;  %v4565_v5 = vunpack.i.l.bf16 %v4564_v20  ;;  %4686 = vrcp.f32 %v2538_v55  ;;  %v2577_v31 = vmul.f32 %v4681_v14, %v6272_v56  ;;  %v2809_v55 = vld [vmem:[#allocation27 + $0x18] sm:$0xff] }
0x126a   :  { %4688 = vrcp.f32 %v2540_v4  ;;  %v4683_v25 = vpop.eup %4682  ;;  %v2810_v4 = vld [vmem:[#allocation27 + $0x20] sm:$0xff] }
0x126b   :  { %v2542_v36 = vpop.xlane.xlu1 %2541  ;;  %v4282_v18 = vpack.c.bf16 %v4566_v23, %v4565_v5  ;;  %v2578_v1 = vmul.f32 %v4683_v25, %v6275_v41  ;;  %v4298_v34 = vpack.c.bf16 %v2811_v47, %v2810_v4  ;;  %v2812_v5 = vld [vmem:[#allocation27 + $0x30] sm:$0xff] }
0x126c   :  { %4690 = vrcp.f32 %v2542_v36  ;;  %v2813_v36 = vld [vmem:[#allocation27 + $0x38] sm:$0xff] }
0x126d   :  { %4283 = vmatprep.subr.bf16.mxu1 %v4282_v18 }
0x126e   :  { %4285 = vmatpush3.bf16.msra.mxu1 %v4282_v18  ;;  %v4302_v18 = vpack.c.bf16 %v2813_v36, %v2812_v5 }
0x126f   :  { %v4569_v16 = vpop.permute.xlu1 %4568 }
0x1270   :  { %v4571_v22 = vunpack.i.h.bf16 %v4569_v16  ;;  %v4570_v19 = vunpack.i.l.bf16 %v4569_v16 }
0x1272   :  { %v4286_v21 = vpack.c.bf16 %v4571_v22, %v4570_v19  ;;  %v4685_v0 = vpop.eup %4684 }
0x1273   :  { %v4687_v52 = vpop.eup %4686  ;;  %v2579_v3 = vmul.f32 %v4685_v0, %v6284_v58 }
0x1274   :  { %4287 = vmatprep.subr.bf16.mxu1 %v4286_v21  ;;  %v4689_v53 = vpop.eup %4688  ;;  %v2580_v7 = vmul.f32 %v4687_v52, %v6278_v42 }
0x1275   :  { %4289 = vmatpush3.bf16.msra.mxu1 %v4286_v21  ;;  %v2581_v62 = vmul.f32 %v4689_v53, %v6281_v54 }
0x1276   :  { %v4691_v63 = vpop.eup %4690 }
0x1277   :  { %v2582_v40 = vmul.f32 %v4691_v63, %v6287_v48 }
0x1278   :  { %3947 = vmatmul.mubr.f32.vlgmr.msra.gmra.mrb[24].mxu1 %v2576_v44 }
0x1279   :  { %3949 = vmatprep.mubr.f32.mxu1 %v2577_v31 }
0x127c   :  { %3950 = vmatmul.mubr.f32.gmra.mrb[26].mxu1 %v2578_v1 }
0x127d   :  { %3952 = vmatprep.mubr.f32.mxu1 %v2579_v3 }
0x1280   :  { %3953 = vmatmul.mubr.f32.gmra.mrb[28].mxu1 %v2580_v7 }
0x1281   :  { %3955 = vmatprep.mubr.f32.mxu1 %v2581_v62 }
0x1284   :  { %3956 = vmatmul.mubr.f32.gmra.mrb[30].mxu1 %v2582_v40 }
0x1299   :  { %v2550_v56 = vpop.xlane.xlu0 %2549 }
0x129d   :  { %v2554_v60 = vpop.xlane.xlu0 %2553 }
0x12a0   :  { %v2546_v12 = vpop.xlane.xlu1 %2545 }
0x12a1   :  { %4692 = vrcp.f32 %v2546_v12  ;;  %v2556_v58 = vpop.xlane.xlu0 %2555 }
0x12a4   :  { %v2544_v41 = vpop.xlane.xlu1 %2543 }
0x12a5   :  { %4694 = vrcp.f32 %v2544_v41  ;;  %v2558_v17 = vpop.xlane.xlu0 %2557 }
0x12a6   :  { %4696 = vrcp.f32 %v2550_v56 }
0x12a8   :  { %v2548_v35 = vpop.xlane.xlu1 %2547 }
0x12a9   :  { %4698 = vrcp.f32 %v2548_v35 }
0x12aa   :  { %4700 = vrcp.f32 %v2554_v60 }
0x12ab   :  { %4702 = vrcp.f32 %v2556_v58  ;;  %v4693_v54 = vpop.eup %4692 }
0x12ac   :  { %v2552_v42 = vpop.xlane.xlu1 %2551  ;;  %v2584_v46 = vmul.f32 %v4693_v54, %v6308_v59 }
0x12ad   :  { %4704 = vrcp.f32 %v2552_v42 }
0x12ae   :  { %4706 = vrcp.f32 %v2558_v17 }
0x12af   :  { %v4695_v28 = vpop.eup %4694 }
0x12b0   :  { %v2583_v48 = vmul.f32 %v4695_v28, %v6314_v29  ;;  %v4697_v30 = vpop.eup %4696 }
0x12b1   :  { %v2586_v51 = vmul.f32 %v4697_v30, %v6301_v26 }
0x12b2   :  { %3958 = vmatprep.mubr.f32.mxu1 %v2583_v48 }
0x12b3   :  { %v4699_v13 = vpop.eup %4698  ;;  %3959 = vmatmul.mubr.f32.gmra.mrb[32].mxu1 %v2584_v46 }
0x12b4   :  { %v2585_v9 = vmul.f32 %v4699_v13, %v6320_v32  ;;  %v4701_v50 = vpop.eup %4700 }
0x12b5   :  { %v4703_v10 = vpop.eup %4702  ;;  %v2588_v2 = vmul.f32 %v4701_v50, %v6305_v37 }
0x12b6   :  { %3961 = vmatprep.mubr.f32.mxu1 %v2585_v9  ;;  %v2589_v59 = vmul.f32 %v4703_v10, %v6311_v6  ;;  %v4294_v6 = vpack.c.bf16 %v2809_v55, %v2808_v61 }
0x12b7   :  { %v4705_v11 = vpop.eup %4704  ;;  %3962 = vmatmul.mubr.f32.gmra.mrb[34].mxu1 %v2586_v51 }
0x12b8   :  { %v2587_v27 = vmul.f32 %v4705_v11, %v6323_v38  ;;  %v4707_v39 = vpop.eup %4706  ;;  %v2807_v38 = vld [vmem:[#allocation27 + $0x8] sm:$0xff]  ;;  %v3436_v11 = vld [vmem:[#allocation28] ss:$0 sm:$0xff] }
0x12b9   :  { %v2590_v29 = vmul.f32 %v4707_v39, %v6317_v57  ;;  %v4290_v37 = vpack.c.bf16 %v2807_v38, %v2806_v24 }
0x12ba   :  { %3964 = vmatprep.mubr.f32.mxu1 %v2587_v27 }
0x12bb   :  { %3965 = vmatmul.mubr.f32.gmra.mrb[36].mxu1 %v2588_v2  ;;  %4291 = vmatprep.subr.bf16.mxu1 %v4290_v37 }
0x12bc   :  { %3967 = vmatprep.mubr.f32.mxu1 %v2589_v59  ;;  %4293 = vmatpush3.bf16.msra.mxu1 %v4290_v37 }
0x12bd   :  { %4295 = vmatprep.subr.bf16.mxu1 %v4294_v6 }
0x12bf   :  { %3968 = vmatmul.mubr.f32.gmra.mrb[38].mxu1 %v2590_v29 }
0x12c0   :  { %4297 = vmatpush3.bf16.msra.mxu1 %v4294_v6 }
0x12c1   :  { %4299 = vmatprep.subr.bf16.mxu1 %v4298_v34 }
0x12c4   :  { %4301 = vmatpush3.bf16.msra.mxu1 %v4298_v34 }
0x12c5   :  { %4303 = vmatprep.subr.bf16.mxu1 %v4302_v18 }
0x12c8   :  { %4305 = vmatpush3.bf16.msra.mxu1 %v4302_v18 }
0x134b   :  { %v6342_v32 = vpop.f32.mrb[24].mxu1 }
0x134c   :  { %v2657_v26 = vpop.f32.mrb[25].mxu1 }
0x134f   :  { %v3951_v8 = vpop.f32.mrb[26].mxu1 }
0x1350   :  { %2740 = vrot.lane.b32.xlu1 %v3951_v8, %s5285_s28  ;;  %v2667_v15 = vpop.f32.mrb[27].mxu1 }
0x1351   :  { %2738 = vrot.lane.b32.xlu0 %v2667_v15, %s5285_s28  ;;  %s6465_s28 = sld [smem:[#allocation60_spill]] }
0x1353   :  { %v3954_v33 = vpop.f32.mrb[28].mxu1 }
0x1354   :  { %v2677_v57 = vpop.f32.mrb[29].mxu1 }
0x1355   :  { %2748 = vrot.lane.b32.xlu0 %v3954_v33, %s5303_s7 }
0x1357   :  { %v3957_v20 = vpop.f32.mrb[30].mxu1  ;;  %v2948_v47 = vld [vmem:[%s6465_s28] sm:$0xff]  ;;  %v2949_v33 = vld [vmem:[%s6465_s28 + $0x8] sm:$0xff]  ;;  %v2950_v34 = vld [vmem:[%s6465_s28 + $0x10] sm:$0xff] }
0x1358   :  { %2756 = vrot.lane.b32.xlu1 %v3957_v20, %s5317_s15  ;;  %v2687_v23 = vpop.f32.mrb[31].mxu1  ;;  %v2951_v20 = vld [vmem:[%s6465_s28 + $0x18] sm:$0xff]  ;;  %v2952_v5 = vld [vmem:[%s6465_s28 + $0x20] sm:$0xff]  ;;  %v2953_v36 = vld [vmem:[%s6465_s28 + $0x28] sm:$0xff] }
0x1359   :  { %2746 = vrot.lane.b32.xlu0 %v2677_v57, %s5303_s7  ;;  %v4306_v57 = vpack.c.bf16 %v2949_v33, %v2948_v47  ;;  %s6466_s7 = sld [smem:[#allocation62_spill]]  ;;  %v4314_v18 = vpack.c.bf16 %v2953_v36, %v2952_v5  ;;  %v3191_v5 = vld [vmem:[%s5490_s13 + $0x38] sm:$0xff] }
0x135b   :  { %4307 = vmatprep.subr.bf16.mxu1 %v4306_v57 }
0x135d   :  { %2754 = vrot.lane.b32.xlu0 %v2687_v23, %s5317_s15  ;;  %v4310_v23 = vpack.c.bf16 %v2951_v20, %v2950_v34  ;;  %v3189_v34 = vld [vmem:[%s5490_s13 + $0x28] sm:$0xff] }
0x1386   :  { %v3960_v16 = vpop.f32.mrb[32].mxu1 }
0x1387   :  { %2764 = vrot.lane.b32.xlu1 %v3960_v16, %s5318_s16  ;;  %v2697_v22 = vpop.f32.mrb[33].mxu1  ;;  %v2954_v16 = vld [vmem:[%s6465_s28 + $0x30] sm:$0xff] }
0x1388   :  { %2762 = vrot.lane.b32.xlu0 %v2697_v22, %s5318_s16  ;;  %v2955_v22 = vld [vmem:[%s6465_s28 + $0x38] sm:$0xff] }
0x138a   :  { %v3963_v19 = vpop.f32.mrb[34].mxu1 }
0x138b   :  { %2772 = vrot.lane.b32.xlu1 %v3963_v19, %s5319_s18  ;;  %v2707_v21 = vpop.f32.mrb[35].mxu1  ;;  %v4318_v19 = vpack.c.bf16 %v2955_v22, %v2954_v16 }
0x138c   :  { %2770 = vrot.lane.b32.xlu0 %v2707_v21, %s5319_s18  ;;  %v3046_v21 = vld [vmem:[%s6466_s7] sm:$0xff] }
0x138e   :  { %v3966_v45 = vpop.f32.mrb[36].mxu1 }
0x138f   :  { %2780 = vrot.lane.b32.xlu1 %v3966_v45, %s5320_s26  ;;  %v2717_v14 = vpop.f32.mrb[37].mxu1  ;;  %v3047_v45 = vld [vmem:[%s6466_s7 + $0x8] sm:$0xff] }
0x1390   :  { %2778 = vrot.lane.b32.xlu0 %v2717_v14, %s5320_s26  ;;  %v4322_v14 = vpack.c.bf16 %v3047_v45, %v3046_v21 }
0x1392   :  { %v3969_v44 = vpop.f32.mrb[38].mxu1 }
0x1393   :  { %2788 = vrot.lane.b32.xlu1 %v3969_v44, %s5321_s25  ;;  %v2727_v25 = vpop.f32.mrb[39].mxu1 }
0x1394   :  { %2786 = vrot.lane.b32.xlu0 %v2727_v25, %s5321_s25 }
0x13c2   :  { %v2741_v52 = vpop.permute.xlu1 %2740 }
0x13c3   :  { %v2739_v31 = vpop.permute.xlu0 %2738  ;;  %v2793_v60 = vsel %vm504_vm0, %v6342_v32, %v2741_v52 }
0x13c4   :  { %v2792_v56 = vsel %vm504_vm0, %v2657_v26, %v2739_v31 }
0x13c7   :  { %v2749_v0 = vpop.permute.xlu0 %2748 }
0x13c8   :  { %v2795_v35 = vsel %vm419_vm1, %v2793_v60, %v2749_v0 }
0x13ca   :  { %v2757_v3 = vpop.permute.xlu1 %2756 }
0x13cb   :  { %v2747_v1 = vpop.permute.xlu0 %2746  ;;  %v2797_v17 = vsel %vm1596_vm7, %v2795_v35, %v2757_v3  ;;  %v3049_v35 = vld [vmem:[%s6466_s7 + $0x18] sm:$0xff] }
0x13cc   :  { %v2794_v41 = vsel %vm419_vm1, %v2792_v56, %v2747_v1 }
0x13cf   :  { %v2755_v53 = vpop.permute.xlu0 %2754 }
0x13d0   :  { %v2796_v42 = vsel %vm1596_vm7, %v2794_v41, %v2755_v53  ;;  %v3439_v53 = vld [vmem:[#allocation30] ss:$0 sm:$0xff] }
0x13f9   :  { %v2765_v7 = vpop.permute.xlu1 %2764 }
0x13fa   :  { %v2763_v63 = vpop.permute.xlu0 %2762  ;;  %v2799_v28 = vsel %vm594_vm2, %v2797_v17, %v2765_v7  ;;  %v3441_v17 = vld [vmem:[#allocation33] ss:$0 sm:$0xff] }
0x13fb   :  { %v2798_v54 = vsel %vm594_vm2, %v2796_v42, %v2763_v63  ;;  %v3440_v63 = vld [vmem:[#allocation31] ss:$0 sm:$0xff] }
0x13fd   :  { %v2773_v62 = vpop.permute.xlu1 %2772 }
0x13fe   :  { %v2771_v40 = vpop.permute.xlu0 %2770  ;;  %v2801_v30 = vsel %vm1601_vm8, %v2799_v28, %v2773_v62 }
0x13ff   :  { %v2800_v48 = vsel %vm1601_vm8, %v2798_v54, %v2771_v40 }
0x1401   :  { %v2781_v12 = vpop.permute.xlu1 %2780 }
0x1402   :  { %v2779_v58 = vpop.permute.xlu0 %2778  ;;  %v2803_v50 = vsel %vm1604_vm9, %v2801_v30, %v2781_v12 }
0x1403   :  { %v2802_v13 = vsel %vm1604_vm9, %v2800_v48, %v2779_v58  ;;  %v3048_v58 = vld [vmem:[%s6466_s7 + $0x10] sm:$0xff] }
0x1404   :  { %v4326_v42 = vpack.c.bf16 %v3049_v35, %v3048_v58 }
0x1405   :  { %v2789_v46 = vpop.permute.xlu1 %2788 }
0x1406   :  { %v2787_v9 = vpop.permute.xlu0 %2786  ;;  %v2805_v10 = vsel %vm1607_vm10, %v2803_v50, %v2789_v46 }
0x1407   :  { %v2804_v51 = vsel %vm1607_vm10, %v2802_v13, %v2787_v9  ;;  %v3444_v9 = vld [vmem:[#allocation34] ss:$0 sm:$0xff] }
0x1408   :  { %3986 = vmatprep.mubr.msk.f32.mxu1 %vm816_vm4, %v2804_v51 }
0x1409   :  { %3987 = vmatmul.mubr.msk.f32.vlgmr.msra.gmra.mrb[40].mxu1 %vm816_vm4, %v2805_v10 }
0x140a   :  { %4309 = vmatpush3.bf16.msra.mxu1 %v4306_v57  ;;  %v3188_v57 = vld [vmem:[%s5490_s13 + $0x20] sm:$0xff] }
0x140b   :  { %4311 = vmatprep.subr.bf16.mxu1 %v4310_v23  ;;  %v4338_v20 = vpack.c.bf16 %v3189_v34, %v3188_v57 }
0x140e   :  { %4313 = vmatpush3.bf16.msra.mxu1 %v4310_v23  ;;  %v3190_v23 = vld [vmem:[%s5490_s13 + $0x30] sm:$0xff] }
0x140f   :  { %4315 = vmatprep.subr.bf16.mxu1 %v4314_v18  ;;  %v4342_v36 = vpack.c.bf16 %v3191_v5, %v3190_v23 }
0x1412   :  { %4317 = vmatpush3.bf16.msra.mxu1 %v4314_v18 }
0x1413   :  { %4319 = vmatprep.subr.bf16.mxu1 %v4318_v19 }
0x1416   :  { %4321 = vmatpush3.bf16.msra.mxu1 %v4318_v19 }
0x1417   :  { %4323 = vmatprep.subr.bf16.mxu1 %v4322_v14 }
0x14dc   :  { %v3988_v27 = vpop.f32.mrb[40].mxu1 }
0x14dd   :  { %v2899_v2 = vadd.f32 %v3988_v27, %v3436_v11  ;;  %v2893_v39 = vpop.f32.mrb[41].mxu1 }
0x14de   :  { %v2894_v59 = vadd.f32 %v3436_v11, %v2893_v39 }
0x14df   :  { %v2903_v29 = vadd.f32 %v2899_v2, %v6037_v49 }
0x14e0   :  { %v2902_v32 = vadd.f32 %v2894_v59, %v6032_v43 }
0x14e1   :  { %v2909_v26 = vsel %vm816_vm4, %v2903_v29, 0.0 }
0x14e2   :  { %2910 = vadd.xlane.f32.xlu1 %v2909_v26  ;;  %v2906_v8 = vsel %vm816_vm4, %v2902_v32, 0.0  ;;  %v3186_v26 = vld [vmem:[%s5490_s13 + $0x10] sm:$0xff] }
0x14e3   :  { %2907 = vadd.xlane.f32.xlu0 %v2906_v8 }
0x156f   :  { %v2911_v15 = vpop.xlane.xlu1 %2910 }
0x1570   :  { %v2913_v24 = vmul.f32 0.015625, %v2911_v15  ;;  %v2908_v38 = vpop.xlane.xlu0 %2907  ;;  %v3187_v15 = vld [vmem:[%s5490_s13 + $0x18] sm:$0xff] }
0x1571   :  { %v2912_v61 = vmul.f32 0.015625, %v2908_v38 }
0x1572   :  { %v2915_v37 = vsub.f32 %v2903_v29, %v2913_v24  ;;  %v3184_v29 = vld [vmem:[%s5490_s13] sm:$0xff]  ;;  %v4334_v24 = vpack.c.bf16 %v3187_v15, %v3186_v26 }
0x1573   :  { %v2914_v55 = vsub.f32 %v2902_v32, %v2912_v61  ;;  %v3185_v32 = vld [vmem:[%s5490_s13 + $0x8] sm:$0xff] }
0x1574   :  { %v2917_v49 = vmul.f32 %v2915_v37, %v2915_v37  ;;  %v4330_v8 = vpack.c.bf16 %v3185_v32, %v3184_v29 }
0x1575   :  { %v2916_v6 = vmul.f32 %v2914_v55, %v2914_v55 }
0x1576   :  { %v2921_v4 = vsel %vm816_vm4, %v2917_v49, 0.0  ;;  %4331 = vmatprep.subr.bf16.mxu0 %v4330_v8 }
0x1577   :  { %v2918_v43 = vsel %vm816_vm4, %v2916_v6, 0.0  ;;  %4333 = vmatpush3.bf16.msra.mxu0 %v4330_v8 }
0x1578   :  { %2919 = vadd.xlane.f32.xlu0 %v2918_v43  ;;  %4335 = vmatprep.subr.bf16.mxu0 %v4334_v24 }
0x157b   :  { %4337 = vmatpush3.bf16.msra.mxu0 %v4334_v24 }
0x157c   :  { %2922 = vadd.xlane.f32.xlu0 %v2921_v4  ;;  %4339 = vmatprep.subr.bf16.mxu0 %v4338_v20 }
0x157f   :  { %4341 = vmatpush3.bf16.msra.mxu0 %v4338_v20 }
0x1580   :  { %4343 = vmatprep.subr.bf16.mxu0 %v4342_v36 }
0x1583   :  { %4345 = vmatpush3.bf16.msra.mxu0 %v4342_v36 }
0x1605   :  { %v2920_v44 = vpop.xlane.xlu0 %2919 }
0x1606   :  { %v2924_v25 = vmul.f32 0.015625, %v2920_v44  ;;  %v3447_v44 = vld [vmem:[%s6467_s22] ss:$0 sm:$0xff] }
0x1608   :  { %v2926_v31 = vadd.f32 1e-05, %v2924_v25 }
0x1609   :  { %v2923_v0 = vpop.xlane.xlu0 %2922 }
0x160a   :  { %4708 = vrsqrt.f32 %v2926_v31  ;;  %v2925_v1 = vmul.f32 0.015625, %v2923_v0 }
0x160c   :  { %v2927_v52 = vadd.f32 1e-05, %v2925_v1  ;;  %v3448_v1 = vld [vmem:[%s5485_s20] ss:$0 sm:$0xff] }
0x160e   :  { %4710 = vrsqrt.f32 %v2927_v52 }
0x1614   :  { %v4709_v3 = vpop.eup %4708 }
0x1615   :  { %v2930_v7 = vmul.f32 %v4709_v3, %v2914_v55 }
0x1617   :  { %v2938_v62 = vmul.f32 %v3439_v53, %v2930_v7 }
0x1618   :  { %v4711_v40 = vpop.eup %4710 }
0x1619   :  { %v2931_v56 = vmul.f32 %v4711_v40, %v2915_v37  ;;  %v2946_v12 = vadd.f32 %v3440_v63, %v2938_v62 }
0x161b   :  { %v2939_v60 = vmul.f32 %v3439_v53, %v2931_v56  ;;  %4005 = vmatprep.mubr.msk.f32.mxu1 %vm816_vm4, %v2946_v12 }
0x161d   :  { %v2947_v41 = vadd.f32 %v3440_v63, %v2939_v60  ;;  %v3449_v63 = vld [vmem:[%s5495_s30] ss:$0 sm:$0xff] }
0x161f   :  { %4006 = vmatmul.mubr.msk.f32.vlgmr.msra.gmra.mrb[42].mxu1 %vm816_vm4, %v2947_v41 }
0x1620   :  { %4325 = vmatpush3.bf16.msra.mxu1 %v4322_v14 }
0x1621   :  { %4327 = vmatprep.subr.bf16.mxu1 %v4326_v42 }
0x1624   :  { %4329 = vmatpush3.bf16.msra.mxu1 %v4326_v42 }
0x16f2   :  { %v4007_v54 = vpop.f32.mrb[42].mxu1 }
0x16f3   :  { %v3041_v28 = vadd.f32 %v4007_v54, %v3441_v17  ;;  %v3035_v48 = vpop.f32.mrb[43].mxu1 }
0x16f4   :  { %v3036_v46 = vadd.f32 %v3441_v17, %v3035_v48 }
0x16f5   :  { %v3045_v13 = vmax.f32 %v3041_v28, 0.0 }
0x16f6   :  { %v3044_v30 = vmax.f32 %v3036_v46, 0.0 }
0x16f8   :  { %4016 = vmatprep.mubr.msk.f32.mxu1 %vm594_vm2, %v3044_v30 }
0x16f9   :  { %4017 = vmatmul.mubr.msk.f32.vlgmr.msra.gmra.mrb[44].mxu1 %vm594_vm2, %v3045_v13 }
0x17cc   :  { %v4018_v50 = vpop.f32.mrb[44].mxu1 }
0x17cd   :  { %v3135_v51 = vadd.f32 %v4018_v50, %v3444_v9  ;;  %v3129_v10 = vpop.f32.mrb[45].mxu1 }
0x17ce   :  { %v3130_v11 = vadd.f32 %v3444_v9, %v3129_v10 }
0x17cf   :  { %v3139_v27 = vadd.f32 %v3135_v51, %v2947_v41 }
0x17d0   :  { %v3138_v2 = vadd.f32 %v3130_v11, %v2946_v12 }
0x17d1   :  { %v3145_v39 = vsel %vm816_vm4, %v3139_v27, 0.0 }
0x17d2   :  { %3146 = vadd.xlane.f32.xlu0 %v3145_v39  ;;  %v3142_v59 = vsel %vm816_vm4, %v3138_v2, 0.0 }
0x17d3   :  { %3143 = vadd.xlane.f32.xlu1 %v3142_v59 }
0x185f   :  { %v3147_v38 = vpop.xlane.xlu0 %3146 }
0x1860   :  { %v3149_v61 = vmul.f32 0.015625, %v3147_v38  ;;  %v3144_v37 = vpop.xlane.xlu1 %3143 }
0x1861   :  { %v3148_v55 = vmul.f32 0.015625, %v3144_v37 }
0x1862   :  { %v3151_v6 = vsub.f32 %v3139_v27, %v3149_v61 }
0x1863   :  { %v3150_v43 = vsub.f32 %v3138_v2, %v3148_v55 }
0x1864   :  { %v3153_v49 = vmul.f32 %v3151_v6, %v3151_v6 }
0x1865   :  { %v3152_v4 = vmul.f32 %v3150_v43, %v3150_v43 }
0x1866   :  { %v3157_v47 = vsel %vm816_vm4, %v3153_v49, 0.0 }
0x1867   :  { %3158 = vadd.xlane.f32.xlu0 %v3157_v47  ;;  %v3154_v33 = vsel %vm816_vm4, %v3152_v4, 0.0 }
0x1868   :  { %3155 = vadd.xlane.f32.xlu1 %v3154_v33 }
0x18f4   :  { %v3159_v18 = vpop.xlane.xlu0 %3158 }
0x18f5   :  { %v3161_v16 = vmul.f32 0.015625, %v3159_v18  ;;  %v3156_v22 = vpop.xlane.xlu1 %3155 }
0x18f6   :  { %v3160_v19 = vmul.f32 0.015625, %v3156_v22 }
0x18f7   :  { %v3163_v21 = vadd.f32 1e-05, %v3161_v16 }
0x18f8   :  { %v3162_v45 = vadd.f32 1e-05, %v3160_v19 }
0x18f9   :  { %4712 = vrsqrt.f32 %v3163_v21 }
0x18fa   :  { %4714 = vrsqrt.f32 %v3162_v45 }
0x1903   :  { %v4713_v14 = vpop.eup %4712 }
0x1904   :  { %v4715_v25 = vpop.eup %4714  ;;  %v3167_v31 = vmul.f32 %v4713_v14, %v3151_v6 }
0x1905   :  { %v3166_v0 = vmul.f32 %v4715_v25, %v3150_v43 }
0x1906   :  { %v3175_v52 = vmul.f32 %v3447_v44, %v3167_v31 }
0x1907   :  { %v3174_v3 = vmul.f32 %v3447_v44, %v3166_v0 }
0x1908   :  { %v3183_v7 = vadd.f32 %v3448_v1, %v3175_v52 }
0x1909   :  { %v3182_v53 = vadd.f32 %v3448_v1, %v3174_v3 }
0x190b   :  { %4035 = vmatprep.mubr.msk.f32.mxu0 %vm816_vm4, %v3182_v53 }
0x190c   :  { %4036 = vmatmul.mubr.msk.f32.vlgmr.msra.gmra.mrb[44].mxu0 %vm816_vm4, %v3183_v7 }
0x19df   :  { %v4037_v62 = vpop.f32.mrb[44].mxu0 }
0x19e0   :  { %v3277_v40 = vadd.f32 %v4037_v62, %v3449_v63  ;;  %v3271_v56 = vpop.f32.mrb[45].mxu0 }
0x19e1   :  { %v3272_v12 = vadd.f32 %v3449_v63, %v3271_v56 }
0x19e2   :  { %v3453_v60 = vmul.f32 -1.442695, %v3277_v40 }
0x19e3   :  { %v3452_v41 = vmul.f32 -1.442695, %v3272_v12 }
0x19e4   :  { %4716 = vpow2.f32 %v3453_v60 }
0x19e5   :  { %4718 = vpow2.f32 %v3452_v41 }
0x19ee   :  { %v4717_v58 = vpop.eup %4716 }
0x19ef   :  { %v4719_v35 = vpop.eup %4718  ;;  %v3287_v42 = vadd.f32 1.0, %v4717_v58 }
0x19f0   :  { %v3286_v17 = vadd.f32 1.0, %v4719_v35 }
0x19f1   :  { %4720 = vrcp.f32 %v3287_v42 }
0x19f2   :  { %4722 = vrcp.f32 %v3286_v17 }
0x19fb   :  { %v4721_v54 = vpop.eup %4720 }
0x19fc   :  { %v4723_v28 = vpop.eup %4722  ;;  %3294 = vst.msk [vmem:[%s5500_s9 + $0x8] sm:$0xff] %vm3292_vm11, %v4721_v54 }
0x19fd   :  { %3293 = vst.msk [vmem:[%s5500_s9] sm:$0xff] %vm3292_vm11, %v4723_v28 }
0x19fe   :  { %3299 = vsyncpa [#allocation3], 1 }
0x19ff   :  { %3300 = vsyncpa [#allocation5], 1 }
0x1a00   :  { %3301 = vsyncpa [#allocation8], 1 }
0x1a01   :  { %3302 = vsyncpa [#allocation11], 1 }
0x1a02   :  { %3303 = vsyncpa [#allocation14], 1 }
0x1a03   :  { %3304 = vsyncpa [#allocation17], 1 }
0x1a04   :  { %3305 = vsyncpa [#allocation20], 1 }
0x1a05   :  { %3306 = vsyncpa [#allocation23], 1 }
0x1a06   :  { %3307 = vsyncpa [#allocation26], 1 }
0x1a07   :  { %3308 = vsyncpa [#allocation29], 1 }
0x1a08   :  { %3309 = vsyncpa [#allocation32], 1 }
0x1a09   :  { %3310 = vsyncpa [#allocation35], 1 }

</bundles_post_ra>
